<compile_context>
chip_gen: v6e
topology: v6e:2x2x1
jax: 0.10.0
libtpu: 0.0.40
codegen_flags: <defaults>
</compile_context>

<pallas_src>
import functools

import jax
import jax.numpy as jnp
from jax.experimental import pallas as pl
from jax.experimental.pallas import tpu as pltpu

NEG_INF = -1000000.0


def _intro_gen_kernel(xt_ref, wih_ref, gib_ref, wblk_ref, bhn_ref, h0_ref,
                      wout_ref, bias_mask_ref, z_ref,
                      gi_scr, h_scr,
                      *, seq_len, batch, proj_chunk):
    """Single-program kernel; everything lives in VMEM (shapes are small).

    Layouts (feature-major, time-major columns; column index == t*B + b):
      xt_ref        (E, T*B)     bf16
      wih_ref       (6Hh, E)     bf16   rows: [fwd r,z,n | bwd r,z,n]
      gib_ref       (6Hh, 1)     f32    b_ih with b_hr, b_hz folded in
      wblk_ref      (6Hh, 2Hh)   bf16   block-diag [[Whh_f, 0], [0, Whh_b]]
      bhn_ref       (2Hh, 1)     f32    [b_hn_f ; b_hn_b]
      h0_ref        (2Hh, B)     f32    shared init hidden, stacked per direction
      wout_ref      (2, 2Hh)     f32    output Linear weight (cols: [fwd | bwd])
      bias_mask_ref (2, T*B)     f32    out bias + (1-mask)*NEG_INF on channel 1
      z_ref         (2, T*B)     f32    lane-dense channel-major output slab
    """
    T, B = seq_len, batch
    Hh = h0_ref.shape[0] // 2          # hidden_dim // 2 (per GRU direction)
    H3 = 3 * Hh

    # ---- (a) fused input->hidden projection for BOTH directions and all gates,
    #      biases (b_ih plus the r/z recurrent biases) folded in.  Stored in time
    #      chunks so the first recurrence steps need not wait for the whole
    #      projection; off the serial path. ----
    wih = wih_ref[...]
    cols = proj_chunk * B
    gib = jnp.broadcast_to(gib_ref[...], (2 * H3, cols))   # hoisted broadcast
    for c in range(T // proj_chunk):
        lo = c * cols
        gi_scr[:, lo:lo + cols] = (
            jnp.dot(wih, xt_ref[:, lo:lo + cols],
                    preferred_element_type=jnp.float32) + gib)

    # ---- (b) loop invariants held in vregs (no per-step reload / broadcast). ----
    wblk = wblk_ref[...]                                   # (6Hh, 2Hh) bf16
    bhn_f = jnp.broadcast_to(bhn_ref[0:Hh, :], (Hh, B))
    bhn_b = jnp.broadcast_to(bhn_ref[Hh:2 * Hh, :], (Hh, B))

    def gru_gate(gi3, gh3, bhn, h_prev):
        # PyTorch nn.GRU equations in feature-major form, gate rows [r, z, n].
        # r/z biases already live in gi3; b_hn is applied inside r*(.) as in nn.GRU.
        r = jax.nn.sigmoid(gi3[0:Hh] + gh3[0:Hh])
        z = jax.nn.sigmoid(gi3[Hh:2 * Hh] + gh3[Hh:2 * Hh])
        n = jnp.tanh(gi3[2 * Hh:H3] + r * (gh3[2 * Hh:H3] + bhn))
        return (1.0 - z) * n + z * h_prev                  # (Hh, B)

    # ---- (c) recurrence: fwd and bwd interleaved; ONE block-diagonal bf16 MXU
    #      matmul per timestep serves both directions.  T is a static trace-time
    #      constant -> full unroll with purely static ref indices. ----
    h_cat = h0_ref[...]                                    # (2Hh, B) f32
    for s in range(T):                                     # static -> full unroll
        tb = T - 1 - s
        gh = jnp.dot(wblk, h_cat.astype(jnp.bfloat16),
                     preferred_element_type=jnp.float32)   # (6Hh, B)
        gi_f = gi_scr[0:H3, s * B:(s + 1) * B]             # fwd gates at time s
        gi_b = gi_scr[H3:2 * H3, tb * B:(tb + 1) * B]      # bwd gates at time T-1-s
        h_f = gru_gate(gi_f, gh[0:H3], bhn_f, h_cat[0:Hh])
        h_b = gru_gate(gi_b, gh[H3:2 * H3], bhn_b, h_cat[Hh:2 * Hh])
        h_scr[0:Hh, s * B:(s + 1) * B] = h_f               # stored in consumed layout
        h_scr[Hh:2 * Hh, tb * B:(tb + 1) * B] = h_b
        h_cat = jnp.concatenate([h_f, h_b], axis=0)        # (2Hh, B)

    # ---- (d)+(e) output Linear(hidden_dim, 2) over concat(fwd, bwd) hidden states,
    #      emitted as a lane-dense (2, T*B) slab; output bias and the
    #      (1 - mask) * NEG_INF penalty are pre-folded into bias_mask_ref. ----
    z_ref[...] = (jnp.dot(wout_ref[...], h_scr[...],
                          preferred_element_type=jnp.float32)
                  + bias_mask_ref[...])


def _proj_chunk_steps(T, B):
    """Time steps per projection chunk: only chunk when each chunk stays lane-dense
    (a multiple of 128 lanes wide); otherwise a single chunk (the toy-shape case)."""
    for steps in (max(T // 8, 1), max(T // 4, 1), max(T // 2, 1)):
        if T % steps == 0 and (steps * B) % 128 == 0:
            return steps
    return T


def make_params(key, num_labels, label_embedding_dim, hidden_dim, embedding_dim):
    """Deterministic synthetic parameters in PyTorch-native shapes."""
    Hh = hidden_dim // 2
    ks = iter(jax.random.split(key, 20))

    def u(shape, scale):
        return jax.random.uniform(next(ks), shape, jnp.float32, -scale, scale)

    p = {}
    # nn.Embedding(num_labels, label_embedding_dim), weight ~ N(0, 0.1)
    p["lab_embed"] = 0.1 * jax.random.normal(
        next(ks), (num_labels, label_embedding_dim), jnp.float32)
    # nn.Linear(label_embedding_dim, hidden_dim // 2): weight (Hh, Ld), bias (Hh,)
    st = 1.0 / (label_embedding_dim ** 0.5)
    p["trans_w"] = u((Hh, label_embedding_dim), st)
    p["trans_b"] = u((Hh,), st)
    # Bidirectional nn.GRU (1 layer, hidden_size=Hh), gate order [r, z, n]:
    # weight_ih (3Hh, E), weight_hh (3Hh, Hh), bias_ih/bias_hh (3Hh,)
    sg = 1.0 / (Hh ** 0.5)
    for d in ("f", "b"):
        p[f"wih_{d}"] = u((3 * Hh, embedding_dim), sg)
        p[f"whh_{d}"] = u((3 * Hh, Hh), sg)
        p[f"bih_{d}"] = u((3 * Hh,), sg)
        p[f"bhh_{d}"] = u((3 * Hh,), sg)
    # DepGenerator output layer nn.Linear(hidden_dim, 2): (2, 2Hh), (2,)
    so = 1.0 / (hidden_dim ** 0.5)
    p["out_w"] = u((2, hidden_dim), so)
    p["out_b"] = u((2,), so)
    return p


@jax.jit
def introspection_generator_forward(params, word_embeddings, cls_pred, mask):
    """word_embeddings: (B, T, E) f32, cls_pred: (B,) int, mask: (B, T) f32.
    Returns z_scores: (B, T, 2) f32 (matching the PyTorch module)."""
    B, T, E = word_embeddings.shape
    Hh = params["trans_w"].shape[0]
    H3 = 3 * Hh

    # Steps 1-2 of the module (label embedding + Linear + tanh) stay in XLA: the
    # kernel only receives the per-example initial hidden state, shared by both
    # GRU directions (the module's .expand(2, ...)).
    h0_table = jnp.tanh(params["lab_embed"] @ params["trans_w"].T + params["trans_b"])
    h0 = h0_table[cls_pred.astype(jnp.int32)]              # (B, Hh)
    h0_cat = jnp.concatenate([h0.T, h0.T], axis=0)         # (2Hh, B)

    # Feature-major, time-major-column layouts (column index == t*B + b).
    xt = jnp.transpose(word_embeddings, (2, 1, 0)).reshape(E, T * B)
    mask_t = jnp.transpose(mask.astype(jnp.float32), (1, 0)).reshape(1, T * B)

    # Fused input-projection weight for both directions (rows: fwd r,z,n | bwd r,z,n).
    wih_cat = jnp.concatenate([params["wih_f"], params["wih_b"]], axis=0)   # (6Hh, E)

    # gi bias: b_ih plus the r,z recurrent biases folded in; only b_hn stays per-step.
    def _gi_bias(bih, bhh):
        return bih + jnp.concatenate([bhh[:2 * Hh], jnp.zeros((Hh,), jnp.float32)])

    gib = jnp.concatenate([_gi_bias(params["bih_f"], params["bhh_f"]),
                           _gi_bias(params["bih_b"], params["bhh_b"])])[:, None]
    bhn = jnp.concatenate([params["bhh_f"][2 * Hh:],
                           params["bhh_b"][2 * Hh:]])[:, None]              # (2Hh, 1)

    # Block-diagonal recurrent weight: one fused (6Hh, 2Hh) bf16 matmul per timestep.
    z3 = jnp.zeros((H3, Hh), jnp.float32)
    wblk = jnp.concatenate(
        [jnp.concatenate([params["whh_f"], z3], axis=1),
         jnp.concatenate([z3, params["whh_b"]], axis=1)], axis=0)           # (6Hh, 2Hh)

    # Output bias and the (1 - mask) * NEG_INF penalty folded into one (2, T*B) slab.
    bias_mask = params["out_b"][:, None] + jnp.concatenate(
        [jnp.zeros((1, T * B), jnp.float32), (1.0 - mask_t) * NEG_INF], axis=0)

    inputs = (xt.astype(jnp.bfloat16), wih_cat.astype(jnp.bfloat16), gib,
              wblk.astype(jnp.bfloat16), bhn, h0_cat, params["out_w"], bias_mask)

    vmem = pl.BlockSpec(memory_space=pltpu.MemorySpace.VMEM)
    kern = functools.partial(_intro_gen_kernel, seq_len=T, batch=B,
                             proj_chunk=_proj_chunk_steps(T, B))
    z_cm = pl.pallas_call(
        kern,
        out_shape=jax.ShapeDtypeStruct((2, T * B), jnp.float32),
        in_specs=[vmem] * len(inputs),
        out_specs=vmem,
        scratch_shapes=[pltpu.VMEM((2 * H3, T * B), jnp.float32),   # gi for all steps
                        pltpu.VMEM((2 * Hh, T * B), jnp.float32)],  # fwd/bwd hidden
        compiler_params=pltpu.CompilerParams(vmem_limit_bytes=32 * 1024 * 1024),
    )(*inputs)

    return z_cm.reshape(2, T, B).transpose(2, 1, 0)        # (B, T, 2)


def reference_forward(params, word_embeddings, cls_pred, mask):
    """Pure-JAX f32 reference of IntrospectionGeneratorModule.forward."""
    B, T, E = word_embeddings.shape
    Hh = params["trans_w"].shape[0]
    h0 = jnp.tanh(params["lab_embed"][cls_pred.astype(jnp.int32)]
                  @ params["trans_w"].T + params["trans_b"])            # (B, Hh)

    def gru_dir(wih, whh, bih, bhh, xs):
        def step(h, x_t):
            gi = x_t @ wih.T + bih
            gh = h @ whh.T + bhh
            r = jax.nn.sigmoid(gi[:, :Hh] + gh[:, :Hh])
            z = jax.nn.sigmoid(gi[:, Hh:2 * Hh] + gh[:, Hh:2 * Hh])
            n = jnp.tanh(gi[:, 2 * Hh:] + r * gh[:, 2 * Hh:])
            h_new = (1.0 - z) * n + z * h
            return h_new, h_new
        _, hs = jax.lax.scan(step, h0, xs)
        return hs                                                       # (T, B, Hh)

    x_tbe = jnp.transpose(word_embeddings, (1, 0, 2))                   # (T, B, E)
    hf = gru_dir(params["wih_f"], params["whh_f"],
                 params["bih_f"], params["bhh_f"], x_tbe)
    hb = gru_dir(params["wih_b"], params["whh_b"],
                 params["bih_b"], params["bhh_b"], x_tbe[::-1])[::-1]
    h_all = jnp.concatenate([hf, hb], axis=-1)                          # (T, B, 2Hh)
    z = h_all @ params["out_w"].T + params["out_b"]                     # (T, B, 2)
    z = jnp.transpose(z, (1, 0, 2))                                     # (B, T, 2)
    return z.at[:, :, 1].add((1.0 - mask.astype(jnp.float32)) * NEG_INF)


if __name__ == "__main__":
    # Small shapes consistent with the module's forward:
    #   batch B=2, seq T=8, embedding_dim E=32, hidden_dim=32, label_embedding_dim=32,
    #   num_labels=2.
    B, T, E = 2, 8, 32
    num_labels, hidden_dim, label_embedding_dim = 2, 32, 32

    key = jax.random.PRNGKey(0)
    kp, kx, kc = jax.random.split(key, 3)
    params = make_params(kp, num_labels, label_embedding_dim, hidden_dim, E)

    word_embeddings = jax.random.normal(kx, (B, T, E), jnp.float32)
    cls_pred = jax.random.randint(kc, (B,), 0, num_labels)
    mask = jnp.ones((B, T), jnp.float32).at[:, 6:].set(0.0)   # last 2 positions padded

    z_scores = introspection_generator_forward(params, word_embeddings, cls_pred, mask)
    jax.block_until_ready(z_scores)

    z_ref = reference_forward(params, word_embeddings, cls_pred, mask)
    assert z_scores.shape == (B, T, 2)
    assert bool(jnp.all(z_scores[:, 6:, 1] < -1e5))           # masked -> NEG_INF
    max_err = float(jnp.max(jnp.abs(z_scores - z_ref)))       # bf16 matmul tolerance
    assert max_err < 1e-1, f"max abs error vs f32 reference: {max_err}"
    print("KERNEL_OK")
</pallas_src>

<mosaic_0001>
module attributes {stable_mosaic.version = 11 : i64} {
  func.func @_intro_gen_kernel(%arg0: memref<32x16xbf16, #tpu.memory_space<vmem>>, %arg1: memref<96x32xbf16, #tpu.memory_space<vmem>>, %arg2: memref<96x1xf32, #tpu.memory_space<vmem>>, %arg3: memref<96x32xbf16, #tpu.memory_space<vmem>>, %arg4: memref<32x1xf32, #tpu.memory_space<vmem>>, %arg5: memref<32x2xf32, #tpu.memory_space<vmem>>, %arg6: memref<2x32xf32, #tpu.memory_space<vmem>>, %arg7: memref<2x16xf32, #tpu.memory_space<vmem>>, %arg8: memref<2x16xf32, #tpu.memory_space<vmem>>, %arg9: memref<96x16xf32, #tpu.memory_space<vmem>>, %arg10: memref<32x16xf32, #tpu.memory_space<vmem>>) attributes {dimension_semantics = [], scalar_prefetch = 0 : i64, scratch_operands = 2 : i64, tpu.core_type = #tpu.core_type<tc>} {
    %c0 = arith.constant 0 : index
    %c0_0 = arith.constant 0 : index
    %0 = vector.load %arg1[%c0, %c0_0] : memref<96x32xbf16, #tpu.memory_space<vmem>>, vector<96x32xbf16>
    %c0_1 = arith.constant 0 : index
    %c0_2 = arith.constant 0 : index
    %1 = vector.load %arg2[%c0_1, %c0_2] : memref<96x1xf32, #tpu.memory_space<vmem>>, vector<96x1xf32>
    %2 = vector.shape_cast %1 : vector<96x1xf32> to vector<96x1xf32>
    %3 = vector.broadcast %2 : vector<96x1xf32> to vector<96x16xf32>
    %c0_3 = arith.constant 0 : index
    %c0_4 = arith.constant 0 : index
    %4 = vector.load %arg0[%c0_3, %c0_4] : memref<32x16xbf16, #tpu.memory_space<vmem>>, vector<32x16xbf16>
    %cst = arith.constant dense<0.000000e+00> : vector<96x16xf32>
    %5 = tpu.matmul %0, %4, %cst {dimension_numbers = #tpu.dot_dimension_numbers<[1], [0], [0], [1], [0, 0, 1, 1], [], []>} : vector<96x32xbf16>, vector<32x16xbf16>, vector<96x16xf32> -> vector<96x16xf32>
    %6 = arith.addf %5, %3 : vector<96x16xf32>
    %c0_5 = arith.constant 0 : index
    %c0_6 = arith.constant 0 : index
    %7 = vector.load %arg9[%c0_5, %c0_6] : memref<96x16xf32, #tpu.memory_space<vmem>>, vector<96x16xf32>
    tpu.vector_store %arg9[%c0_5, %c0_6], %6 {strides = array<i32>} : memref<96x16xf32, #tpu.memory_space<vmem>>, vector<96x16xf32>,
    %c0_7 = arith.constant 0 : index
    %c0_8 = arith.constant 0 : index
    %8 = vector.load %arg3[%c0_7, %c0_8] : memref<96x32xbf16, #tpu.memory_space<vmem>>, vector<96x32xbf16>
    %c0_9 = arith.constant 0 : index
    %c0_10 = arith.constant 0 : index
    %9 = vector.load %arg4[%c0_9, %c0_10] : memref<32x1xf32, #tpu.memory_space<vmem>>, vector<16x1xf32>
    %10 = vector.shape_cast %9 : vector<16x1xf32> to vector<16x1xf32>
    %11 = vector.broadcast %10 : vector<16x1xf32> to vector<16x2xf32>
    %c16 = arith.constant 16 : index
    %c0_11 = arith.constant 0 : index
    %12 = vector.load %arg4[%c16, %c0_11] : memref<32x1xf32, #tpu.memory_space<vmem>>, vector<16x1xf32>
    %13 = vector.shape_cast %12 : vector<16x1xf32> to vector<16x1xf32>
    %14 = vector.broadcast %13 : vector<16x1xf32> to vector<16x2xf32>
    %c0_12 = arith.constant 0 : index
    %c0_13 = arith.constant 0 : index
    %15 = vector.load %arg5[%c0_12, %c0_13] : memref<32x2xf32, #tpu.memory_space<vmem>>, vector<32x2xf32>
    %16 = arith.truncf %15 : vector<32x2xf32> to vector<32x2xbf16>
    %cst_14 = arith.constant dense<0.000000e+00> : vector<96x2xf32>
    %17 = tpu.matmul %8, %16, %cst_14 {dimension_numbers = #tpu.dot_dimension_numbers<[1], [0], [0], [1], [0, 0, 1, 1], [], []>} : vector<96x32xbf16>, vector<32x2xbf16>, vector<96x2xf32> -> vector<96x2xf32>
    %c0_15 = arith.constant 0 : index
    %c0_16 = arith.constant 0 : index
    %18 = vector.load %arg9[%c0_15, %c0_16] : memref<96x16xf32, #tpu.memory_space<vmem>>, vector<48x2xf32>
    %c48 = arith.constant 48 : index
    %c14 = arith.constant 14 : index
    %19 = vector.load %arg9[%c48, %c14] : memref<96x16xf32, #tpu.memory_space<vmem>>, vector<48x2xf32>
    %20 = vector.extract_strided_slice %17 {offsets = [0, 0], sizes = [48, 2], strides = [1, 1]} : vector<96x2xf32> to vector<48x2xf32>
    %21 = vector.extract_strided_slice %15 {offsets = [0, 0], sizes = [16, 2], strides = [1, 1]} : vector<32x2xf32> to vector<16x2xf32>
    %22 = vector.extract_strided_slice %18 {offsets = [0, 0], sizes = [16, 2], strides = [1, 1]} : vector<48x2xf32> to vector<16x2xf32>
    %23 = vector.extract_strided_slice %20 {offsets = [0, 0], sizes = [16, 2], strides = [1, 1]} : vector<48x2xf32> to vector<16x2xf32>
    %24 = arith.addf %22, %23 : vector<16x2xf32>
    %25 = arith.negf %24 : vector<16x2xf32>
    %26 = math.exp %25 : vector<16x2xf32>
    %cst_17 = arith.constant 1.000000e+00 : f32
    %27 = vector.broadcast %cst_17 : f32 to vector<16x2xf32>
    %28 = arith.addf %27, %26 : vector<16x2xf32>
    %29 = arith.divf %27, %28 : vector<16x2xf32>
    %30 = vector.extract_strided_slice %18 {offsets = [16, 0], sizes = [16, 2], strides = [1, 1]} : vector<48x2xf32> to vector<16x2xf32>
    %31 = vector.extract_strided_slice %20 {offsets = [16, 0], sizes = [16, 2], strides = [1, 1]} : vector<48x2xf32> to vector<16x2xf32>
    %32 = arith.addf %30, %31 : vector<16x2xf32>
    %33 = arith.negf %32 : vector<16x2xf32>
    %34 = math.exp %33 : vector<16x2xf32>
    %cst_18 = arith.constant 1.000000e+00 : f32
    %35 = vector.broadcast %cst_18 : f32 to vector<16x2xf32>
    %36 = arith.addf %35, %34 : vector<16x2xf32>
    %37 = arith.divf %35, %36 : vector<16x2xf32>
    %38 = vector.extract_strided_slice %18 {offsets = [32, 0], sizes = [16, 2], strides = [1, 1]} : vector<48x2xf32> to vector<16x2xf32>
    %39 = vector.extract_strided_slice %20 {offsets = [32, 0], sizes = [16, 2], strides = [1, 1]} : vector<48x2xf32> to vector<16x2xf32>
    %40 = arith.addf %39, %11 : vector<16x2xf32>
    %41 = arith.mulf %29, %40 : vector<16x2xf32>
    %42 = arith.addf %38, %41 : vector<16x2xf32>
    %43 = math.tanh %42 : vector<16x2xf32>
    %cst_19 = arith.constant 1.000000e+00 : f32
    %44 = vector.broadcast %cst_19 : f32 to vector<16x2xf32>
    %45 = arith.subf %44, %37 : vector<16x2xf32>
    %46 = arith.mulf %45, %43 : vector<16x2xf32>
    %47 = arith.mulf %37, %21 : vector<16x2xf32>
    %48 = arith.addf %46, %47 : vector<16x2xf32>
    %49 = vector.extract_strided_slice %17 {offsets = [48, 0], sizes = [48, 2], strides = [1, 1]} : vector<96x2xf32> to vector<48x2xf32>
    %50 = vector.extract_strided_slice %15 {offsets = [16, 0], sizes = [16, 2], strides = [1, 1]} : vector<32x2xf32> to vector<16x2xf32>
    %51 = vector.extract_strided_slice %19 {offsets = [0, 0], sizes = [16, 2], strides = [1, 1]} : vector<48x2xf32> to vector<16x2xf32>
    %52 = vector.extract_strided_slice %49 {offsets = [0, 0], sizes = [16, 2], strides = [1, 1]} : vector<48x2xf32> to vector<16x2xf32>
    %53 = arith.addf %51, %52 : vector<16x2xf32>
    %54 = arith.negf %53 : vector<16x2xf32>
    %55 = math.exp %54 : vector<16x2xf32>
    %cst_20 = arith.constant 1.000000e+00 : f32
    %56 = vector.broadcast %cst_20 : f32 to vector<16x2xf32>
    %57 = arith.addf %56, %55 : vector<16x2xf32>
    %58 = arith.divf %56, %57 : vector<16x2xf32>
    %59 = vector.extract_strided_slice %19 {offsets = [16, 0], sizes = [16, 2], strides = [1, 1]} : vector<48x2xf32> to vector<16x2xf32>
    %60 = vector.extract_strided_slice %49 {offsets = [16, 0], sizes = [16, 2], strides = [1, 1]} : vector<48x2xf32> to vector<16x2xf32>
    %61 = arith.addf %59, %60 : vector<16x2xf32>
    %62 = arith.negf %61 : vector<16x2xf32>
    %63 = math.exp %62 : vector<16x2xf32>
    %cst_21 = arith.constant 1.000000e+00 : f32
    %64 = vector.broadcast %cst_21 : f32 to vector<16x2xf32>
    %65 = arith.addf %64, %63 : vector<16x2xf32>
    %66 = arith.divf %64, %65 : vector<16x2xf32>
    %67 = vector.extract_strided_slice %19 {offsets = [32, 0], sizes = [16, 2], strides = [1, 1]} : vector<48x2xf32> to vector<16x2xf32>
    %68 = vector.extract_strided_slice %49 {offsets = [32, 0], sizes = [16, 2], strides = [1, 1]} : vector<48x2xf32> to vector<16x2xf32>
    %69 = arith.addf %68, %14 : vector<16x2xf32>
    %70 = arith.mulf %58, %69 : vector<16x2xf32>
    %71 = arith.addf %67, %70 : vector<16x2xf32>
    %72 = math.tanh %71 : vector<16x2xf32>
    %cst_22 = arith.constant 1.000000e+00 : f32
    %73 = vector.broadcast %cst_22 : f32 to vector<16x2xf32>
    %74 = arith.subf %73, %66 : vector<16x2xf32>
    %75 = arith.mulf %74, %72 : vector<16x2xf32>
    %76 = arith.mulf %66, %50 : vector<16x2xf32>
    %77 = arith.addf %75, %76 : vector<16x2xf32>
    %c0_23 = arith.constant 0 : index
    %c0_24 = arith.constant 0 : index
    %78 = vector.load %arg10[%c0_23, %c0_24] : memref<32x16xf32, #tpu.memory_space<vmem>>, vector<16x2xf32>
    tpu.vector_store %arg10[%c0_23, %c0_24], %48 {strides = array<i32>} : memref<32x16xf32, #tpu.memory_space<vmem>>, vector<16x2xf32>,
    %c16_25 = arith.constant 16 : index
    %c14_26 = arith.constant 14 : index
    %79 = vector.load %arg10[%c16_25, %c14_26] : memref<32x16xf32, #tpu.memory_space<vmem>>, vector<16x2xf32>
    tpu.vector_store %arg10[%c16_25, %c14_26], %77 {strides = array<i32>} : memref<32x16xf32, #tpu.memory_space<vmem>>, vector<16x2xf32>,
    %80 = tpu.concatenate %48, %77 in 0 : vector<16x2xf32>, vector<16x2xf32> -> vector<32x2xf32>
    %81 = arith.truncf %80 : vector<32x2xf32> to vector<32x2xbf16>
    %cst_27 = arith.constant dense<0.000000e+00> : vector<96x2xf32>
    %82 = tpu.matmul %8, %81, %cst_27 {dimension_numbers = #tpu.dot_dimension_numbers<[1], [0], [0], [1], [0, 0, 1, 1], [], []>} : vector<96x32xbf16>, vector<32x2xbf16>, vector<96x2xf32> -> vector<96x2xf32>
    %c0_28 = arith.constant 0 : index
    %c2 = arith.constant 2 : index
    %83 = vector.load %arg9[%c0_28, %c2] : memref<96x16xf32, #tpu.memory_space<vmem>>, vector<48x2xf32>
    %c48_29 = arith.constant 48 : index
    %c12 = arith.constant 12 : index
    %84 = vector.load %arg9[%c48_29, %c12] : memref<96x16xf32, #tpu.memory_space<vmem>>, vector<48x2xf32>
    %85 = vector.extract_strided_slice %82 {offsets = [0, 0], sizes = [48, 2], strides = [1, 1]} : vector<96x2xf32> to vector<48x2xf32>
    %86 = vector.extract_strided_slice %80 {offsets = [0, 0], sizes = [16, 2], strides = [1, 1]} : vector<32x2xf32> to vector<16x2xf32>
    %87 = vector.extract_strided_slice %83 {offsets = [0, 0], sizes = [16, 2], strides = [1, 1]} : vector<48x2xf32> to vector<16x2xf32>
    %88 = vector.extract_strided_slice %85 {offsets = [0, 0], sizes = [16, 2], strides = [1, 1]} : vector<48x2xf32> to vector<16x2xf32>
    %89 = arith.addf %87, %88 : vector<16x2xf32>
    %90 = arith.negf %89 : vector<16x2xf32>
    %91 = math.exp %90 : vector<16x2xf32>
    %cst_30 = arith.constant 1.000000e+00 : f32
    %92 = vector.broadcast %cst_30 : f32 to vector<16x2xf32>
    %93 = arith.addf %92, %91 : vector<16x2xf32>
    %94 = arith.divf %92, %93 : vector<16x2xf32>
    %95 = vector.extract_strided_slice %83 {offsets = [16, 0], sizes = [16, 2], strides = [1, 1]} : vector<48x2xf32> to vector<16x2xf32>
    %96 = vector.extract_strided_slice %85 {offsets = [16, 0], sizes = [16, 2], strides = [1, 1]} : vector<48x2xf32> to vector<16x2xf32>
    %97 = arith.addf %95, %96 : vector<16x2xf32>
    %98 = arith.negf %97 : vector<16x2xf32>
    %99 = math.exp %98 : vector<16x2xf32>
    %cst_31 = arith.constant 1.000000e+00 : f32
    %100 = vector.broadcast %cst_31 : f32 to vector<16x2xf32>
    %101 = arith.addf %100, %99 : vector<16x2xf32>
    %102 = arith.divf %100, %101 : vector<16x2xf32>
    %103 = vector.extract_strided_slice %83 {offsets = [32, 0], sizes = [16, 2], strides = [1, 1]} : vector<48x2xf32> to vector<16x2xf32>
    %104 = vector.extract_strided_slice %85 {offsets = [32, 0], sizes = [16, 2], strides = [1, 1]} : vector<48x2xf32> to vector<16x2xf32>
    %105 = arith.addf %104, %11 : vector<16x2xf32>
    %106 = arith.mulf %94, %105 : vector<16x2xf32>
    %107 = arith.addf %103, %106 : vector<16x2xf32>
    %108 = math.tanh %107 : vector<16x2xf32>
    %cst_32 = arith.constant 1.000000e+00 : f32
    %109 = vector.broadcast %cst_32 : f32 to vector<16x2xf32>
    %110 = arith.subf %109, %102 : vector<16x2xf32>
    %111 = arith.mulf %110, %108 : vector<16x2xf32>
    %112 = arith.mulf %102, %86 : vector<16x2xf32>
    %113 = arith.addf %111, %112 : vector<16x2xf32>
    %114 = vector.extract_strided_slice %82 {offsets = [48, 0], sizes = [48, 2], strides = [1, 1]} : vector<96x2xf32> to vector<48x2xf32>
    %115 = vector.extract_strided_slice %80 {offsets = [16, 0], sizes = [16, 2], strides = [1, 1]} : vector<32x2xf32> to vector<16x2xf32>
    %116 = vector.extract_strided_slice %84 {offsets = [0, 0], sizes = [16, 2], strides = [1, 1]} : vector<48x2xf32> to vector<16x2xf32>
    %117 = vector.extract_strided_slice %114 {offsets = [0, 0], sizes = [16, 2], strides = [1, 1]} : vector<48x2xf32> to vector<16x2xf32>
    %118 = arith.addf %116, %117 : vector<16x2xf32>
    %119 = arith.negf %118 : vector<16x2xf32>
    %120 = math.exp %119 : vector<16x2xf32>
    %cst_33 = arith.constant 1.000000e+00 : f32
    %121 = vector.broadcast %cst_33 : f32 to vector<16x2xf32>
    %122 = arith.addf %121, %120 : vector<16x2xf32>
    %123 = arith.divf %121, %122 : vector<16x2xf32>
    %124 = vector.extract_strided_slice %84 {offsets = [16, 0], sizes = [16, 2], strides = [1, 1]} : vector<48x2xf32> to vector<16x2xf32>
    %125 = vector.extract_strided_slice %114 {offsets = [16, 0], sizes = [16, 2], strides = [1, 1]} : vector<48x2xf32> to vector<16x2xf32>
    %126 = arith.addf %124, %125 : vector<16x2xf32>
    %127 = arith.negf %126 : vector<16x2xf32>
    %128 = math.exp %127 : vector<16x2xf32>
    %cst_34 = arith.constant 1.000000e+00 : f32
    %129 = vector.broadcast %cst_34 : f32 to vector<16x2xf32>
    %130 = arith.addf %129, %128 : vector<16x2xf32>
    %131 = arith.divf %129, %130 : vector<16x2xf32>
    %132 = vector.extract_strided_slice %84 {offsets = [32, 0], sizes = [16, 2], strides = [1, 1]} : vector<48x2xf32> to vector<16x2xf32>
    %133 = vector.extract_strided_slice %114 {offsets = [32, 0], sizes = [16, 2], strides = [1, 1]} : vector<48x2xf32> to vector<16x2xf32>
    %134 = arith.addf %133, %14 : vector<16x2xf32>
    %135 = arith.mulf %123, %134 : vector<16x2xf32>
    %136 = arith.addf %132, %135 : vector<16x2xf32>
    %137 = math.tanh %136 : vector<16x2xf32>
    %cst_35 = arith.constant 1.000000e+00 : f32
    %138 = vector.broadcast %cst_35 : f32 to vector<16x2xf32>
    %139 = arith.subf %138, %131 : vector<16x2xf32>
    %140 = arith.mulf %139, %137 : vector<16x2xf32>
    %141 = arith.mulf %131, %115 : vector<16x2xf32>
    %142 = arith.addf %140, %141 : vector<16x2xf32>
    %c0_36 = arith.constant 0 : index
    %c2_37 = arith.constant 2 : index
    %143 = vector.load %arg10[%c0_36, %c2_37] : memref<32x16xf32, #tpu.memory_space<vmem>>, vector<16x2xf32>
    tpu.vector_store %arg10[%c0_36, %c2_37], %113 {strides = array<i32>} : memref<32x16xf32, #tpu.memory_space<vmem>>, vector<16x2xf32>,
    %c16_38 = arith.constant 16 : index
    %c12_39 = arith.constant 12 : index
    %144 = vector.load %arg10[%c16_38, %c12_39] : memref<32x16xf32, #tpu.memory_space<vmem>>, vector<16x2xf32>
    tpu.vector_store %arg10[%c16_38, %c12_39], %142 {strides = array<i32>} : memref<32x16xf32, #tpu.memory_space<vmem>>, vector<16x2xf32>,
    %145 = tpu.concatenate %113, %142 in 0 : vector<16x2xf32>, vector<16x2xf32> -> vector<32x2xf32>
    %146 = arith.truncf %145 : vector<32x2xf32> to vector<32x2xbf16>
    %cst_40 = arith.constant dense<0.000000e+00> : vector<96x2xf32>
    %147 = tpu.matmul %8, %146, %cst_40 {dimension_numbers = #tpu.dot_dimension_numbers<[1], [0], [0], [1], [0, 0, 1, 1], [], []>} : vector<96x32xbf16>, vector<32x2xbf16>, vector<96x2xf32> -> vector<96x2xf32>
    %c0_41 = arith.constant 0 : index
    %c4 = arith.constant 4 : index
    %148 = vector.load %arg9[%c0_41, %c4] : memref<96x16xf32, #tpu.memory_space<vmem>>, vector<48x2xf32>
    %c48_42 = arith.constant 48 : index
    %c10 = arith.constant 10 : index
    %149 = vector.load %arg9[%c48_42, %c10] : memref<96x16xf32, #tpu.memory_space<vmem>>, vector<48x2xf32>
    %150 = vector.extract_strided_slice %147 {offsets = [0, 0], sizes = [48, 2], strides = [1, 1]} : vector<96x2xf32> to vector<48x2xf32>
    %151 = vector.extract_strided_slice %145 {offsets = [0, 0], sizes = [16, 2], strides = [1, 1]} : vector<32x2xf32> to vector<16x2xf32>
    %152 = vector.extract_strided_slice %148 {offsets = [0, 0], sizes = [16, 2], strides = [1, 1]} : vector<48x2xf32> to vector<16x2xf32>
    %153 = vector.extract_strided_slice %150 {offsets = [0, 0], sizes = [16, 2], strides = [1, 1]} : vector<48x2xf32> to vector<16x2xf32>
    %154 = arith.addf %152, %153 : vector<16x2xf32>
    %155 = arith.negf %154 : vector<16x2xf32>
    %156 = math.exp %155 : vector<16x2xf32>
    %cst_43 = arith.constant 1.000000e+00 : f32
    %157 = vector.broadcast %cst_43 : f32 to vector<16x2xf32>
    %158 = arith.addf %157, %156 : vector<16x2xf32>
    %159 = arith.divf %157, %158 : vector<16x2xf32>
    %160 = vector.extract_strided_slice %148 {offsets = [16, 0], sizes = [16, 2], strides = [1, 1]} : vector<48x2xf32> to vector<16x2xf32>
    %161 = vector.extract_strided_slice %150 {offsets = [16, 0], sizes = [16, 2], strides = [1, 1]} : vector<48x2xf32> to vector<16x2xf32>
    %162 = arith.addf %160, %161 : vector<16x2xf32>
    %163 = arith.negf %162 : vector<16x2xf32>
    %164 = math.exp %163 : vector<16x2xf32>
    %cst_44 = arith.constant 1.000000e+00 : f32
    %165 = vector.broadcast %cst_44 : f32 to vector<16x2xf32>
    %166 = arith.addf %165, %164 : vector<16x2xf32>
    %167 = arith.divf %165, %166 : vector<16x2xf32>
    %168 = vector.extract_strided_slice %148 {offsets = [32, 0], sizes = [16, 2], strides = [1, 1]} : vector<48x2xf32> to vector<16x2xf32>
    %169 = vector.extract_strided_slice %150 {offsets = [32, 0], sizes = [16, 2], strides = [1, 1]} : vector<48x2xf32> to vector<16x2xf32>
    %170 = arith.addf %169, %11 : vector<16x2xf32>
    %171 = arith.mulf %159, %170 : vector<16x2xf32>
    %172 = arith.addf %168, %171 : vector<16x2xf32>
    %173 = math.tanh %172 : vector<16x2xf32>
    %cst_45 = arith.constant 1.000000e+00 : f32
    %174 = vector.broadcast %cst_45 : f32 to vector<16x2xf32>
    %175 = arith.subf %174, %167 : vector<16x2xf32>
    %176 = arith.mulf %175, %173 : vector<16x2xf32>
    %177 = arith.mulf %167, %151 : vector<16x2xf32>
    %178 = arith.addf %176, %177 : vector<16x2xf32>
    %179 = vector.extract_strided_slice %147 {offsets = [48, 0], sizes = [48, 2], strides = [1, 1]} : vector<96x2xf32> to vector<48x2xf32>
    %180 = vector.extract_strided_slice %145 {offsets = [16, 0], sizes = [16, 2], strides = [1, 1]} : vector<32x2xf32> to vector<16x2xf32>
    %181 = vector.extract_strided_slice %149 {offsets = [0, 0], sizes = [16, 2], strides = [1, 1]} : vector<48x2xf32> to vector<16x2xf32>
    %182 = vector.extract_strided_slice %179 {offsets = [0, 0], sizes = [16, 2], strides = [1, 1]} : vector<48x2xf32> to vector<16x2xf32>
    %183 = arith.addf %181, %182 : vector<16x2xf32>
    %184 = arith.negf %183 : vector<16x2xf32>
    %185 = math.exp %184 : vector<16x2xf32>
    %cst_46 = arith.constant 1.000000e+00 : f32
    %186 = vector.broadcast %cst_46 : f32 to vector<16x2xf32>
    %187 = arith.addf %186, %185 : vector<16x2xf32>
    %188 = arith.divf %186, %187 : vector<16x2xf32>
    %189 = vector.extract_strided_slice %149 {offsets = [16, 0], sizes = [16, 2], strides = [1, 1]} : vector<48x2xf32> to vector<16x2xf32>
    %190 = vector.extract_strided_slice %179 {offsets = [16, 0], sizes = [16, 2], strides = [1, 1]} : vector<48x2xf32> to vector<16x2xf32>
    %191 = arith.addf %189, %190 : vector<16x2xf32>
    %192 = arith.negf %191 : vector<16x2xf32>
    %193 = math.exp %192 : vector<16x2xf32>
    %cst_47 = arith.constant 1.000000e+00 : f32
    %194 = vector.broadcast %cst_47 : f32 to vector<16x2xf32>
    %195 = arith.addf %194, %193 : vector<16x2xf32>
    %196 = arith.divf %194, %195 : vector<16x2xf32>
    %197 = vector.extract_strided_slice %149 {offsets = [32, 0], sizes = [16, 2], strides = [1, 1]} : vector<48x2xf32> to vector<16x2xf32>
    %198 = vector.extract_strided_slice %179 {offsets = [32, 0], sizes = [16, 2], strides = [1, 1]} : vector<48x2xf32> to vector<16x2xf32>
    %199 = arith.addf %198, %14 : vector<16x2xf32>
    %200 = arith.mulf %188, %199 : vector<16x2xf32>
    %201 = arith.addf %197, %200 : vector<16x2xf32>
    %202 = math.tanh %201 : vector<16x2xf32>
    %cst_48 = arith.constant 1.000000e+00 : f32
    %203 = vector.broadcast %cst_48 : f32 to vector<16x2xf32>
    %204 = arith.subf %203, %196 : vector<16x2xf32>
    %205 = arith.mulf %204, %202 : vector<16x2xf32>
    %206 = arith.mulf %196, %180 : vector<16x2xf32>
    %207 = arith.addf %205, %206 : vector<16x2xf32>
    %c0_49 = arith.constant 0 : index
    %c4_50 = arith.constant 4 : index
    %208 = vector.load %arg10[%c0_49, %c4_50] : memref<32x16xf32, #tpu.memory_space<vmem>>, vector<16x2xf32>
    tpu.vector_store %arg10[%c0_49, %c4_50], %178 {strides = array<i32>} : memref<32x16xf32, #tpu.memory_space<vmem>>, vector<16x2xf32>,
    %c16_51 = arith.constant 16 : index
    %c10_52 = arith.constant 10 : index
    %209 = vector.load %arg10[%c16_51, %c10_52] : memref<32x16xf32, #tpu.memory_space<vmem>>, vector<16x2xf32>
    tpu.vector_store %arg10[%c16_51, %c10_52], %207 {strides = array<i32>} : memref<32x16xf32, #tpu.memory_space<vmem>>, vector<16x2xf32>,
    %210 = tpu.concatenate %178, %207 in 0 : vector<16x2xf32>, vector<16x2xf32> -> vector<32x2xf32>
    %211 = arith.truncf %210 : vector<32x2xf32> to vector<32x2xbf16>
    %cst_53 = arith.constant dense<0.000000e+00> : vector<96x2xf32>
    %212 = tpu.matmul %8, %211, %cst_53 {dimension_numbers = #tpu.dot_dimension_numbers<[1], [0], [0], [1], [0, 0, 1, 1], [], []>} : vector<96x32xbf16>, vector<32x2xbf16>, vector<96x2xf32> -> vector<96x2xf32>
    %c0_54 = arith.constant 0 : index
    %c6 = arith.constant 6 : index
    %213 = vector.load %arg9[%c0_54, %c6] : memref<96x16xf32, #tpu.memory_space<vmem>>, vector<48x2xf32>
    %c48_55 = arith.constant 48 : index
    %c8 = arith.constant 8 : index
    %214 = vector.load %arg9[%c48_55, %c8] : memref<96x16xf32, #tpu.memory_space<vmem>>, vector<48x2xf32>
    %215 = vector.extract_strided_slice %212 {offsets = [0, 0], sizes = [48, 2], strides = [1, 1]} : vector<96x2xf32> to vector<48x2xf32>
    %216 = vector.extract_strided_slice %210 {offsets = [0, 0], sizes = [16, 2], strides = [1, 1]} : vector<32x2xf32> to vector<16x2xf32>
    %217 = vector.extract_strided_slice %213 {offsets = [0, 0], sizes = [16, 2], strides = [1, 1]} : vector<48x2xf32> to vector<16x2xf32>
    %218 = vector.extract_strided_slice %215 {offsets = [0, 0], sizes = [16, 2], strides = [1, 1]} : vector<48x2xf32> to vector<16x2xf32>
    %219 = arith.addf %217, %218 : vector<16x2xf32>
    %220 = arith.negf %219 : vector<16x2xf32>
    %221 = math.exp %220 : vector<16x2xf32>
    %cst_56 = arith.constant 1.000000e+00 : f32
    %222 = vector.broadcast %cst_56 : f32 to vector<16x2xf32>
    %223 = arith.addf %222, %221 : vector<16x2xf32>
    %224 = arith.divf %222, %223 : vector<16x2xf32>
    %225 = vector.extract_strided_slice %213 {offsets = [16, 0], sizes = [16, 2], strides = [1, 1]} : vector<48x2xf32> to vector<16x2xf32>
    %226 = vector.extract_strided_slice %215 {offsets = [16, 0], sizes = [16, 2], strides = [1, 1]} : vector<48x2xf32> to vector<16x2xf32>
    %227 = arith.addf %225, %226 : vector<16x2xf32>
    %228 = arith.negf %227 : vector<16x2xf32>
    %229 = math.exp %228 : vector<16x2xf32>
    %cst_57 = arith.constant 1.000000e+00 : f32
    %230 = vector.broadcast %cst_57 : f32 to vector<16x2xf32>
    %231 = arith.addf %230, %229 : vector<16x2xf32>
    %232 = arith.divf %230, %231 : vector<16x2xf32>
    %233 = vector.extract_strided_slice %213 {offsets = [32, 0], sizes = [16, 2], strides = [1, 1]} : vector<48x2xf32> to vector<16x2xf32>
    %234 = vector.extract_strided_slice %215 {offsets = [32, 0], sizes = [16, 2], strides = [1, 1]} : vector<48x2xf32> to vector<16x2xf32>
    %235 = arith.addf %234, %11 : vector<16x2xf32>
    %236 = arith.mulf %224, %235 : vector<16x2xf32>
    %237 = arith.addf %233, %236 : vector<16x2xf32>
    %238 = math.tanh %237 : vector<16x2xf32>
    %cst_58 = arith.constant 1.000000e+00 : f32
    %239 = vector.broadcast %cst_58 : f32 to vector<16x2xf32>
    %240 = arith.subf %239, %232 : vector<16x2xf32>
    %241 = arith.mulf %240, %238 : vector<16x2xf32>
    %242 = arith.mulf %232, %216 : vector<16x2xf32>
    %243 = arith.addf %241, %242 : vector<16x2xf32>
    %244 = vector.extract_strided_slice %212 {offsets = [48, 0], sizes = [48, 2], strides = [1, 1]} : vector<96x2xf32> to vector<48x2xf32>
    %245 = vector.extract_strided_slice %210 {offsets = [16, 0], sizes = [16, 2], strides = [1, 1]} : vector<32x2xf32> to vector<16x2xf32>
    %246 = vector.extract_strided_slice %214 {offsets = [0, 0], sizes = [16, 2], strides = [1, 1]} : vector<48x2xf32> to vector<16x2xf32>
    %247 = vector.extract_strided_slice %244 {offsets = [0, 0], sizes = [16, 2], strides = [1, 1]} : vector<48x2xf32> to vector<16x2xf32>
    %248 = arith.addf %246, %247 : vector<16x2xf32>
    %249 = arith.negf %248 : vector<16x2xf32>
    %250 = math.exp %249 : vector<16x2xf32>
    %cst_59 = arith.constant 1.000000e+00 : f32
    %251 = vector.broadcast %cst_59 : f32 to vector<16x2xf32>
    %252 = arith.addf %251, %250 : vector<16x2xf32>
    %253 = arith.divf %251, %252 : vector<16x2xf32>
    %254 = vector.extract_strided_slice %214 {offsets = [16, 0], sizes = [16, 2], strides = [1, 1]} : vector<48x2xf32> to vector<16x2xf32>
    %255 = vector.extract_strided_slice %244 {offsets = [16, 0], sizes = [16, 2], strides = [1, 1]} : vector<48x2xf32> to vector<16x2xf32>
    %256 = arith.addf %254, %255 : vector<16x2xf32>
    %257 = arith.negf %256 : vector<16x2xf32>
    %258 = math.exp %257 : vector<16x2xf32>
    %cst_60 = arith.constant 1.000000e+00 : f32
    %259 = vector.broadcast %cst_60 : f32 to vector<16x2xf32>
    %260 = arith.addf %259, %258 : vector<16x2xf32>
    %261 = arith.divf %259, %260 : vector<16x2xf32>
    %262 = vector.extract_strided_slice %214 {offsets = [32, 0], sizes = [16, 2], strides = [1, 1]} : vector<48x2xf32> to vector<16x2xf32>
    %263 = vector.extract_strided_slice %244 {offsets = [32, 0], sizes = [16, 2], strides = [1, 1]} : vector<48x2xf32> to vector<16x2xf32>
    %264 = arith.addf %263, %14 : vector<16x2xf32>
    %265 = arith.mulf %253, %264 : vector<16x2xf32>
    %266 = arith.addf %262, %265 : vector<16x2xf32>
    %267 = math.tanh %266 : vector<16x2xf32>
    %cst_61 = arith.constant 1.000000e+00 : f32
    %268 = vector.broadcast %cst_61 : f32 to vector<16x2xf32>
    %269 = arith.subf %268, %261 : vector<16x2xf32>
    %270 = arith.mulf %269, %267 : vector<16x2xf32>
    %271 = arith.mulf %261, %245 : vector<16x2xf32>
    %272 = arith.addf %270, %271 : vector<16x2xf32>
    %c0_62 = arith.constant 0 : index
    %c6_63 = arith.constant 6 : index
    %273 = vector.load %arg10[%c0_62, %c6_63] : memref<32x16xf32, #tpu.memory_space<vmem>>, vector<16x2xf32>
    tpu.vector_store %arg10[%c0_62, %c6_63], %243 {strides = array<i32>} : memref<32x16xf32, #tpu.memory_space<vmem>>, vector<16x2xf32>,
    %c16_64 = arith.constant 16 : index
    %c8_65 = arith.constant 8 : index
    %274 = vector.load %arg10[%c16_64, %c8_65] : memref<32x16xf32, #tpu.memory_space<vmem>>, vector<16x2xf32>
    tpu.vector_store %arg10[%c16_64, %c8_65], %272 {strides = array<i32>} : memref<32x16xf32, #tpu.memory_space<vmem>>, vector<16x2xf32>,
    %275 = tpu.concatenate %243, %272 in 0 : vector<16x2xf32>, vector<16x2xf32> -> vector<32x2xf32>
    %276 = arith.truncf %275 : vector<32x2xf32> to vector<32x2xbf16>
    %cst_66 = arith.constant dense<0.000000e+00> : vector<96x2xf32>
    %277 = tpu.matmul %8, %276, %cst_66 {dimension_numbers = #tpu.dot_dimension_numbers<[1], [0], [0], [1], [0, 0, 1, 1], [], []>} : vector<96x32xbf16>, vector<32x2xbf16>, vector<96x2xf32> -> vector<96x2xf32>
    %c0_67 = arith.constant 0 : index
    %c8_68 = arith.constant 8 : index
    %278 = vector.load %arg9[%c0_67, %c8_68] : memref<96x16xf32, #tpu.memory_space<vmem>>, vector<48x2xf32>
    %c48_69 = arith.constant 48 : index
    %c6_70 = arith.constant 6 : index
    %279 = vector.load %arg9[%c48_69, %c6_70] : memref<96x16xf32, #tpu.memory_space<vmem>>, vector<48x2xf32>
    %280 = vector.extract_strided_slice %277 {offsets = [0, 0], sizes = [48, 2], strides = [1, 1]} : vector<96x2xf32> to vector<48x2xf32>
    %281 = vector.extract_strided_slice %275 {offsets = [0, 0], sizes = [16, 2], strides = [1, 1]} : vector<32x2xf32> to vector<16x2xf32>
    %282 = vector.extract_strided_slice %278 {offsets = [0, 0], sizes = [16, 2], strides = [1, 1]} : vector<48x2xf32> to vector<16x2xf32>
    %283 = vector.extract_strided_slice %280 {offsets = [0, 0], sizes = [16, 2], strides = [1, 1]} : vector<48x2xf32> to vector<16x2xf32>
    %284 = arith.addf %282, %283 : vector<16x2xf32>
    %285 = arith.negf %284 : vector<16x2xf32>
    %286 = math.exp %285 : vector<16x2xf32>
    %cst_71 = arith.constant 1.000000e+00 : f32
    %287 = vector.broadcast %cst_71 : f32 to vector<16x2xf32>
    %288 = arith.addf %287, %286 : vector<16x2xf32>
    %289 = arith.divf %287, %288 : vector<16x2xf32>
    %290 = vector.extract_strided_slice %278 {offsets = [16, 0], sizes = [16, 2], strides = [1, 1]} : vector<48x2xf32> to vector<16x2xf32>
    %291 = vector.extract_strided_slice %280 {offsets = [16, 0], sizes = [16, 2], strides = [1, 1]} : vector<48x2xf32> to vector<16x2xf32>
    %292 = arith.addf %290, %291 : vector<16x2xf32>
    %293 = arith.negf %292 : vector<16x2xf32>
    %294 = math.exp %293 : vector<16x2xf32>
    %cst_72 = arith.constant 1.000000e+00 : f32
    %295 = vector.broadcast %cst_72 : f32 to vector<16x2xf32>
    %296 = arith.addf %295, %294 : vector<16x2xf32>
    %297 = arith.divf %295, %296 : vector<16x2xf32>
    %298 = vector.extract_strided_slice %278 {offsets = [32, 0], sizes = [16, 2], strides = [1, 1]} : vector<48x2xf32> to vector<16x2xf32>
    %299 = vector.extract_strided_slice %280 {offsets = [32, 0], sizes = [16, 2], strides = [1, 1]} : vector<48x2xf32> to vector<16x2xf32>
    %300 = arith.addf %299, %11 : vector<16x2xf32>
    %301 = arith.mulf %289, %300 : vector<16x2xf32>
    %302 = arith.addf %298, %301 : vector<16x2xf32>
    %303 = math.tanh %302 : vector<16x2xf32>
    %cst_73 = arith.constant 1.000000e+00 : f32
    %304 = vector.broadcast %cst_73 : f32 to vector<16x2xf32>
    %305 = arith.subf %304, %297 : vector<16x2xf32>
    %306 = arith.mulf %305, %303 : vector<16x2xf32>
    %307 = arith.mulf %297, %281 : vector<16x2xf32>
    %308 = arith.addf %306, %307 : vector<16x2xf32>
    %309 = vector.extract_strided_slice %277 {offsets = [48, 0], sizes = [48, 2], strides = [1, 1]} : vector<96x2xf32> to vector<48x2xf32>
    %310 = vector.extract_strided_slice %275 {offsets = [16, 0], sizes = [16, 2], strides = [1, 1]} : vector<32x2xf32> to vector<16x2xf32>
    %311 = vector.extract_strided_slice %279 {offsets = [0, 0], sizes = [16, 2], strides = [1, 1]} : vector<48x2xf32> to vector<16x2xf32>
    %312 = vector.extract_strided_slice %309 {offsets = [0, 0], sizes = [16, 2], strides = [1, 1]} : vector<48x2xf32> to vector<16x2xf32>
    %313 = arith.addf %311, %312 : vector<16x2xf32>
    %314 = arith.negf %313 : vector<16x2xf32>
    %315 = math.exp %314 : vector<16x2xf32>
    %cst_74 = arith.constant 1.000000e+00 : f32
    %316 = vector.broadcast %cst_74 : f32 to vector<16x2xf32>
    %317 = arith.addf %316, %315 : vector<16x2xf32>
    %318 = arith.divf %316, %317 : vector<16x2xf32>
    %319 = vector.extract_strided_slice %279 {offsets = [16, 0], sizes = [16, 2], strides = [1, 1]} : vector<48x2xf32> to vector<16x2xf32>
    %320 = vector.extract_strided_slice %309 {offsets = [16, 0], sizes = [16, 2], strides = [1, 1]} : vector<48x2xf32> to vector<16x2xf32>
    %321 = arith.addf %319, %320 : vector<16x2xf32>
    %322 = arith.negf %321 : vector<16x2xf32>
    %323 = math.exp %322 : vector<16x2xf32>
    %cst_75 = arith.constant 1.000000e+00 : f32
    %324 = vector.broadcast %cst_75 : f32 to vector<16x2xf32>
    %325 = arith.addf %324, %323 : vector<16x2xf32>
    %326 = arith.divf %324, %325 : vector<16x2xf32>
    %327 = vector.extract_strided_slice %279 {offsets = [32, 0], sizes = [16, 2], strides = [1, 1]} : vector<48x2xf32> to vector<16x2xf32>
    %328 = vector.extract_strided_slice %309 {offsets = [32, 0], sizes = [16, 2], strides = [1, 1]} : vector<48x2xf32> to vector<16x2xf32>
    %329 = arith.addf %328, %14 : vector<16x2xf32>
    %330 = arith.mulf %318, %329 : vector<16x2xf32>
    %331 = arith.addf %327, %330 : vector<16x2xf32>
    %332 = math.tanh %331 : vector<16x2xf32>
    %cst_76 = arith.constant 1.000000e+00 : f32
    %333 = vector.broadcast %cst_76 : f32 to vector<16x2xf32>
    %334 = arith.subf %333, %326 : vector<16x2xf32>
    %335 = arith.mulf %334, %332 : vector<16x2xf32>
    %336 = arith.mulf %326, %310 : vector<16x2xf32>
    %337 = arith.addf %335, %336 : vector<16x2xf32>
    %c0_77 = arith.constant 0 : index
    %c8_78 = arith.constant 8 : index
    %338 = vector.load %arg10[%c0_77, %c8_78] : memref<32x16xf32, #tpu.memory_space<vmem>>, vector<16x2xf32>
    tpu.vector_store %arg10[%c0_77, %c8_78], %308 {strides = array<i32>} : memref<32x16xf32, #tpu.memory_space<vmem>>, vector<16x2xf32>,
    %c16_79 = arith.constant 16 : index
    %c6_80 = arith.constant 6 : index
    %339 = vector.load %arg10[%c16_79, %c6_80] : memref<32x16xf32, #tpu.memory_space<vmem>>, vector<16x2xf32>
    tpu.vector_store %arg10[%c16_79, %c6_80], %337 {strides = array<i32>} : memref<32x16xf32, #tpu.memory_space<vmem>>, vector<16x2xf32>,
    %340 = tpu.concatenate %308, %337 in 0 : vector<16x2xf32>, vector<16x2xf32> -> vector<32x2xf32>
    %341 = arith.truncf %340 : vector<32x2xf32> to vector<32x2xbf16>
    %cst_81 = arith.constant dense<0.000000e+00> : vector<96x2xf32>
    %342 = tpu.matmul %8, %341, %cst_81 {dimension_numbers = #tpu.dot_dimension_numbers<[1], [0], [0], [1], [0, 0, 1, 1], [], []>} : vector<96x32xbf16>, vector<32x2xbf16>, vector<96x2xf32> -> vector<96x2xf32>
    %c0_82 = arith.constant 0 : index
    %c10_83 = arith.constant 10 : index
    %343 = vector.load %arg9[%c0_82, %c10_83] : memref<96x16xf32, #tpu.memory_space<vmem>>, vector<48x2xf32>
    %c48_84 = arith.constant 48 : index
    %c4_85 = arith.constant 4 : index
    %344 = vector.load %arg9[%c48_84, %c4_85] : memref<96x16xf32, #tpu.memory_space<vmem>>, vector<48x2xf32>
    %345 = vector.extract_strided_slice %342 {offsets = [0, 0], sizes = [48, 2], strides = [1, 1]} : vector<96x2xf32> to vector<48x2xf32>
    %346 = vector.extract_strided_slice %340 {offsets = [0, 0], sizes = [16, 2], strides = [1, 1]} : vector<32x2xf32> to vector<16x2xf32>
    %347 = vector.extract_strided_slice %343 {offsets = [0, 0], sizes = [16, 2], strides = [1, 1]} : vector<48x2xf32> to vector<16x2xf32>
    %348 = vector.extract_strided_slice %345 {offsets = [0, 0], sizes = [16, 2], strides = [1, 1]} : vector<48x2xf32> to vector<16x2xf32>
    %349 = arith.addf %347, %348 : vector<16x2xf32>
    %350 = arith.negf %349 : vector<16x2xf32>
    %351 = math.exp %350 : vector<16x2xf32>
    %cst_86 = arith.constant 1.000000e+00 : f32
    %352 = vector.broadcast %cst_86 : f32 to vector<16x2xf32>
    %353 = arith.addf %352, %351 : vector<16x2xf32>
    %354 = arith.divf %352, %353 : vector<16x2xf32>
    %355 = vector.extract_strided_slice %343 {offsets = [16, 0], sizes = [16, 2], strides = [1, 1]} : vector<48x2xf32> to vector<16x2xf32>
    %356 = vector.extract_strided_slice %345 {offsets = [16, 0], sizes = [16, 2], strides = [1, 1]} : vector<48x2xf32> to vector<16x2xf32>
    %357 = arith.addf %355, %356 : vector<16x2xf32>
    %358 = arith.negf %357 : vector<16x2xf32>
    %359 = math.exp %358 : vector<16x2xf32>
    %cst_87 = arith.constant 1.000000e+00 : f32
    %360 = vector.broadcast %cst_87 : f32 to vector<16x2xf32>
    %361 = arith.addf %360, %359 : vector<16x2xf32>
    %362 = arith.divf %360, %361 : vector<16x2xf32>
    %363 = vector.extract_strided_slice %343 {offsets = [32, 0], sizes = [16, 2], strides = [1, 1]} : vector<48x2xf32> to vector<16x2xf32>
    %364 = vector.extract_strided_slice %345 {offsets = [32, 0], sizes = [16, 2], strides = [1, 1]} : vector<48x2xf32> to vector<16x2xf32>
    %365 = arith.addf %364, %11 : vector<16x2xf32>
    %366 = arith.mulf %354, %365 : vector<16x2xf32>
    %367 = arith.addf %363, %366 : vector<16x2xf32>
    %368 = math.tanh %367 : vector<16x2xf32>
    %cst_88 = arith.constant 1.000000e+00 : f32
    %369 = vector.broadcast %cst_88 : f32 to vector<16x2xf32>
    %370 = arith.subf %369, %362 : vector<16x2xf32>
    %371 = arith.mulf %370, %368 : vector<16x2xf32>
    %372 = arith.mulf %362, %346 : vector<16x2xf32>
    %373 = arith.addf %371, %372 : vector<16x2xf32>
    %374 = vector.extract_strided_slice %342 {offsets = [48, 0], sizes = [48, 2], strides = [1, 1]} : vector<96x2xf32> to vector<48x2xf32>
    %375 = vector.extract_strided_slice %340 {offsets = [16, 0], sizes = [16, 2], strides = [1, 1]} : vector<32x2xf32> to vector<16x2xf32>
    %376 = vector.extract_strided_slice %344 {offsets = [0, 0], sizes = [16, 2], strides = [1, 1]} : vector<48x2xf32> to vector<16x2xf32>
    %377 = vector.extract_strided_slice %374 {offsets = [0, 0], sizes = [16, 2], strides = [1, 1]} : vector<48x2xf32> to vector<16x2xf32>
    %378 = arith.addf %376, %377 : vector<16x2xf32>
    %379 = arith.negf %378 : vector<16x2xf32>
    %380 = math.exp %379 : vector<16x2xf32>
    %cst_89 = arith.constant 1.000000e+00 : f32
    %381 = vector.broadcast %cst_89 : f32 to vector<16x2xf32>
    %382 = arith.addf %381, %380 : vector<16x2xf32>
    %383 = arith.divf %381, %382 : vector<16x2xf32>
    %384 = vector.extract_strided_slice %344 {offsets = [16, 0], sizes = [16, 2], strides = [1, 1]} : vector<48x2xf32> to vector<16x2xf32>
    %385 = vector.extract_strided_slice %374 {offsets = [16, 0], sizes = [16, 2], strides = [1, 1]} : vector<48x2xf32> to vector<16x2xf32>
    %386 = arith.addf %384, %385 : vector<16x2xf32>
    %387 = arith.negf %386 : vector<16x2xf32>
    %388 = math.exp %387 : vector<16x2xf32>
    %cst_90 = arith.constant 1.000000e+00 : f32
    %389 = vector.broadcast %cst_90 : f32 to vector<16x2xf32>
    %390 = arith.addf %389, %388 : vector<16x2xf32>
    %391 = arith.divf %389, %390 : vector<16x2xf32>
    %392 = vector.extract_strided_slice %344 {offsets = [32, 0], sizes = [16, 2], strides = [1, 1]} : vector<48x2xf32> to vector<16x2xf32>
    %393 = vector.extract_strided_slice %374 {offsets = [32, 0], sizes = [16, 2], strides = [1, 1]} : vector<48x2xf32> to vector<16x2xf32>
    %394 = arith.addf %393, %14 : vector<16x2xf32>
    %395 = arith.mulf %383, %394 : vector<16x2xf32>
    %396 = arith.addf %392, %395 : vector<16x2xf32>
    %397 = math.tanh %396 : vector<16x2xf32>
    %cst_91 = arith.constant 1.000000e+00 : f32
    %398 = vector.broadcast %cst_91 : f32 to vector<16x2xf32>
    %399 = arith.subf %398, %391 : vector<16x2xf32>
    %400 = arith.mulf %399, %397 : vector<16x2xf32>
    %401 = arith.mulf %391, %375 : vector<16x2xf32>
    %402 = arith.addf %400, %401 : vector<16x2xf32>
    %c0_92 = arith.constant 0 : index
    %c10_93 = arith.constant 10 : index
    %403 = vector.load %arg10[%c0_92, %c10_93] : memref<32x16xf32, #tpu.memory_space<vmem>>, vector<16x2xf32>
    tpu.vector_store %arg10[%c0_92, %c10_93], %373 {strides = array<i32>} : memref<32x16xf32, #tpu.memory_space<vmem>>, vector<16x2xf32>,
    %c16_94 = arith.constant 16 : index
    %c4_95 = arith.constant 4 : index
    %404 = vector.load %arg10[%c16_94, %c4_95] : memref<32x16xf32, #tpu.memory_space<vmem>>, vector<16x2xf32>
    tpu.vector_store %arg10[%c16_94, %c4_95], %402 {strides = array<i32>} : memref<32x16xf32, #tpu.memory_space<vmem>>, vector<16x2xf32>,
    %405 = tpu.concatenate %373, %402 in 0 : vector<16x2xf32>, vector<16x2xf32> -> vector<32x2xf32>
    %406 = arith.truncf %405 : vector<32x2xf32> to vector<32x2xbf16>
    %cst_96 = arith.constant dense<0.000000e+00> : vector<96x2xf32>
    %407 = tpu.matmul %8, %406, %cst_96 {dimension_numbers = #tpu.dot_dimension_numbers<[1], [0], [0], [1], [0, 0, 1, 1], [], []>} : vector<96x32xbf16>, vector<32x2xbf16>, vector<96x2xf32> -> vector<96x2xf32>
    %c0_97 = arith.constant 0 : index
    %c12_98 = arith.constant 12 : index
    %408 = vector.load %arg9[%c0_97, %c12_98] : memref<96x16xf32, #tpu.memory_space<vmem>>, vector<48x2xf32>
    %c48_99 = arith.constant 48 : index
    %c2_100 = arith.constant 2 : index
    %409 = vector.load %arg9[%c48_99, %c2_100] : memref<96x16xf32, #tpu.memory_space<vmem>>, vector<48x2xf32>
    %410 = vector.extract_strided_slice %407 {offsets = [0, 0], sizes = [48, 2], strides = [1, 1]} : vector<96x2xf32> to vector<48x2xf32>
    %411 = vector.extract_strided_slice %405 {offsets = [0, 0], sizes = [16, 2], strides = [1, 1]} : vector<32x2xf32> to vector<16x2xf32>
    %412 = vector.extract_strided_slice %408 {offsets = [0, 0], sizes = [16, 2], strides = [1, 1]} : vector<48x2xf32> to vector<16x2xf32>
    %413 = vector.extract_strided_slice %410 {offsets = [0, 0], sizes = [16, 2], strides = [1, 1]} : vector<48x2xf32> to vector<16x2xf32>
    %414 = arith.addf %412, %413 : vector<16x2xf32>
    %415 = arith.negf %414 : vector<16x2xf32>
    %416 = math.exp %415 : vector<16x2xf32>
    %cst_101 = arith.constant 1.000000e+00 : f32
    %417 = vector.broadcast %cst_101 : f32 to vector<16x2xf32>
    %418 = arith.addf %417, %416 : vector<16x2xf32>
    %419 = arith.divf %417, %418 : vector<16x2xf32>
    %420 = vector.extract_strided_slice %408 {offsets = [16, 0], sizes = [16, 2], strides = [1, 1]} : vector<48x2xf32> to vector<16x2xf32>
    %421 = vector.extract_strided_slice %410 {offsets = [16, 0], sizes = [16, 2], strides = [1, 1]} : vector<48x2xf32> to vector<16x2xf32>
    %422 = arith.addf %420, %421 : vector<16x2xf32>
    %423 = arith.negf %422 : vector<16x2xf32>
    %424 = math.exp %423 : vector<16x2xf32>
    %cst_102 = arith.constant 1.000000e+00 : f32
    %425 = vector.broadcast %cst_102 : f32 to vector<16x2xf32>
    %426 = arith.addf %425, %424 : vector<16x2xf32>
    %427 = arith.divf %425, %426 : vector<16x2xf32>
    %428 = vector.extract_strided_slice %408 {offsets = [32, 0], sizes = [16, 2], strides = [1, 1]} : vector<48x2xf32> to vector<16x2xf32>
    %429 = vector.extract_strided_slice %410 {offsets = [32, 0], sizes = [16, 2], strides = [1, 1]} : vector<48x2xf32> to vector<16x2xf32>
    %430 = arith.addf %429, %11 : vector<16x2xf32>
    %431 = arith.mulf %419, %430 : vector<16x2xf32>
    %432 = arith.addf %428, %431 : vector<16x2xf32>
    %433 = math.tanh %432 : vector<16x2xf32>
    %cst_103 = arith.constant 1.000000e+00 : f32
    %434 = vector.broadcast %cst_103 : f32 to vector<16x2xf32>
    %435 = arith.subf %434, %427 : vector<16x2xf32>
    %436 = arith.mulf %435, %433 : vector<16x2xf32>
    %437 = arith.mulf %427, %411 : vector<16x2xf32>
    %438 = arith.addf %436, %437 : vector<16x2xf32>
    %439 = vector.extract_strided_slice %407 {offsets = [48, 0], sizes = [48, 2], strides = [1, 1]} : vector<96x2xf32> to vector<48x2xf32>
    %440 = vector.extract_strided_slice %405 {offsets = [16, 0], sizes = [16, 2], strides = [1, 1]} : vector<32x2xf32> to vector<16x2xf32>
    %441 = vector.extract_strided_slice %409 {offsets = [0, 0], sizes = [16, 2], strides = [1, 1]} : vector<48x2xf32> to vector<16x2xf32>
    %442 = vector.extract_strided_slice %439 {offsets = [0, 0], sizes = [16, 2], strides = [1, 1]} : vector<48x2xf32> to vector<16x2xf32>
    %443 = arith.addf %441, %442 : vector<16x2xf32>
    %444 = arith.negf %443 : vector<16x2xf32>
    %445 = math.exp %444 : vector<16x2xf32>
    %cst_104 = arith.constant 1.000000e+00 : f32
    %446 = vector.broadcast %cst_104 : f32 to vector<16x2xf32>
    %447 = arith.addf %446, %445 : vector<16x2xf32>
    %448 = arith.divf %446, %447 : vector<16x2xf32>
    %449 = vector.extract_strided_slice %409 {offsets = [16, 0], sizes = [16, 2], strides = [1, 1]} : vector<48x2xf32> to vector<16x2xf32>
    %450 = vector.extract_strided_slice %439 {offsets = [16, 0], sizes = [16, 2], strides = [1, 1]} : vector<48x2xf32> to vector<16x2xf32>
    %451 = arith.addf %449, %450 : vector<16x2xf32>
    %452 = arith.negf %451 : vector<16x2xf32>
    %453 = math.exp %452 : vector<16x2xf32>
    %cst_105 = arith.constant 1.000000e+00 : f32
    %454 = vector.broadcast %cst_105 : f32 to vector<16x2xf32>
    %455 = arith.addf %454, %453 : vector<16x2xf32>
    %456 = arith.divf %454, %455 : vector<16x2xf32>
    %457 = vector.extract_strided_slice %409 {offsets = [32, 0], sizes = [16, 2], strides = [1, 1]} : vector<48x2xf32> to vector<16x2xf32>
    %458 = vector.extract_strided_slice %439 {offsets = [32, 0], sizes = [16, 2], strides = [1, 1]} : vector<48x2xf32> to vector<16x2xf32>
    %459 = arith.addf %458, %14 : vector<16x2xf32>
    %460 = arith.mulf %448, %459 : vector<16x2xf32>
    %461 = arith.addf %457, %460 : vector<16x2xf32>
    %462 = math.tanh %461 : vector<16x2xf32>
    %cst_106 = arith.constant 1.000000e+00 : f32
    %463 = vector.broadcast %cst_106 : f32 to vector<16x2xf32>
    %464 = arith.subf %463, %456 : vector<16x2xf32>
    %465 = arith.mulf %464, %462 : vector<16x2xf32>
    %466 = arith.mulf %456, %440 : vector<16x2xf32>
    %467 = arith.addf %465, %466 : vector<16x2xf32>
    %c0_107 = arith.constant 0 : index
    %c12_108 = arith.constant 12 : index
    %468 = vector.load %arg10[%c0_107, %c12_108] : memref<32x16xf32, #tpu.memory_space<vmem>>, vector<16x2xf32>
    tpu.vector_store %arg10[%c0_107, %c12_108], %438 {strides = array<i32>} : memref<32x16xf32, #tpu.memory_space<vmem>>, vector<16x2xf32>,
    %c16_109 = arith.constant 16 : index
    %c2_110 = arith.constant 2 : index
    %469 = vector.load %arg10[%c16_109, %c2_110] : memref<32x16xf32, #tpu.memory_space<vmem>>, vector<16x2xf32>
    tpu.vector_store %arg10[%c16_109, %c2_110], %467 {strides = array<i32>} : memref<32x16xf32, #tpu.memory_space<vmem>>, vector<16x2xf32>,
    %470 = tpu.concatenate %438, %467 in 0 : vector<16x2xf32>, vector<16x2xf32> -> vector<32x2xf32>
    %471 = arith.truncf %470 : vector<32x2xf32> to vector<32x2xbf16>
    %cst_111 = arith.constant dense<0.000000e+00> : vector<96x2xf32>
    %472 = tpu.matmul %8, %471, %cst_111 {dimension_numbers = #tpu.dot_dimension_numbers<[1], [0], [0], [1], [0, 0, 1, 1], [], []>} : vector<96x32xbf16>, vector<32x2xbf16>, vector<96x2xf32> -> vector<96x2xf32>
    %c0_112 = arith.constant 0 : index
    %c14_113 = arith.constant 14 : index
    %473 = vector.load %arg9[%c0_112, %c14_113] : memref<96x16xf32, #tpu.memory_space<vmem>>, vector<48x2xf32>
    %c48_114 = arith.constant 48 : index
    %c0_115 = arith.constant 0 : index
    %474 = vector.load %arg9[%c48_114, %c0_115] : memref<96x16xf32, #tpu.memory_space<vmem>>, vector<48x2xf32>
    %475 = vector.extract_strided_slice %472 {offsets = [0, 0], sizes = [48, 2], strides = [1, 1]} : vector<96x2xf32> to vector<48x2xf32>
    %476 = vector.extract_strided_slice %470 {offsets = [0, 0], sizes = [16, 2], strides = [1, 1]} : vector<32x2xf32> to vector<16x2xf32>
    %477 = vector.extract_strided_slice %473 {offsets = [0, 0], sizes = [16, 2], strides = [1, 1]} : vector<48x2xf32> to vector<16x2xf32>
    %478 = vector.extract_strided_slice %475 {offsets = [0, 0], sizes = [16, 2], strides = [1, 1]} : vector<48x2xf32> to vector<16x2xf32>
    %479 = arith.addf %477, %478 : vector<16x2xf32>
    %480 = arith.negf %479 : vector<16x2xf32>
    %481 = math.exp %480 : vector<16x2xf32>
    %cst_116 = arith.constant 1.000000e+00 : f32
    %482 = vector.broadcast %cst_116 : f32 to vector<16x2xf32>
    %483 = arith.addf %482, %481 : vector<16x2xf32>
    %484 = arith.divf %482, %483 : vector<16x2xf32>
    %485 = vector.extract_strided_slice %473 {offsets = [16, 0], sizes = [16, 2], strides = [1, 1]} : vector<48x2xf32> to vector<16x2xf32>
    %486 = vector.extract_strided_slice %475 {offsets = [16, 0], sizes = [16, 2], strides = [1, 1]} : vector<48x2xf32> to vector<16x2xf32>
    %487 = arith.addf %485, %486 : vector<16x2xf32>
    %488 = arith.negf %487 : vector<16x2xf32>
    %489 = math.exp %488 : vector<16x2xf32>
    %cst_117 = arith.constant 1.000000e+00 : f32
    %490 = vector.broadcast %cst_117 : f32 to vector<16x2xf32>
    %491 = arith.addf %490, %489 : vector<16x2xf32>
    %492 = arith.divf %490, %491 : vector<16x2xf32>
    %493 = vector.extract_strided_slice %473 {offsets = [32, 0], sizes = [16, 2], strides = [1, 1]} : vector<48x2xf32> to vector<16x2xf32>
    %494 = vector.extract_strided_slice %475 {offsets = [32, 0], sizes = [16, 2], strides = [1, 1]} : vector<48x2xf32> to vector<16x2xf32>
    %495 = arith.addf %494, %11 : vector<16x2xf32>
    %496 = arith.mulf %484, %495 : vector<16x2xf32>
    %497 = arith.addf %493, %496 : vector<16x2xf32>
    %498 = math.tanh %497 : vector<16x2xf32>
    %cst_118 = arith.constant 1.000000e+00 : f32
    %499 = vector.broadcast %cst_118 : f32 to vector<16x2xf32>
    %500 = arith.subf %499, %492 : vector<16x2xf32>
    %501 = arith.mulf %500, %498 : vector<16x2xf32>
    %502 = arith.mulf %492, %476 : vector<16x2xf32>
    %503 = arith.addf %501, %502 : vector<16x2xf32>
    %504 = vector.extract_strided_slice %472 {offsets = [48, 0], sizes = [48, 2], strides = [1, 1]} : vector<96x2xf32> to vector<48x2xf32>
    %505 = vector.extract_strided_slice %470 {offsets = [16, 0], sizes = [16, 2], strides = [1, 1]} : vector<32x2xf32> to vector<16x2xf32>
    %506 = vector.extract_strided_slice %474 {offsets = [0, 0], sizes = [16, 2], strides = [1, 1]} : vector<48x2xf32> to vector<16x2xf32>
    %507 = vector.extract_strided_slice %504 {offsets = [0, 0], sizes = [16, 2], strides = [1, 1]} : vector<48x2xf32> to vector<16x2xf32>
    %508 = arith.addf %506, %507 : vector<16x2xf32>
    %509 = arith.negf %508 : vector<16x2xf32>
    %510 = math.exp %509 : vector<16x2xf32>
    %cst_119 = arith.constant 1.000000e+00 : f32
    %511 = vector.broadcast %cst_119 : f32 to vector<16x2xf32>
    %512 = arith.addf %511, %510 : vector<16x2xf32>
    %513 = arith.divf %511, %512 : vector<16x2xf32>
    %514 = vector.extract_strided_slice %474 {offsets = [16, 0], sizes = [16, 2], strides = [1, 1]} : vector<48x2xf32> to vector<16x2xf32>
    %515 = vector.extract_strided_slice %504 {offsets = [16, 0], sizes = [16, 2], strides = [1, 1]} : vector<48x2xf32> to vector<16x2xf32>
    %516 = arith.addf %514, %515 : vector<16x2xf32>
    %517 = arith.negf %516 : vector<16x2xf32>
    %518 = math.exp %517 : vector<16x2xf32>
    %cst_120 = arith.constant 1.000000e+00 : f32
    %519 = vector.broadcast %cst_120 : f32 to vector<16x2xf32>
    %520 = arith.addf %519, %518 : vector<16x2xf32>
    %521 = arith.divf %519, %520 : vector<16x2xf32>
    %522 = vector.extract_strided_slice %474 {offsets = [32, 0], sizes = [16, 2], strides = [1, 1]} : vector<48x2xf32> to vector<16x2xf32>
    %523 = vector.extract_strided_slice %504 {offsets = [32, 0], sizes = [16, 2], strides = [1, 1]} : vector<48x2xf32> to vector<16x2xf32>
    %524 = arith.addf %523, %14 : vector<16x2xf32>
    %525 = arith.mulf %513, %524 : vector<16x2xf32>
    %526 = arith.addf %522, %525 : vector<16x2xf32>
    %527 = math.tanh %526 : vector<16x2xf32>
    %cst_121 = arith.constant 1.000000e+00 : f32
    %528 = vector.broadcast %cst_121 : f32 to vector<16x2xf32>
    %529 = arith.subf %528, %521 : vector<16x2xf32>
    %530 = arith.mulf %529, %527 : vector<16x2xf32>
    %531 = arith.mulf %521, %505 : vector<16x2xf32>
    %532 = arith.addf %530, %531 : vector<16x2xf32>
    %c0_122 = arith.constant 0 : index
    %c14_123 = arith.constant 14 : index
    %533 = vector.load %arg10[%c0_122, %c14_123] : memref<32x16xf32, #tpu.memory_space<vmem>>, vector<16x2xf32>
    tpu.vector_store %arg10[%c0_122, %c14_123], %503 {strides = array<i32>} : memref<32x16xf32, #tpu.memory_space<vmem>>, vector<16x2xf32>,
    %c16_124 = arith.constant 16 : index
    %c0_125 = arith.constant 0 : index
    %534 = vector.load %arg10[%c16_124, %c0_125] : memref<32x16xf32, #tpu.memory_space<vmem>>, vector<16x2xf32>
    tpu.vector_store %arg10[%c16_124, %c0_125], %532 {strides = array<i32>} : memref<32x16xf32, #tpu.memory_space<vmem>>, vector<16x2xf32>,
    %c0_126 = arith.constant 0 : index
    %c0_127 = arith.constant 0 : index
    %535 = vector.load %arg6[%c0_126, %c0_127] : memref<2x32xf32, #tpu.memory_space<vmem>>, vector<2x32xf32>
    %c0_128 = arith.constant 0 : index
    %c0_129 = arith.constant 0 : index
    %536 = vector.load %arg10[%c0_128, %c0_129] : memref<32x16xf32, #tpu.memory_space<vmem>>, vector<32x16xf32>
    %cst_130 = arith.constant dense<0.000000e+00> : vector<2x16xf32>
    %537 = tpu.matmul %535, %536, %cst_130 {dimension_numbers = #tpu.dot_dimension_numbers<[1], [0], [0], [1], [0, 0, 1, 1], [], []>} : vector<2x32xf32>, vector<32x16xf32>, vector<2x16xf32> -> vector<2x16xf32>
    %c0_131 = arith.constant 0 : index
    %c0_132 = arith.constant 0 : index
    %538 = vector.load %arg7[%c0_131, %c0_132] : memref<2x16xf32, #tpu.memory_space<vmem>>, vector<2x16xf32>
    %539 = arith.addf %537, %538 : vector<2x16xf32>
    %c0_133 = arith.constant 0 : index
    %c0_134 = arith.constant 0 : index
    %540 = vector.load %arg8[%c0_133, %c0_134] : memref<2x16xf32, #tpu.memory_space<vmem>>, vector<2x16xf32>
    tpu.vector_store %arg8[%c0_133, %c0_134], %539 {strides = array<i32>} : memref<2x16xf32, #tpu.memory_space<vmem>>, vector<2x16xf32>,
    return
  }
}

</mosaic_0001>

<bundles_post_ra>
// kernel: introspection_generator_forward.1
= control target key start
LH: loop header
LB: loop body
LE: loop exit
PB: predicated region body
PF: predicated region fallthrough
CT: control target
= control target key end

     0   :  { %v3229_v1 = vmov 0   ;;  %vm160_vm0 = vcmask 261120   ;;  %vm260_vm1 = vcmask 130048   ;;  %s3230_s22 = smov 14   ;;  %vm579_vm2 = vcmask 130160   ;;  %s3233_s23 = smov 2   ;;  %s3994_s0 = inlined_call_operand.vmem [shape: bf16[32,16], index: 0, kind: input, shape index: {}]   ;;  %s3995_s1 = inlined_call_operand.vmem [shape: bf16[96,32], index: 1, kind: input, shape index: {}]   ;;  %s3996_s5 = inlined_call_operand.vmem [shape: f32[32,2], index: 5, kind: input, shape index: {}]   ;;  %s3997_s3 = inlined_call_operand.vmem [shape: bf16[96,32], index: 3, kind: input, shape index: {}]   ;;  %s3998_s4 = inlined_call_operand.vmem [shape: f32[32,1], index: 4, kind: input, shape index: {}]   ;;  %s3999_s2 = inlined_call_operand.vmem [shape: f32[96,1], index: 2, kind: input, shape index: {}]   ;;  %s4000_s6 = inlined_call_operand.vmem [shape: f32[2,32], index: 6, kind: input, shape index: {}]   ;;  %s4001_s7 = inlined_call_operand.vmem [shape: f32[2,16], index: 7, kind: input, shape index: {}]   ;;  %s4002_s8 = inlined_call_operand.vmem [shape: f32[2,16], index: 8, kind: output, shape index: {}]  }
   0x1   :  { %v2878_v0 = vld [vmem:[%s3994_s0 + $0x8] sm:$0xff]   ;;  %2876 = vset.pattern.permute.xlu0 %v3229_v1  ;;  %2877 = vset.pattern.permute.xlu1 %v3229_v1  ;;  %v2879_v2 = vld [vmem:[%s3994_s0] sm:$0xff]   ;;  %v3304_v4 = vld [vmem:[%s3996_s5 + $0x10] sm:$0xff]  ;;  %vm576_vm3 = vcmask 15360   ;;  %vm838_vm4 = vcmask 113760   ;;  %s3234_s24 = smov 118  }
   0x2   :  { %2855 = vmatprep.subr.bf16.mxu1 %v2878_v0  ;;  %v2880_v3 = vld [vmem:[%s3995_s1 + $0x20] sm:$0xff]   ;;  %2700 = vmatprep.subr.bf16.mxu0 %v2878_v0  ;;  %v3309_v5 = vld [vmem:[%s3996_s5 + $0x18] sm:$0xff]  ;;  %v3321_v8 = vld [vmem:[%s3996_s5 + $0x8] sm:$0xff]  ;;  %vm835_vm5 = vcmask 31760   ;;  %s3235_s25 = smov 126   ;;  %s3236_s26 = smov 10  }
   0x3   :  { %2857 = vmatpush3.bf16.msra.mxu1 %v2878_v0  ;;  %2701 = vmatpush3.bf16.msra.mxu0 %v2878_v0  ;;  %v3314_v6 = vld [vmem:[%s3996_s5] sm:$0xff]  ;;  %v314_v7 = vpack.c.bf16 %v3309_v5, %v3304_v4  ;;  %v2881_v9 = vld [vmem:[%s3995_s1 + $0x28] sm:$0xff]   ;;  %v297_v12 = vld [vmem:[%s3998_s4 + $0x10] sm:$0xff]  ;;  %s3237_s27 = smov 8   ;;  %s3238_s28 = smov 4   ;;  %vm1105_vm6 = vcmask 97360  }
   0x4   :  { %2856 = vmatprep.subr.bf16.mxu1 %v2879_v2  ;;  %2712 = vmatprep.mubr.msk.bf16.mxu1 %vm160_vm0, %v2880_v3  ;;  %v3329_v10 = vld [vmem:[%s3997_s3] sm:$0xff]   ;;  %v313_v11 = vpack.c.bf16 %v3321_v8, %v3314_v6  ;;  %v298_v13 = vld [vmem:[%s3998_s4 + $0x18] sm:$0xff]  ;;  %v3345_v14 = vld [vmem:[%s3997_s3 + $0x8] sm:$0xff]   ;;  %s3239_s29 = smov 122   ;;  %vm1102_vm7 = vcmask 48160   ;;  %s3240_s30 = smov 124  }
   0x5   :  { %2702 = vmatprep.subr.bf16.mxu0 %v2879_v2  ;;  %301 = vperm.xlu0 %2876, %v297_v12   ;;  %v2888_v15 = vld [vmem:[%s3995_s1] sm:$0xff]   ;;  %v2889_v16 = vld [vmem:[%s3995_s1 + $0x8] sm:$0xff]   ;;  %v2890_v17 = vld [vmem:[%s3995_s1 + $0x10] sm:$0xff]   ;;  %vm1372_vm8 = vcmask 80960   ;;  %vm1369_vm9 = vcmask 64560   ;;  %s3242_s20 = smov 120  }
   0x6   :  { %2704 = vmatprep.mubr.msk.bf16.mxu0 %vm160_vm0, %v2888_v15  ;;  %v3360_v18 = vld [vmem:[%s3997_s3 + $0x10] sm:$0xff]   ;;  %v2891_v20 = vld [vmem:[%s3995_s1 + $0x18] sm:$0xff]   ;;  %v3382_v22 = vld [vmem:[%s3997_s3 + $0x20] sm:$0xff]   ;;  %s3241_s1 = smov 6   ;;  %s3243_s21 = smov 116   ;;  %vm3245_vm10 = vmmov 0  }
   0x7   :  { %2858 = vmatpush3.bf16.msra.mxu1 %v2879_v2  ;;  %2703 = vmatpush3.bf16.msra.mxu0 %v2879_v2  ;;  %v48_v19 = vld [vmem:[%s3999_s2 + $0x30] sm:$0xff]  ;;  %v3377_v21 = vld [vmem:[%s3997_s3 + $0x18] sm:$0xff]   ;;  %v3394_v23 = vld [vmem:[%s3997_s3 + $0x28] sm:$0xff]   ;;  %vm2484_vm11 = vcmask 123904  }
   0x8   :  { %2716 = vmatprep.subr.bf16.mxu1 %v314_v7  ;;  %86 = vperm.xlu1 %2877, %v48_v19   ;;  %v49_v24 = vld [vmem:[%s3999_s2 + $0x38] sm:$0xff]  ;;  %v50_v45 = vld [vmem:[%s3999_s2 + $0x40] sm:$0xff]  ;;  %v51_v49 = vld [vmem:[%s3999_s2 + $0x48] sm:$0xff] }
   0x9   :  { %306 = vperm.xlu0 %2876, %v298_v13   ;;  %v52_v54 = vld [vmem:[%s3999_s2 + $0x50] sm:$0xff]  ;;  %v53_v57 = vld [vmem:[%s3999_s2 + $0x58] sm:$0xff]  ;;  %v42_v59 = vld [vmem:[%s3999_s2] sm:$0xff] }
   0xa   :  { %2713 = vmatmul.mubr.msk.bf16.vlgmr.msra.gmra.mxu1 %vm160_vm0, %v2881_v9  ;;  %2705 = vmatmul.mubr.msk.bf16.vlgmr.msra.gmra.mxu0 %vm160_vm0, %v2889_v16  ;;  %v43_v61 = vld [vmem:[%s3999_s2 + $0x8] sm:$0xff]  ;;  %v44_v62 = vld [vmem:[%s3999_s2 + $0x10] sm:$0xff]  ;;  %v46_v63 = vld [vmem:[%s3999_s2 + $0x20] sm:$0xff] }
   0xb   :  { %2717 = vmatpush3.bf16.msra.mxu1 %v314_v7  ;;  %2720 = vmatprep.mubr.msk.bf16.mxu1 %vm160_vm0, %v3329_v10  ;;  %v45_v0 = vld [vmem:[%s3999_s2 + $0x18] sm:$0xff]  ;;  %v285_v1 = vld [vmem:[%s3998_s4] sm:$0xff]  ;;  %v47_v2 = vld [vmem:[%s3999_s2 + $0x28] sm:$0xff]  ;;  %s3231_s2 = smov 114  }
   0xc   :  { %2718 = vmatprep.subr.bf16.mxu1 %v313_v11  ;;  %2708 = vmatprep.mubr.msk.bf16.mxu0 %vm160_vm0, %v2890_v17  ;;  %v286_v3 = vld [vmem:[%s3998_s4 + $0x8] sm:$0xff]  ;;  %s3232_s4 = smov 12  }
   0xd   :  { %91 = vperm.xlu1 %2877, %v49_v24  }
   0xf   :  { %2719 = vmatpush3.bf16.msra.mxu1 %v313_v11 }
  0x12   :  { %2721 = vmatmul.mubr.msk.bf16.vlgmr.msra.gmra.mxu1 %vm160_vm0, %v3345_v14  ;;  %2709 = vmatmul.mubr.msk.bf16.gmra.mxu0 %vm160_vm0, %v2891_v20 }
  0x13   :  { %2724 = vmatprep.mubr.msk.bf16.mxu1 %vm160_vm0, %v3360_v18  ;;  %2736 = vmatprep.mubr.msk.bf16.mxu0 %vm160_vm0, %v3329_v10 }
  0x1a   :  { %2725 = vmatmul.mubr.msk.bf16.gmra.mxu1 %vm160_vm0, %v3377_v21 }
  0x1b   :  { %2728 = vmatprep.mubr.msk.bf16.mxu1 %vm160_vm0, %v3382_v22 }
  0x22   :  { %2729 = vmatmul.mubr.msk.bf16.gmra.mxu1 %vm160_vm0, %v3394_v23 }
  0x23   :  { %2752 = vmatprep.mubr.msk.bf16.mxu1 %vm160_vm0, %v3329_v10 }
  0x80   :  { %v3444_v53 = vpop.permute.xlu0 %301 }
  0x83   :  { %v87_v33 = vpop.permute.xlu1 %86 }
  0x84   :  { %v3454_v58 = vpop.permute.xlu0 %306 }
  0x88   :  { %v92_v41 = vpop.permute.xlu1 %91 }
  0xca   :  { %v3403_v25 = vpop.f32.mrf.mxu1  ;;  %v3409_v28 = vpop.f32.mrf.mxu0 }
  0xcc   :  { %v3405_v26 = vpop.f32.mrf.mxu1  ;;  %v3413_v30 = vpop.f32.mrf.mxu0 }
  0xce   :  { %v3407_v27 = vpop.f32.mrf.mxu1  ;;  %v3417_v32 = vpop.f32.mrf.mxu0 }
  0xd0   :  { %v3411_v29 = vpop.f32.mrf.mxu1  ;;  %v3421_v35 = vpop.f32.mrf.mxu0 }
  0xd2   :  { %v3415_v31 = vpop.f32.mrf.mxu1  ;;  %v2710_v37 = vpop.f32.mrf.mxu0 }
  0xd3   :  { %v238_v39 = vadd.f32 %v2710_v37, %v87_v33 }
  0xd4   :  { %v3419_v34 = vpop.f32.mrf.mxu1  ;;  %v3427_v40 = vpop.f32.mrf.mxu0 }
  0xd5   :  { %267 = vst.msk [vmem:[#allocation2 + $0x30] sm:$0xff] %vm260_vm1, %v238_v39 }
  0xd6   :  { %v3423_v36 = vpop.f32.mrf.mxu1  ;;  %v2711_v43 = vpop.f32.mrf.mxu0 }
  0xd7   :  { %v241_v46 = vadd.f32 %v2711_v43, %v92_v41 }
  0xd8   :  { %v3425_v38 = vpop.f32.mrf.mxu1 }
  0xd9   :  { %268 = vst.msk [vmem:[#allocation2 + $0x38] sm:$0xff] %vm260_vm1, %v241_v46 }
  0xda   :  { %v2726_v42 = vpop.f32.mrf.mxu1 }
  0xdb   :  { %502 = vrot.lane.b32.xlu0 %v2726_v42, %s3230_s22 }
  0xdc   :  { %v3431_v44 = vpop.f32.mrf.mxu1 }
  0xde   :  { %v2727_v47 = vpop.f32.mrf.mxu1 }
  0xdf   :  { %96 = vperm.xlu0 %2876, %v50_v45   ;;  %504 = vrot.lane.b32.xlu1 %v2727_v47, %s3230_s22 }
  0xe0   :  { %v3438_v48 = vpop.f32.mrf.mxu1  ;;  %v3490_v9 = vld [vmem:[#allocation2 + $0x38] sm:$0xff] }
  0xe2   :  { %v2730_v50 = vpop.f32.mrf.mxu1 }
  0xe3   :  { %101 = vperm.xlu1 %2877, %v51_v49   ;;  %v544_v56 = vadd.f32 %v2730_v50, %v3444_v53 }
  0xe4   :  { %v429_v51 = vpop.f32.mrf.mxu1 }
  0xe5   :  { %524 = vrot.lane.b32.xlu0 %v429_v51, %s3230_s22 }
  0xe6   :  { %v2731_v52 = vpop.f32.mrf.mxu1 }
  0xe7   :  { %v545_v60 = vadd.f32 %v2731_v52, %v3454_v58 }
  0xe8   :  { %v432_v55 = vpop.f32.mrf.mxu1 }
  0xe9   :  { %106 = vperm.xlu0 %2876, %v52_v54   ;;  %526 = vrot.lane.b32.xlu1 %v432_v55, %s3230_s22 }
  0xed   :  { %548 = vrot.lane.b32.xlu0 %v544_v56, %s3230_s22  ;;  %111 = vperm.xlu1 %2877, %v53_v57  }
  0xf1   :  { %56 = vperm.xlu0 %2876, %v42_v59   ;;  %550 = vrot.lane.b32.xlu1 %v545_v60, %s3230_s22 }
  0xf5   :  { %566 = vrot.lane.b32.xlu0 %v3304_v4, %s3230_s22  ;;  %61 = vperm.xlu1 %2877, %v43_v61   ;;  %v3487_v4 = vld [vmem:[#allocation2 + $0x30] sm:$0xff] }
  0xf9   :  { %66 = vperm.xlu0 %2876, %v44_v62   ;;  %568 = vrot.lane.b32.xlu1 %v3309_v5, %s3230_s22 }
  0xfd   :  { %76 = vperm.xlu0 %2876, %v46_v63   ;;  %71 = vperm.xlu1 %2877, %v45_v0  }
 0x101   :  { %289 = vperm.xlu0 %2876, %v285_v1   ;;  %81 = vperm.xlu1 %2877, %v47_v2  }
 0x105   :  { %294 = vperm.xlu1 %2877, %v286_v3  }
 0x14d   :  { %v503_v5 = vpop.permute.xlu0 %502 }
 0x14e   :  { %v508_v7 = vadd.f32 %v503_v5, %v3487_v4 }
 0x150   :  { %v2520_v11 = vmul.f32 -1.442695, %v508_v7 }
 0x151   :  { %v505_v12 = vpop.permute.xlu1 %504 }
 0x152   :  { %2892 = vpow2.f32 %v2520_v11  ;;  %v509_v13 = vadd.f32 %v505_v12, %v3490_v9 }
 0x154   :  { %v2521_v15 = vmul.f32 -1.442695, %v509_v13 }
 0x156   :  { %2894 = vpow2.f32 %v2521_v15 }
 0x15a   :  { %v97_v16 = vpop.permute.xlu0 %96 }
 0x15b   :  { %v246_v17 = vadd.f32 %v3405_v26, %v97_v16 }
 0x15d   :  { %269 = vst.msk [vmem:[#allocation2 + $0x40] sm:$0xff] %vm260_vm1, %v246_v17 }
 0x15e   :  { %v102_v19 = vpop.permute.xlu1 %101  ;;  %v525_v20 = vpop.permute.xlu0 %524 }
 0x15f   :  { %v2893_v24 = vpop.eup %2892  ;;  %v249_v33 = vadd.f32 %v3411_v29, %v102_v19 }
 0x160   :  { %v516_v37 = vadd.f32 1.0, %v2893_v24 }
 0x161   :  { %270 = vst.msk [vmem:[#allocation2 + $0x48] sm:$0xff] %vm260_vm1, %v249_v33 }
 0x162   :  { %2896 = vrcp.f32 %v516_v37  ;;  %v527_v43 = vpop.permute.xlu1 %526  ;;  %v232_v37 = vpop.f32.mrf.mxu0 }
 0x163   :  { %v2895_v39 = vpop.eup %2894 }
 0x164   :  { %v517_v41 = vadd.f32 1.0, %v2895_v39  ;;  %v3497_v42 = vld [vmem:[#allocation2 + $0x40] sm:$0xff]  ;;  %v107_v45 = vpop.permute.xlu0 %106 }
 0x165   :  { %v530_v46 = vadd.f32 %v525_v20, %v3497_v42  ;;  %v254_v26 = vadd.f32 %v3403_v25, %v107_v45 }
 0x166   :  { %2898 = vrcp.f32 %v517_v41 }
 0x167   :  { %v2522_v47 = vmul.f32 -1.442695, %v530_v46  ;;  %271 = vst.msk [vmem:[#allocation2 + $0x50] sm:$0xff] %vm260_vm1, %v254_v26 }
 0x168   :  { %v3502_v49 = vld [vmem:[#allocation2 + $0x48] sm:$0xff]  ;;  %v549_v29 = vpop.permute.xlu0 %548  ;;  %v112_v50 = vpop.permute.xlu1 %111 }
 0x169   :  { %2900 = vpow2.f32 %v2522_v47  ;;  %v531_v51 = vadd.f32 %v527_v43, %v3502_v49  ;;  %v257_v52 = vadd.f32 %v3407_v27, %v112_v50 }
 0x16b   :  { %v2523_v54 = vmul.f32 -1.442695, %v531_v51  ;;  %272 = vst.msk [vmem:[#allocation2 + $0x58] sm:$0xff] %vm260_vm1, %v257_v52 }
 0x16c   :  { %v57_v55 = vpop.permute.xlu0 %56  ;;  %v551_v56 = vpop.permute.xlu1 %550 }
 0x16d   :  { %2902 = vpow2.f32 %v2523_v54  ;;  %v214_v25 = vadd.f32 %v3413_v30, %v57_v55 }
 0x16e   :  { %v3511_v1 = vld [vmem:[#allocation2 + $0x50] sm:$0xff] }
 0x16f   :  { %v2897_v57 = vpop.eup %2896  ;;  %261 = vst.msk [vmem:[#allocation2] sm:$0xff] %vm260_vm1, %v214_v25 }
 0x170   :  { %v567_v59 = vpop.permute.xlu0 %566  ;;  %v62_v60 = vpop.permute.xlu1 %61  ;;  %v554_v62 = vmul.f32 %v2897_v57, %v549_v29 }
 0x171   :  { %v217_v61 = vadd.f32 %v3421_v35, %v62_v60 }
 0x172   :  { %v556_v30 = vadd.f32 %v554_v62, %v3511_v1  ;;  %v3520_v16 = vld [vmem:[#allocation2 + $0x58] sm:$0xff] }
 0x173   :  { %v2899_v63 = vpop.eup %2898  ;;  %262 = vst.msk [vmem:[#allocation2 + $0x8] sm:$0xff] %vm260_vm1, %v217_v61 }
 0x174   :  { %v67_v27 = vpop.permute.xlu0 %66  ;;  %v569_v0 = vpop.permute.xlu1 %568  ;;  %v555_v7 = vmul.f32 %v2899_v63, %v551_v56 }
 0x175   :  { %v222_v2 = vadd.f32 %v3409_v28, %v67_v27 }
 0x176   :  { %v2901_v3 = vpop.eup %2900  ;;  %v3515_v5 = vld [vmem:[#allocation2] sm:$0xff]  ;;  %v557_v20 = vadd.f32 %v555_v7, %v3520_v16 }
 0x177   :  { %v538_v11 = vadd.f32 1.0, %v2901_v3  ;;  %v456_v35 = vadd.f32 %v3515_v5, %v3419_v34  ;;  %263 = vst.msk [vmem:[#allocation2 + $0x10] sm:$0xff] %vm260_vm1, %v222_v2 }
 0x178   :  { %v77_v12 = vpop.permute.xlu0 %76  ;;  %v72_v13 = vpop.permute.xlu1 %71 }
 0x179   :  { %2904 = vrcp.f32 %v538_v11  ;;  %v2516_v15 = vmul.f32 -1.442695, %v456_v35  ;;  %v230_v28 = vadd.f32 %v3427_v40, %v77_v12  ;;  %v225_v17 = vadd.f32 %v3417_v32, %v72_v13 }
 0x17a   :  { %v2903_v19 = vpop.eup %2902  ;;  %2906 = vtanh.f32 %v556_v30  ;;  %v3525_v24 = vld [vmem:[#allocation2 + $0x8] sm:$0xff] }
 0x17b   :  { %v539_v33 = vadd.f32 1.0, %v2903_v19  ;;  %2908 = vpow2.f32 %v2516_v15  ;;  %v457_v34 = vadd.f32 %v3525_v24, %v3425_v38  ;;  %265 = vst.msk [vmem:[#allocation2 + $0x20] sm:$0xff] %vm260_vm1, %v230_v28  ;;  %264 = vst.msk [vmem:[#allocation2 + $0x18] sm:$0xff] %vm260_vm1, %v225_v17 }
 0x17c   :  { %v82_v39 = vpop.permute.xlu1 %81  ;;  %v3542_v27 = vpop.permute.xlu0 %289 }
 0x17d   :  { %2910 = vrcp.f32 %v539_v33  ;;  %v2517_v40 = vmul.f32 -1.442695, %v457_v34  ;;  %v233_v32 = vadd.f32 %v232_v37, %v82_v39  ;;  %v484_v30 = vadd.f32 %v3431_v44, %v3542_v27 }
 0x17e   :  { %2912 = vtanh.f32 %v557_v20  ;;  %v3531_v41 = vld [vmem:[#allocation2 + $0x10] sm:$0xff] }
 0x17f   :  { %2914 = vpow2.f32 %v2517_v40  ;;  %266 = vst.msk [vmem:[#allocation2 + $0x28] sm:$0xff] %vm260_vm1, %v233_v32  ;;  %v470_v43 = vadd.f32 %v3415_v31, %v3531_v41 }
 0x180   :  { %v3546_v11 = vpop.permute.xlu1 %294 }
 0x181   :  { %v2518_v45 = vmul.f32 -1.442695, %v470_v43  ;;  %v485_v13 = vadd.f32 %v3438_v48, %v3546_v11 }
 0x182   :  { %v3536_v38 = vld [vmem:[#allocation2 + $0x18] sm:$0xff]  ;;  %v3548_v12 = vld [vmem:[#allocation2 + $0x20] sm:$0xff] }
 0x183   :  { %v471_v46 = vadd.f32 %v3423_v36, %v3536_v38  ;;  %2916 = vpow2.f32 %v2518_v45 }
 0x185   :  { %v2519_v26 = vmul.f32 -1.442695, %v471_v46 }
 0x186   :  { %v2905_v47 = vpop.eup %2904  ;;  %v3553_v19 = vld [vmem:[#allocation2 + $0x28] sm:$0xff] }
 0x187   :  { %v2907_v29 = vpop.eup %2906  ;;  %v560_v50 = vsub.f32 1.0, %v2905_v47  ;;  %2918 = vpow2.f32 %v2519_v26  ;;  %v572_v54 = vmul.f32 %v2905_v47, %v567_v59 }
 0x188   :  { %v2909_v51 = vpop.eup %2908 }
 0x189   :  { %v562_v52 = vmul.f32 %v2907_v29, %v560_v50  ;;  %v464_v55 = vadd.f32 1.0, %v2909_v51 }
 0x18a   :  { %v2911_v56 = vpop.eup %2910 }
 0x18b   :  { %v2913_v25 = vpop.eup %2912  ;;  %v574_v31 = vadd.f32 %v572_v54, %v562_v52  ;;  %v561_v57 = vsub.f32 1.0, %v2911_v56  ;;  %2920 = vrcp.f32 %v464_v55  ;;  %v573_v61 = vmul.f32 %v2911_v56, %v569_v0 }
 0x18c   :  { %v2915_v60 = vpop.eup %2914 }
 0x18d   :  { %580 = vst.msk [vmem:[#allocation3 + $0x10] sm:$0xff] %vm579_vm2, %v574_v31  ;;  %v563_v36 = vmul.f32 %v2913_v25, %v561_v57  ;;  %v465_v62 = vadd.f32 1.0, %v2915_v60  ;;  %584 = vrot.lane.b32.xlu0 %v574_v31, %s3231_s2 }
 0x18f   :  { %v575_v63 = vadd.f32 %v573_v61, %v563_v36  ;;  %2922 = vrcp.f32 %v465_v62 }
 0x190   :  { %v2917_v59 = vpop.eup %2916 }
 0x191   :  { %581 = vst.msk [vmem:[#allocation3 + $0x18] sm:$0xff] %vm579_vm2, %v575_v63  ;;  %586 = vrot.lane.b32.xlu1 %v575_v63, %s3231_s2  ;;  %v478_v3 = vadd.f32 1.0, %v2917_v59 }
 0x193   :  { %2924 = vrcp.f32 %v478_v3 }
 0x194   :  { %v2919_v2 = vpop.eup %2918 }
 0x195   :  { %v479_v0 = vadd.f32 1.0, %v2919_v2 }
 0x197   :  { %2926 = vrcp.f32 %v479_v0 }
 0x198   :  { %v2921_v7 = vpop.eup %2920 }
 0x199   :  { %v486_v35 = vmul.f32 %v2921_v7, %v484_v30 }
 0x19b   :  { %v488_v15 = vadd.f32 %v486_v35, %v3548_v12 }
 0x19c   :  { %v2923_v28 = vpop.eup %2922 }
 0x19d   :  { %v487_v17 = vmul.f32 %v2923_v28, %v485_v13  ;;  %2928 = vtanh.f32 %v488_v15 }
 0x19f   :  { %v489_v44 = vadd.f32 %v487_v17, %v3553_v19 }
 0x1a0   :  { %v2925_v20 = vpop.eup %2924 }
 0x1a1   :  { %2930 = vtanh.f32 %v489_v44  ;;  %v492_v34 = vsub.f32 1.0, %v2925_v20  ;;  %v496_v40 = vmul.f32 %v2925_v20, %v3314_v6 }
 0x1a4   :  { %v2927_v33 = vpop.eup %2926 }
 0x1a5   :  { %v493_v48 = vsub.f32 1.0, %v2927_v33  ;;  %v497_v46 = vmul.f32 %v2927_v33, %v3321_v8 }
 0x1aa   :  { %v2929_v37 = vpop.eup %2928 }
 0x1ab   :  { %v494_v39 = vmul.f32 %v2929_v37, %v492_v34 }
 0x1ad   :  { %v498_v32 = vadd.f32 %v496_v40, %v494_v39 }
 0x1ae   :  { %v2931_v43 = vpop.eup %2930 }
 0x1af   :  { %v495_v45 = vmul.f32 %v2931_v43, %v493_v48  ;;  %577 = vst.msk [vmem:[#allocation3] sm:$0xff] %vm576_vm3, %v498_v32 }
 0x1b1   :  { %v499_v26 = vadd.f32 %v497_v46, %v495_v45 }
 0x1b3   :  { %578 = vst.msk [vmem:[#allocation3 + $0x8] sm:$0xff] %vm576_vm3, %v499_v26  ;;  %v590_v51 = vpack.c.bf16 %v499_v26, %v498_v32 }
 0x1ff   :  { %v585_v47 = vpop.permute.xlu0 %584 }
 0x203   :  { %v587_v29 = vpop.permute.xlu1 %586 }
 0x204   :  { %v591_v50 = vpack.c.bf16 %v587_v29, %v585_v47 }
 0x206   :  { %2732 = vmatprep.subr.bf16.mxu0 %v591_v50 }
 0x207   :  { %2733 = vmatpush3.bf16.msra.mxu0 %v591_v50 }
 0x208   :  { %2734 = vmatprep.subr.bf16.mxu0 %v590_v51 }
 0x20b   :  { %2735 = vmatpush3.bf16.msra.mxu0 %v590_v51 }
 0x20e   :  { %2737 = vmatmul.mubr.msk.bf16.vlgmr.msra.gmra.mxu0 %vm160_vm0, %v3345_v14 }
 0x20f   :  { %2740 = vmatprep.mubr.msk.bf16.mxu0 %vm160_vm0, %v3360_v18 }
 0x216   :  { %2741 = vmatmul.mubr.msk.bf16.gmra.mxu0 %vm160_vm0, %v3377_v21 }
 0x217   :  { %2744 = vmatprep.mubr.msk.bf16.mxu0 %vm160_vm0, %v3382_v22 }
 0x21e   :  { %2745 = vmatmul.mubr.msk.bf16.gmra.mxu0 %vm160_vm0, %v3394_v23 }
 0x21f   :  { %2768 = vmatprep.mubr.msk.bf16.mxu0 %vm160_vm0, %v3329_v10 }
 0x2ce   :  { %v2738_v6 = vpop.f32.mrf.mxu0 }
 0x2d0   :  { %v626_v8 = vpop.f32.mrf.mxu0 }
 0x2d2   :  { %v2739_v52 = vpop.f32.mrf.mxu0 }
 0x2d4   :  { %v629_v54 = vpop.f32.mrf.mxu0 }
 0x2d6   :  { %v2742_v55 = vpop.f32.mrf.mxu0 }
 0x2d7   :  { %763 = vrot.lane.b32.xlu0 %v2742_v55, %s3232_s4 }
 0x2d8   :  { %v642_v56 = vpop.f32.mrf.mxu0 }
 0x2d9   :  { %v729_v59 = vadd.f32 %v642_v56, %v3542_v27 }
 0x2da   :  { %v2743_v25 = vpop.f32.mrf.mxu0 }
 0x2db   :  { %765 = vrot.lane.b32.xlu1 %v2743_v25, %s3232_s4 }
 0x2dc   :  { %v645_v31 = vpop.f32.mrf.mxu0 }
 0x2dd   :  { %v730_v2 = vadd.f32 %v645_v31, %v3546_v11 }
 0x2de   :  { %v2746_v57 = vpop.f32.mrf.mxu0 }
 0x2df   :  { %v805_v61 = vadd.f32 %v2746_v57, %v3444_v53 }
 0x2e0   :  { %v658_v60 = vpop.f32.mrf.mxu0 }
 0x2e1   :  { %785 = vrot.lane.b32.xlu0 %v658_v60, %s3232_s4 }
 0x2e2   :  { %v2747_v36 = vpop.f32.mrf.mxu0 }
 0x2e3   :  { %v806_v63 = vadd.f32 %v2747_v36, %v3454_v58 }
 0x2e4   :  { %v661_v62 = vpop.f32.mrf.mxu0 }
 0x2e5   :  { %809 = vrot.lane.b32.xlu0 %v805_v61, %s3232_s4  ;;  %787 = vrot.lane.b32.xlu1 %v661_v62, %s3232_s4 }
 0x2e9   :  { %825 = vrot.lane.b32.xlu0 %v585_v47, %s3232_s4  ;;  %811 = vrot.lane.b32.xlu1 %v806_v63, %s3232_s4 }
 0x2ed   :  { %687 = vrot.lane.b32.xlu0 %v626_v8, %s3233_s23  ;;  %827 = vrot.lane.b32.xlu1 %v587_v29, %s3232_s4 }
 0x2f1   :  { %709 = vrot.lane.b32.xlu0 %v2738_v6, %s3233_s23  ;;  %689 = vrot.lane.b32.xlu1 %v629_v54, %s3233_s23 }
 0x2f5   :  { %733 = vrot.lane.b32.xlu0 %v729_v59, %s3233_s23  ;;  %711 = vrot.lane.b32.xlu1 %v2739_v52, %s3233_s23 }
 0x2f9   :  { %751 = vrot.lane.b32.xlu0 %v498_v32, %s3233_s23  ;;  %735 = vrot.lane.b32.xlu1 %v730_v2, %s3233_s23 }
 0x2fd   :  { %753 = vrot.lane.b32.xlu1 %v499_v26, %s3233_s23 }
 0x349   :  { %v764_v3 = vpop.permute.xlu0 %763 }
 0x34a   :  { %v769_v30 = vadd.f32 %v764_v3, %v3487_v4 }
 0x34c   :  { %v2534_v7 = vmul.f32 -1.442695, %v769_v30 }
 0x34d   :  { %v766_v0 = vpop.permute.xlu1 %765 }
 0x34e   :  { %2932 = vpow2.f32 %v2534_v7  ;;  %v770_v35 = vadd.f32 %v766_v0, %v3490_v9 }
 0x350   :  { %v2535_v13 = vmul.f32 -1.442695, %v770_v35 }
 0x352   :  { %2934 = vpow2.f32 %v2535_v13 }
 0x353   :  { %v786_v15 = vpop.permute.xlu0 %785 }
 0x354   :  { %v791_v28 = vadd.f32 %v786_v15, %v3497_v42 }
 0x356   :  { %v2536_v17 = vmul.f32 -1.442695, %v791_v28 }
 0x357   :  { %v810_v44 = vpop.permute.xlu0 %809  ;;  %v788_v20 = vpop.permute.xlu1 %787 }
 0x358   :  { %2936 = vpow2.f32 %v2536_v17  ;;  %v792_v33 = vadd.f32 %v788_v20, %v3502_v49 }
 0x35a   :  { %v2537_v34 = vmul.f32 -1.442695, %v792_v33 }
 0x35b   :  { %v2933_v37 = vpop.eup %2932  ;;  %v826_v39 = vpop.permute.xlu0 %825 }
 0x35c   :  { %v812_v40 = vpop.permute.xlu1 %811  ;;  %v777_v48 = vadd.f32 1.0, %v2933_v37  ;;  %2938 = vpow2.f32 %v2537_v34 }
 0x35e   :  { %2940 = vrcp.f32 %v777_v48 }
 0x35f   :  { %v2935_v32 = vpop.eup %2934  ;;  %v688_v43 = vpop.permute.xlu0 %687 }
 0x360   :  { %v828_v45 = vpop.permute.xlu1 %827  ;;  %v778_v46 = vadd.f32 1.0, %v2935_v32  ;;  %v693_v26 = vadd.f32 %v688_v43, %v3515_v5 }
 0x362   :  { %2942 = vrcp.f32 %v778_v46  ;;  %v2530_v47 = vmul.f32 -1.442695, %v693_v26 }
 0x363   :  { %v710_v29 = vpop.permute.xlu0 %709 }
 0x364   :  { %v690_v50 = vpop.permute.xlu1 %689  ;;  %2944 = vpow2.f32 %v2530_v47  ;;  %v715_v8 = vadd.f32 %v710_v29, %v3531_v41 }
 0x365   :  { %v694_v51 = vadd.f32 %v690_v50, %v3525_v24  ;;  %v2937_v6 = vpop.eup %2936 }
 0x366   :  { %v799_v54 = vadd.f32 1.0, %v2937_v6  ;;  %v2532_v25 = vmul.f32 -1.442695, %v715_v8 }
 0x367   :  { %v2531_v52 = vmul.f32 -1.442695, %v694_v51  ;;  %v734_v26 = vpop.permute.xlu0 %733 }
 0x368   :  { %v712_v55 = vpop.permute.xlu1 %711 }
 0x369   :  { %v2939_v56 = vpop.eup %2938  ;;  %2946 = vpow2.f32 %v2531_v52  ;;  %v716_v60 = vadd.f32 %v712_v55, %v3536_v38 }
 0x36a   :  { %v800_v57 = vadd.f32 1.0, %v2939_v56  ;;  %2948 = vrcp.f32 %v799_v54 }
 0x36b   :  { %v2941_v31 = vpop.eup %2940  ;;  %2950 = vpow2.f32 %v2532_v25  ;;  %v2533_v63 = vmul.f32 -1.442695, %v716_v60  ;;  %v752_v56 = vpop.permute.xlu0 %751 }
 0x36c   :  { %v815_v36 = vmul.f32 %v2941_v31, %v810_v44  ;;  %2952 = vrcp.f32 %v800_v57  ;;  %v736_v6 = vpop.permute.xlu1 %735 }
 0x36e   :  { %v817_v61 = vadd.f32 %v815_v36, %v3511_v1 }
 0x36f   :  { %v2943_v62 = vpop.eup %2942 }
 0x370   :  { %2954 = vtanh.f32 %v817_v61  ;;  %v816_v59 = vmul.f32 %v2943_v62, %v812_v40  ;;  %v754_v62 = vpop.permute.xlu1 %753 }
 0x371   :  { %v2945_v2 = vpop.eup %2944  ;;  %2956 = vpow2.f32 %v2533_v63 }
 0x372   :  { %v818_v3 = vadd.f32 %v816_v59, %v3520_v16  ;;  %v701_v30 = vadd.f32 1.0, %v2945_v2 }
 0x374   :  { %2958 = vtanh.f32 %v818_v3 }
 0x375   :  { %2960 = vrcp.f32 %v701_v30 }
 0x376   :  { %v2947_v7 = vpop.eup %2946 }
 0x377   :  { %v702_v0 = vadd.f32 1.0, %v2947_v7  ;;  %v2949_v35 = vpop.eup %2948 }
 0x378   :  { %v2951_v13 = vpop.eup %2950  ;;  %v821_v28 = vsub.f32 1.0, %v2949_v35  ;;  %v831_v20 = vmul.f32 %v2949_v35, %v826_v39 }
 0x379   :  { %2962 = vrcp.f32 %v702_v0  ;;  %v2953_v15 = vpop.eup %2952  ;;  %v723_v33 = vadd.f32 1.0, %v2951_v13 }
 0x37a   :  { %v822_v40 = vsub.f32 1.0, %v2953_v15  ;;  %v832_v46 = vmul.f32 %v2953_v15, %v828_v45 }
 0x37b   :  { %2964 = vrcp.f32 %v723_v33 }
 0x37d   :  { %v2955_v17 = vpop.eup %2954 }
 0x37e   :  { %v823_v44 = vmul.f32 %v2955_v17, %v821_v28  ;;  %v2957_v34 = vpop.eup %2956 }
 0x37f   :  { %v724_v50 = vadd.f32 1.0, %v2957_v34 }
 0x380   :  { %v833_v37 = vadd.f32 %v831_v20, %v823_v44 }
 0x381   :  { %v2959_v48 = vpop.eup %2958 }
 0x382   :  { %v2961_v32 = vpop.eup %2960  ;;  %839 = vst.msk [vmem:[#allocation3 + $0x10] sm:$0xff] %vm838_vm4, %v833_v37  ;;  %v824_v43 = vmul.f32 %v2959_v48, %v822_v40  ;;  %843 = vrot.lane.b32.xlu0 %v833_v37, %s3234_s24 }
 0x383   :  { %v739_v47 = vmul.f32 %v2961_v32, %v734_v26 }
 0x384   :  { %v834_v29 = vadd.f32 %v832_v46, %v824_v43 }
 0x385   :  { %v741_v39 = vadd.f32 %v739_v47, %v3548_v12 }
 0x386   :  { %840 = vst.msk [vmem:[#allocation3 + $0x18] sm:$0xff] %vm838_vm4, %v834_v29  ;;  %845 = vrot.lane.b32.xlu1 %v834_v29, %s3234_s24  ;;  %v2963_v51 = vpop.eup %2962 }
 0x387   :  { %2966 = vtanh.f32 %v741_v39  ;;  %v740_v8 = vmul.f32 %v2963_v51, %v736_v6 }
 0x388   :  { %2968 = vrcp.f32 %v724_v50  ;;  %v2965_v52 = vpop.eup %2964 }
 0x389   :  { %v742_v45 = vadd.f32 %v740_v8, %v3553_v19  ;;  %v745_v54 = vsub.f32 1.0, %v2965_v52  ;;  %v757_v57 = vmul.f32 %v2965_v52, %v752_v56 }
 0x38b   :  { %2970 = vtanh.f32 %v742_v45 }
 0x394   :  { %v2967_v55 = vpop.eup %2966 }
 0x395   :  { %v2969_v25 = vpop.eup %2968  ;;  %v747_v31 = vmul.f32 %v2967_v55, %v745_v54 }
 0x396   :  { %v746_v36 = vsub.f32 1.0, %v2969_v25  ;;  %v758_v59 = vmul.f32 %v2969_v25, %v754_v62 }
 0x397   :  { %v759_v60 = vadd.f32 %v757_v57, %v747_v31 }
 0x398   :  { %v2971_v61 = vpop.eup %2970 }
 0x399   :  { %836 = vst.msk [vmem:[#allocation3] sm:$0xff] %vm835_vm5, %v759_v60  ;;  %v748_v63 = vmul.f32 %v2971_v61, %v746_v36 }
 0x39b   :  { %v760_v2 = vadd.f32 %v758_v59, %v748_v63 }
 0x39d   :  { %837 = vst.msk [vmem:[#allocation3 + $0x8] sm:$0xff] %vm835_vm5, %v760_v2  ;;  %v849_v3 = vpack.c.bf16 %v760_v2, %v759_v60 }
 0x39f   :  { %853 = vrot.lane.b32.xlu1 %v849_v3, %s3235_s25 }
 0x3f4   :  { %v844_v30 = vpop.permute.xlu0 %843 }
 0x3f8   :  { %v846_v7 = vpop.permute.xlu1 %845 }
 0x3f9   :  { %v850_v0 = vpack.c.bf16 %v846_v7, %v844_v30 }
 0x3fb   :  { %855 = vrot.lane.b32.xlu0 %v850_v0, %s3235_s25 }
 0x411   :  { %v854_v13 = vpop.permute.xlu1 %853 }
 0x46d   :  { %v856_v35 = vpop.permute.xlu0 %855 }
 0x46e   :  { %2748 = vmatprep.subr.bf16.mxu1 %v856_v35 }
 0x46f   :  { %2749 = vmatpush3.bf16.msra.mxu1 %v856_v35 }
 0x470   :  { %2750 = vmatprep.subr.bf16.mxu1 %v854_v13 }
 0x473   :  { %2751 = vmatpush3.bf16.msra.mxu1 %v854_v13 }
 0x476   :  { %2753 = vmatmul.mubr.msk.bf16.vlgmr.msra.gmra.mxu1 %vm160_vm0, %v3345_v14 }
 0x477   :  { %2756 = vmatprep.mubr.msk.bf16.mxu1 %vm160_vm0, %v3360_v18 }
 0x47e   :  { %2757 = vmatmul.mubr.msk.bf16.gmra.mxu1 %vm160_vm0, %v3377_v21 }
 0x47f   :  { %2760 = vmatprep.mubr.msk.bf16.mxu1 %vm160_vm0, %v3382_v22 }
 0x486   :  { %2761 = vmatmul.mubr.msk.bf16.gmra.mxu1 %vm160_vm0, %v3394_v23 }
 0x487   :  { %2784 = vmatprep.mubr.msk.bf16.mxu1 %vm160_vm0, %v3329_v10 }
 0x536   :  { %v2754_v15 = vpop.f32.mrf.mxu1 }
 0x538   :  { %v893_v28 = vpop.f32.mrf.mxu1 }
 0x53a   :  { %v2755_v17 = vpop.f32.mrf.mxu1 }
 0x53c   :  { %v896_v44 = vpop.f32.mrf.mxu1 }
 0x53e   :  { %v2758_v14 = vpop.f32.mrf.mxu1 }
 0x53f   :  { %1030 = vrot.lane.b32.xlu0 %v2758_v14, %s3236_s26 }
 0x540   :  { %v909_v18 = vpop.f32.mrf.mxu1 }
 0x541   :  { %v996_v40 = vadd.f32 %v909_v18, %v3542_v27 }
 0x542   :  { %v2759_v20 = vpop.f32.mrf.mxu1 }
 0x543   :  { %1032 = vrot.lane.b32.xlu1 %v2759_v20, %s3236_s26 }
 0x544   :  { %v912_v21 = vpop.f32.mrf.mxu1 }
 0x545   :  { %v997_v48 = vadd.f32 %v912_v21, %v3546_v11 }
 0x546   :  { %v2762_v22 = vpop.f32.mrf.mxu1 }
 0x547   :  { %v1072_v10 = vadd.f32 %v2762_v22, %v3444_v53 }
 0x548   :  { %v925_v33 = vpop.f32.mrf.mxu1 }
 0x549   :  { %1052 = vrot.lane.b32.xlu0 %v925_v33, %s3236_s26 }
 0x54a   :  { %v2763_v23 = vpop.f32.mrf.mxu1 }
 0x54b   :  { %v1073_v37 = vadd.f32 %v2763_v23, %v3454_v58 }
 0x54c   :  { %v928_v34 = vpop.f32.mrf.mxu1 }
 0x54d   :  { %1076 = vrot.lane.b32.xlu0 %v1072_v10, %s3236_s26  ;;  %1054 = vrot.lane.b32.xlu1 %v928_v34, %s3236_s26 }
 0x551   :  { %1092 = vrot.lane.b32.xlu0 %v844_v30, %s3237_s27  ;;  %1078 = vrot.lane.b32.xlu1 %v1073_v37, %s3236_s26 }
 0x555   :  { %954 = vrot.lane.b32.xlu0 %v893_v28, %s3238_s28  ;;  %1094 = vrot.lane.b32.xlu1 %v846_v7, %s3237_s27 }
 0x559   :  { %976 = vrot.lane.b32.xlu0 %v2754_v15, %s3238_s28  ;;  %956 = vrot.lane.b32.xlu1 %v896_v44, %s3238_s28 }
 0x55d   :  { %1000 = vrot.lane.b32.xlu0 %v996_v40, %s3238_s28  ;;  %978 = vrot.lane.b32.xlu1 %v2755_v17, %s3238_s28 }
 0x561   :  { %1018 = vrot.lane.b32.xlu0 %v759_v60, %s3233_s23  ;;  %1002 = vrot.lane.b32.xlu1 %v997_v48, %s3238_s28 }
 0x565   :  { %1020 = vrot.lane.b32.xlu1 %v760_v2, %s3233_s23 }
 0x5b1   :  { %v1031_v32 = vpop.permute.xlu0 %1030 }
 0x5b2   :  { %v1036_v43 = vadd.f32 %v1031_v32, %v3487_v4 }
 0x5b4   :  { %v2548_v46 = vmul.f32 -1.442695, %v1036_v43 }
 0x5b5   :  { %v1033_v26 = vpop.permute.xlu1 %1032 }
 0x5b6   :  { %2972 = vpow2.f32 %v2548_v46  ;;  %v1037_v47 = vadd.f32 %v1033_v26, %v3490_v9 }
 0x5b8   :  { %v2549_v29 = vmul.f32 -1.442695, %v1037_v47 }
 0x5ba   :  { %2974 = vpow2.f32 %v2549_v29 }
 0x5bb   :  { %v1053_v50 = vpop.permute.xlu0 %1052 }
 0x5bc   :  { %v1058_v39 = vadd.f32 %v1053_v50, %v3497_v42 }
 0x5be   :  { %v2550_v51 = vmul.f32 -1.442695, %v1058_v39 }
 0x5bf   :  { %v1077_v6 = vpop.permute.xlu0 %1076  ;;  %v1055_v8 = vpop.permute.xlu1 %1054 }
 0x5c0   :  { %2976 = vpow2.f32 %v2550_v51  ;;  %v1059_v45 = vadd.f32 %v1055_v8, %v3502_v49 }
 0x5c2   :  { %v2551_v52 = vmul.f32 -1.442695, %v1059_v45 }
 0x5c3   :  { %v2973_v54 = vpop.eup %2972  ;;  %v1093_v55 = vpop.permute.xlu0 %1092 }
 0x5c4   :  { %v1079_v4 = vpop.permute.xlu1 %1078  ;;  %v1044_v56 = vadd.f32 1.0, %v2973_v54  ;;  %2978 = vpow2.f32 %v2551_v52 }
 0x5c6   :  { %2980 = vrcp.f32 %v1044_v56 }
 0x5c7   :  { %v2975_v25 = vpop.eup %2974  ;;  %v955_v9 = vpop.permute.xlu0 %954 }
 0x5c8   :  { %v1095_v31 = vpop.permute.xlu1 %1094  ;;  %v1045_v57 = vadd.f32 1.0, %v2975_v25  ;;  %v960_v60 = vadd.f32 %v955_v9, %v3515_v5 }
 0x5ca   :  { %2982 = vrcp.f32 %v1045_v57  ;;  %v2544_v42 = vmul.f32 -1.442695, %v960_v60 }
 0x5cb   :  { %v977_v36 = vpop.permute.xlu0 %976 }
 0x5cc   :  { %v957_v61 = vpop.permute.xlu1 %956  ;;  %2984 = vpow2.f32 %v2544_v42  ;;  %v982_v63 = vadd.f32 %v977_v36, %v3531_v41 }
 0x5cd   :  { %v961_v49 = vadd.f32 %v957_v61, %v3525_v24  ;;  %v2977_v62 = vpop.eup %2976 }
 0x5ce   :  { %v1066_v2 = vadd.f32 1.0, %v2977_v62  ;;  %v2546_v7 = vmul.f32 -1.442695, %v982_v63 }
 0x5cf   :  { %v2545_v59 = vmul.f32 -1.442695, %v961_v49  ;;  %v1001_v39 = vpop.permute.xlu0 %1000 }
 0x5d0   :  { %v979_v3 = vpop.permute.xlu1 %978 }
 0x5d1   :  { %v2979_v30 = vpop.eup %2978  ;;  %2986 = vpow2.f32 %v2545_v59  ;;  %v983_v13 = vadd.f32 %v979_v3, %v3536_v38 }
 0x5d2   :  { %v1067_v35 = vadd.f32 1.0, %v2979_v30  ;;  %2988 = vrcp.f32 %v1066_v2 }
 0x5d3   :  { %v2981_v0 = vpop.eup %2980  ;;  %2990 = vpow2.f32 %v2546_v7  ;;  %v2547_v44 = vmul.f32 -1.442695, %v983_v13 }
 0x5d4   :  { %v1082_v15 = vmul.f32 %v2981_v0, %v1077_v6  ;;  %2992 = vrcp.f32 %v1067_v35  ;;  %v1003_v54 = vpop.permute.xlu1 %1002 }
 0x5d6   :  { %v1084_v28 = vadd.f32 %v1082_v15, %v3511_v1  ;;  %v3671_v15 = vld [vmem:[%s3997_s3 + $0x8] sm:$0xff]  }
 0x5d7   :  { %v2983_v17 = vpop.eup %2982 }
 0x5d8   :  { %2994 = vtanh.f32 %v1084_v28  ;;  %v1083_v14 = vmul.f32 %v2983_v17, %v1079_v4  ;;  %v1021_v62 = vpop.permute.xlu1 %1020  ;;  %v3678_v28 = vld [vmem:[%s3997_s3 + $0x10] sm:$0xff]   ;;  %v3685_v17 = vld [vmem:[%s3997_s3 + $0x18] sm:$0xff]  }
 0x5d9   :  { %v2985_v18 = vpop.eup %2984  ;;  %2996 = vpow2.f32 %v2547_v44  ;;  %v3692_v44 = vld [vmem:[%s3997_s3 + $0x20] sm:$0xff]  }
 0x5da   :  { %v1085_v20 = vadd.f32 %v1083_v14, %v3520_v16  ;;  %v968_v21 = vadd.f32 1.0, %v2985_v18  ;;  %v3699_v14 = vld [vmem:[%s3997_s3 + $0x28] sm:$0xff]   ;;  %v3706_v18 = vld [vmem:[%s3997_s3] sm:$0xff]  }
 0x5dc   :  { %2998 = vtanh.f32 %v1085_v20 }
 0x5dd   :  { %3000 = vrcp.f32 %v968_v21 }
 0x5de   :  { %v2987_v22 = vpop.eup %2986 }
 0x5df   :  { %v969_v33 = vadd.f32 1.0, %v2987_v22  ;;  %v2989_v23 = vpop.eup %2988 }
 0x5e0   :  { %v2991_v10 = vpop.eup %2990  ;;  %v1088_v1 = vsub.f32 1.0, %v2989_v23  ;;  %v1098_v48 = vmul.f32 %v2989_v23, %v1093_v55 }
 0x5e1   :  { %3002 = vrcp.f32 %v969_v33  ;;  %v2993_v34 = vpop.eup %2992  ;;  %v990_v32 = vadd.f32 1.0, %v2991_v10 }
 0x5e2   :  { %v1089_v26 = vsub.f32 1.0, %v2993_v34  ;;  %v1099_v50 = vmul.f32 %v2993_v34, %v1095_v31  ;;  %v1019_v31 = vpop.permute.xlu0 %1018 }
 0x5e3   :  { %3004 = vrcp.f32 %v990_v32 }
 0x5e5   :  { %v2995_v37 = vpop.eup %2994 }
 0x5e6   :  { %v1090_v40 = vmul.f32 %v2995_v37, %v1088_v1  ;;  %v2997_v43 = vpop.eup %2996 }
 0x5e7   :  { %v991_v8 = vadd.f32 1.0, %v2997_v43 }
 0x5e8   :  { %v1100_v46 = vadd.f32 %v1098_v48, %v1090_v40 }
 0x5e9   :  { %v2999_v16 = vpop.eup %2998 }
 0x5ea   :  { %v3001_v47 = vpop.eup %3000  ;;  %1106 = vst.msk [vmem:[#allocation3 + $0x10] sm:$0xff] %vm1105_vm6, %v1100_v46  ;;  %v1091_v29 = vmul.f32 %v2999_v16, %v1089_v26  ;;  %1110 = vrot.lane.b32.xlu0 %v1100_v46, %s3239_s29 }
 0x5eb   :  { %v1006_v51 = vmul.f32 %v3001_v47, %v1001_v39 }
 0x5ec   :  { %v1101_v6 = vadd.f32 %v1099_v50, %v1091_v29  ;;  %v3218_v29 = vld [vmem:[#allocation2 + $0x30] sm:$0xff] }
 0x5ed   :  { %v1008_v45 = vadd.f32 %v1006_v51, %v3548_v12 }
 0x5ee   :  { %1107 = vst.msk [vmem:[#allocation3 + $0x18] sm:$0xff] %vm1105_vm6, %v1101_v6  ;;  %1112 = vrot.lane.b32.xlu1 %v1101_v6, %s3239_s29  ;;  %v3003_v52 = vpop.eup %3002  ;;  %v3219_v6 = vld [vmem:[#allocation2 + $0x38] sm:$0xff] }
 0x5ef   :  { %3006 = vtanh.f32 %v1008_v45  ;;  %v1007_v55 = vmul.f32 %v3003_v52, %v1003_v54  ;;  %v3220_v54 = vld [vmem:[#allocation2 + $0x40] sm:$0xff] }
 0x5f0   :  { %3008 = vrcp.f32 %v991_v8  ;;  %v3005_v56 = vpop.eup %3004 }
 0x5f1   :  { %v1009_v4 = vadd.f32 %v1007_v55, %v3553_v19  ;;  %v1012_v25 = vsub.f32 1.0, %v3005_v56  ;;  %v1024_v42 = vmul.f32 %v3005_v56, %v1019_v31 }
 0x5f3   :  { %3010 = vtanh.f32 %v1009_v4 }
 0x5fc   :  { %v3007_v9 = vpop.eup %3006 }
 0x5fd   :  { %v3009_v57 = vpop.eup %3008  ;;  %v1014_v60 = vmul.f32 %v3007_v9, %v1012_v25  ;;  %v3221_v9 = vld [vmem:[#allocation2 + $0x48] sm:$0xff] }
 0x5fe   :  { %v1013_v61 = vsub.f32 1.0, %v3009_v57  ;;  %v1025_v59 = vmul.f32 %v3009_v57, %v1021_v62 }
 0x5ff   :  { %v3660_v36 = vadd.f32 %v1024_v42, %v1014_v60 }
 0x600   :  { %v3011_v49 = vpop.eup %3010 }
 0x601   :  { %1103 = vst.msk [vmem:[#allocation3] sm:$0xff] %vm1102_vm7, %v3660_v36  ;;  %v1015_v63 = vmul.f32 %v3011_v49, %v1013_v61 }
 0x603   :  { %v1027_v2 = vadd.f32 %v1025_v59, %v1015_v63 }
 0x605   :  { %1104 = vst.msk [vmem:[#allocation3 + $0x8] sm:$0xff] %vm1102_vm7, %v1027_v2  ;;  %v1116_v3 = vpack.c.bf16 %v1027_v2, %v3660_v36 }
 0x607   :  { %1120 = vrot.lane.b32.xlu1 %v1116_v3, %s3240_s30 }
 0x65c   :  { %v1111_v30 = vpop.permute.xlu0 %1110 }
 0x660   :  { %v1113_v7 = vpop.permute.xlu1 %1112 }
 0x661   :  { %v1117_v0 = vpack.c.bf16 %v1113_v7, %v1111_v30 }
 0x663   :  { %1122 = vrot.lane.b32.xlu0 %v1117_v0, %s3240_s30 }
 0x679   :  { %v1121_v13 = vpop.permute.xlu1 %1120 }
 0x6d5   :  { %v1123_v35 = vpop.permute.xlu0 %1122 }
 0x6d6   :  { %2764 = vmatprep.subr.bf16.mxu0 %v1123_v35 }
 0x6d7   :  { %2765 = vmatpush3.bf16.msra.mxu0 %v1123_v35 }
 0x6d8   :  { %2766 = vmatprep.subr.bf16.mxu0 %v1121_v13 }
 0x6db   :  { %2767 = vmatpush3.bf16.msra.mxu0 %v1121_v13 }
 0x6de   :  { %2769 = vmatmul.mubr.msk.bf16.vlgmr.msra.gmra.mxu0 %vm160_vm0, %v3671_v15 }
 0x6df   :  { %2772 = vmatprep.mubr.msk.bf16.mxu0 %vm160_vm0, %v3678_v28 }
 0x6e6   :  { %2773 = vmatmul.mubr.msk.bf16.gmra.mxu0 %vm160_vm0, %v3685_v17 }
 0x6e7   :  { %2776 = vmatprep.mubr.msk.bf16.mxu0 %vm160_vm0, %v3692_v44 }
 0x6ee   :  { %2777 = vmatmul.mubr.msk.bf16.gmra.mxu0 %vm160_vm0, %v3699_v14 }
 0x6ef   :  { %2800 = vmatprep.mubr.msk.bf16.mxu0 %vm160_vm0, %v3706_v18 }
 0x79e   :  { %v2770_v20 = vpop.f32.mrf.mxu0 }
 0x7a0   :  { %v1160_v21 = vpop.f32.mrf.mxu0 }
 0x7a2   :  { %v2771_v22 = vpop.f32.mrf.mxu0 }
 0x7a4   :  { %v1163_v33 = vpop.f32.mrf.mxu0 }
 0x7a6   :  { %v2774_v23 = vpop.f32.mrf.mxu0 }
 0x7a7   :  { %1297 = vrot.lane.b32.xlu0 %v2774_v23, %s3237_s27 }
 0x7a8   :  { %v1176_v10 = vpop.f32.mrf.mxu0 }
 0x7a9   :  { %v1263_v26 = vadd.f32 %v1176_v10, %v3542_v27 }
 0x7aa   :  { %v2775_v34 = vpop.f32.mrf.mxu0 }
 0x7ab   :  { %1299 = vrot.lane.b32.xlu1 %v2775_v34, %s3237_s27 }
 0x7ac   :  { %v1179_v1 = vpop.f32.mrf.mxu0 }
 0x7ad   :  { %v1264_v16 = vadd.f32 %v1179_v1, %v3546_v11 }
 0x7ae   :  { %v2778_v37 = vpop.f32.mrf.mxu0 }
 0x7af   :  { %v1339_v32 = vadd.f32 %v2778_v37, %v3444_v53  ;;  %v3222_v37 = vld [vmem:[#allocation2 + $0x50] sm:$0xff] }
 0x7b0   :  { %v1192_v40 = vpop.f32.mrf.mxu0 }
 0x7b1   :  { %1319 = vrot.lane.b32.xlu0 %v1192_v40, %s3237_s27 }
 0x7b2   :  { %v2779_v48 = vpop.f32.mrf.mxu0 }
 0x7b3   :  { %v1340_v46 = vadd.f32 %v2779_v48, %v3454_v58 }
 0x7b4   :  { %v1195_v43 = vpop.f32.mrf.mxu0 }
 0x7b5   :  { %1343 = vrot.lane.b32.xlu0 %v1339_v32, %s3237_s27  ;;  %1321 = vrot.lane.b32.xlu1 %v1195_v43, %s3237_s27  ;;  %v3223_v43 = vld [vmem:[#allocation2 + $0x58] sm:$0xff] }
 0x7b9   :  { %1359 = vrot.lane.b32.xlu0 %v1111_v30, %s3238_s28  ;;  %1345 = vrot.lane.b32.xlu1 %v1340_v46, %s3237_s27 }
 0x7bd   :  { %1221 = vrot.lane.b32.xlu0 %v1160_v21, %s3241_s1  ;;  %1361 = vrot.lane.b32.xlu1 %v1113_v7, %s3238_s28 }
 0x7c1   :  { %1243 = vrot.lane.b32.xlu0 %v2770_v20, %s3241_s1  ;;  %1223 = vrot.lane.b32.xlu1 %v1163_v33, %s3241_s1 }
 0x7c5   :  { %1267 = vrot.lane.b32.xlu0 %v1263_v26, %s3241_s1  ;;  %1245 = vrot.lane.b32.xlu1 %v2771_v22, %s3241_s1 }
 0x7c9   :  { %1285 = vrot.lane.b32.xlu0 %v3660_v36, %s3233_s23  ;;  %1269 = vrot.lane.b32.xlu1 %v1264_v16, %s3241_s1 }
 0x7cd   :  { %1287 = vrot.lane.b32.xlu1 %v1027_v2, %s3233_s23 }
 0x819   :  { %v1298_v47 = vpop.permute.xlu0 %1297 }
 0x81a   :  { %v1303_v50 = vadd.f32 %v3218_v29, %v1298_v47 }
 0x81c   :  { %v2562_v39 = vmul.f32 -1.442695, %v1303_v50 }
 0x81d   :  { %v1300_v51 = vpop.permute.xlu1 %1299 }
 0x81e   :  { %3012 = vpow2.f32 %v2562_v39  ;;  %v1304_v8 = vadd.f32 %v3219_v6, %v1300_v51 }
 0x820   :  { %v2563_v45 = vmul.f32 -1.442695, %v1304_v8 }
 0x822   :  { %3014 = vpow2.f32 %v2563_v45 }
 0x823   :  { %v1320_v52 = vpop.permute.xlu0 %1319 }
 0x824   :  { %v1325_v55 = vadd.f32 %v3220_v54, %v1320_v52 }
 0x826   :  { %v2564_v4 = vmul.f32 -1.442695, %v1325_v55 }
 0x827   :  { %v1344_v56 = vpop.permute.xlu0 %1343  ;;  %v1322_v25 = vpop.permute.xlu1 %1321 }
 0x828   :  { %3016 = vpow2.f32 %v2564_v4  ;;  %v1326_v31 = vadd.f32 %v3221_v9, %v1322_v25 }
 0x82a   :  { %v2565_v57 = vmul.f32 -1.442695, %v1326_v31 }
 0x82b   :  { %v3013_v60 = vpop.eup %3012  ;;  %v1360_v42 = vpop.permute.xlu0 %1359 }
 0x82c   :  { %v1346_v36 = vpop.permute.xlu1 %1345  ;;  %v1311_v61 = vadd.f32 1.0, %v3013_v60  ;;  %3018 = vpow2.f32 %v2565_v57 }
 0x82e   :  { %3020 = vrcp.f32 %v1311_v61 }
 0x82f   :  { %v3015_v49 = vpop.eup %3014  ;;  %v1222_v62 = vpop.permute.xlu0 %1221 }
 0x830   :  { %v1362_v63 = vpop.permute.xlu1 %1361  ;;  %v1312_v59 = vadd.f32 1.0, %v3015_v49  ;;  %v1227_v2 = vadd.f32 %v1222_v62, %v3515_v5 }
 0x832   :  { %3022 = vrcp.f32 %v1312_v59  ;;  %v2558_v3 = vmul.f32 -1.442695, %v1227_v2 }
 0x833   :  { %v1244_v30 = vpop.permute.xlu0 %1243 }
 0x834   :  { %v1224_v7 = vpop.permute.xlu1 %1223  ;;  %3024 = vpow2.f32 %v2558_v3  ;;  %v1249_v13 = vadd.f32 %v1244_v30, %v3531_v41 }
 0x835   :  { %v1228_v0 = vadd.f32 %v1224_v7, %v3525_v24  ;;  %v3017_v35 = vpop.eup %3016 }
 0x836   :  { %v1333_v21 = vadd.f32 1.0, %v3017_v35  ;;  %v2560_v23 = vmul.f32 -1.442695, %v1249_v13 }
 0x837   :  { %v2559_v20 = vmul.f32 -1.442695, %v1228_v0  ;;  %v1268_v31 = vpop.permute.xlu0 %1267 }
 0x838   :  { %v1246_v22 = vpop.permute.xlu1 %1245 }
 0x839   :  { %v3019_v33 = vpop.eup %3018  ;;  %3026 = vpow2.f32 %v2559_v20  ;;  %v1250_v5 = vadd.f32 %v1246_v22, %v3536_v38 }
 0x83a   :  { %v1334_v34 = vadd.f32 1.0, %v3019_v33  ;;  %3028 = vrcp.f32 %v1333_v21 }
 0x83b   :  { %v3021_v10 = vpop.eup %3020  ;;  %3030 = vpow2.f32 %v2560_v23  ;;  %v2561_v24 = vmul.f32 -1.442695, %v1250_v5  ;;  %v1286_v30 = vpop.permute.xlu0 %1285 }
 0x83c   :  { %v1349_v1 = vmul.f32 %v3021_v10, %v1344_v56  ;;  %3032 = vrcp.f32 %v1334_v34  ;;  %v1270_v49 = vpop.permute.xlu1 %1269 }
 0x83e   :  { %v1351_v40 = vadd.f32 %v3222_v37, %v1349_v1 }
 0x83f   :  { %v3023_v48 = vpop.eup %3022 }
 0x840   :  { %3034 = vtanh.f32 %v1351_v40  ;;  %v1350_v41 = vmul.f32 %v3023_v48, %v1346_v36  ;;  %v1288_v21 = vpop.permute.xlu1 %1287 }
 0x841   :  { %v3025_v32 = vpop.eup %3024  ;;  %3036 = vpow2.f32 %v2561_v24 }
 0x842   :  { %v1352_v46 = vadd.f32 %v3223_v43, %v1350_v41  ;;  %v1235_v26 = vadd.f32 1.0, %v3025_v32 }
 0x844   :  { %3038 = vtanh.f32 %v1352_v46 }
 0x845   :  { %3040 = vrcp.f32 %v1235_v26 }
 0x846   :  { %v3027_v16 = vpop.eup %3026 }
 0x847   :  { %v1236_v47 = vadd.f32 1.0, %v3027_v16  ;;  %v3029_v38 = vpop.eup %3028 }
 0x848   :  { %v3031_v29 = vpop.eup %3030  ;;  %v1355_v39 = vsub.f32 1.0, %v3029_v38  ;;  %v1365_v8 = vmul.f32 %v3029_v38, %v1360_v42 }
 0x849   :  { %3042 = vrcp.f32 %v1236_v47  ;;  %v3033_v50 = vpop.eup %3032  ;;  %v1257_v45 = vadd.f32 1.0, %v3031_v29 }
 0x84a   :  { %v1356_v55 = vsub.f32 1.0, %v3033_v50  ;;  %v1366_v9 = vmul.f32 %v3033_v50, %v1362_v63 }
 0x84b   :  { %3044 = vrcp.f32 %v1257_v45 }
 0x84d   :  { %v3035_v51 = vpop.eup %3034 }
 0x84e   :  { %v1357_v6 = vmul.f32 %v3035_v51, %v1355_v39  ;;  %v3037_v52 = vpop.eup %3036 }
 0x84f   :  { %v1258_v36 = vadd.f32 1.0, %v3037_v52 }
 0x850   :  { %v1367_v54 = vadd.f32 %v1365_v8, %v1357_v6  ;;  %v3781_v8 = vld [vmem:[#allocation2 + $0x30] sm:$0xff] }
 0x851   :  { %v3039_v4 = vpop.eup %3038 }
 0x852   :  { %v3041_v56 = vpop.eup %3040  ;;  %1373 = vst.msk [vmem:[#allocation3 + $0x10] sm:$0xff] %vm1372_vm8, %v1367_v54  ;;  %v1358_v25 = vmul.f32 %v3039_v4, %v1356_v55  ;;  %1377 = vrot.lane.b32.xlu0 %v1367_v54, %s3235_s25  ;;  %v3784_v55 = vld [vmem:[#allocation2 + $0x38] sm:$0xff] }
 0x853   :  { %v1273_v57 = vmul.f32 %v3041_v56, %v1268_v31 }
 0x854   :  { %v1368_v60 = vadd.f32 %v1366_v9, %v1358_v25  ;;  %v3787_v9 = vld [vmem:[#allocation2 + $0x40] sm:$0xff] }
 0x855   :  { %v1275_v42 = vadd.f32 %v1273_v57, %v3548_v12 }
 0x856   :  { %1374 = vst.msk [vmem:[#allocation3 + $0x18] sm:$0xff] %vm1372_vm8, %v1368_v60  ;;  %1379 = vrot.lane.b32.xlu1 %v1368_v60, %s3235_s25  ;;  %v3043_v61 = vpop.eup %3042 }
 0x857   :  { %3046 = vtanh.f32 %v1275_v42  ;;  %v1274_v62 = vmul.f32 %v3043_v61, %v1270_v49  ;;  %v3790_v42 = vld [vmem:[#allocation2 + $0x48] sm:$0xff] }
 0x858   :  { %3048 = vrcp.f32 %v1258_v36  ;;  %v3045_v59 = vpop.eup %3044 }
 0x859   :  { %v1276_v63 = vadd.f32 %v1274_v62, %v3553_v19  ;;  %v1279_v2 = vsub.f32 1.0, %v3045_v59  ;;  %v1291_v35 = vmul.f32 %v3045_v59, %v1286_v30  ;;  %v3793_v59 = vld [vmem:[#allocation2] sm:$0xff] }
 0x85b   :  { %3050 = vtanh.f32 %v1276_v63 }
 0x864   :  { %v3047_v3 = vpop.eup %3046 }
 0x865   :  { %v3049_v7 = vpop.eup %3048  ;;  %v1281_v0 = vmul.f32 %v3047_v3, %v1279_v2 }
 0x866   :  { %v1280_v13 = vsub.f32 1.0, %v3049_v7  ;;  %v1292_v33 = vmul.f32 %v3049_v7, %v1288_v21 }
 0x867   :  { %v1293_v12 = vadd.f32 %v1291_v35, %v1281_v0 }
 0x868   :  { %v3051_v20 = vpop.eup %3050 }
 0x869   :  { %1370 = vst.msk [vmem:[#allocation3] sm:$0xff] %vm1369_vm9, %v1293_v12  ;;  %v1282_v22 = vmul.f32 %v3051_v20, %v1280_v13 }
 0x86b   :  { %v1294_v23 = vadd.f32 %v1292_v33, %v1282_v22  ;;  %v3799_v33 = vld [vmem:[#allocation2 + $0x10] sm:$0xff] }
 0x86d   :  { %1371 = vst.msk [vmem:[#allocation3 + $0x8] sm:$0xff] %vm1369_vm9, %v1294_v23  ;;  %v1383_v19 = vpack.c.bf16 %v1294_v23, %v1293_v12 }
 0x86f   :  { %1387 = vrot.lane.b32.xlu1 %v1383_v19, %s3239_s29 }
 0x8c4   :  { %v3744_v10 = vpop.permute.xlu0 %1377 }
 0x8c8   :  { %v3746_v34 = vpop.permute.xlu1 %1379 }
 0x8c9   :  { %v1384_v5 = vpack.c.bf16 %v3746_v34, %v3744_v10 }
 0x8cb   :  { %1389 = vrot.lane.b32.xlu0 %v1384_v5, %s3239_s29 }
 0x8e1   :  { %v1388_v37 = vpop.permute.xlu1 %1387 }
 0x93d   :  { %v1390_v1 = vpop.permute.xlu0 %1389 }
 0x93e   :  { %2780 = vmatprep.subr.bf16.mxu1 %v1390_v1 }
 0x93f   :  { %2781 = vmatpush3.bf16.msra.mxu1 %v1390_v1 }
 0x940   :  { %2782 = vmatprep.subr.bf16.mxu1 %v1388_v37 }
 0x943   :  { %2783 = vmatpush3.bf16.msra.mxu1 %v1388_v37  ;;  %v3802_v37 = vld [vmem:[#allocation2 + $0x18] sm:$0xff] }
 0x946   :  { %2785 = vmatmul.mubr.msk.bf16.vlgmr.msra.gmra.mxu1 %vm160_vm0, %v3671_v15 }
 0x947   :  { %2788 = vmatprep.mubr.msk.bf16.mxu1 %vm160_vm0, %v3678_v28 }
 0x94e   :  { %2789 = vmatmul.mubr.msk.bf16.gmra.mxu1 %vm160_vm0, %v3685_v17 }
 0x94f   :  { %2792 = vmatprep.mubr.msk.bf16.mxu1 %vm160_vm0, %v3692_v44 }
 0x956   :  { %2793 = vmatmul.mubr.msk.bf16.gmra.mxu1 %vm160_vm0, %v3699_v14 }
 0x957   :  { %2816 = vmatprep.mubr.msk.bf16.mxu1 %vm160_vm0, %v3706_v18 }
 0xa06   :  { %v2786_v40 = vpop.f32.mrf.mxu1 }
 0xa08   :  { %v1427_v48 = vpop.f32.mrf.mxu1 }
 0xa0a   :  { %v2787_v24 = vpop.f32.mrf.mxu1 }
 0xa0c   :  { %v1430_v41 = vpop.f32.mrf.mxu1 }
 0xa0e   :  { %v2790_v32 = vpop.f32.mrf.mxu1 }
 0xa0f   :  { %1564 = vrot.lane.b32.xlu0 %v2790_v32, %s3241_s1 }
 0xa10   :  { %v1443_v43 = vpop.f32.mrf.mxu1 }
 0xa11   :  { %v1530_v51 = vadd.f32 %v1443_v43, %v3542_v27 }
 0xa12   :  { %v2791_v46 = vpop.f32.mrf.mxu1 }
 0xa13   :  { %1566 = vrot.lane.b32.xlu1 %v2791_v46, %s3241_s1 }
 0xa14   :  { %v1446_v26 = vpop.f32.mrf.mxu1 }
 0xa15   :  { %v1531_v6 = vadd.f32 %v1446_v26, %v3546_v11 }
 0xa16   :  { %v2794_v16 = vpop.f32.mrf.mxu1 }
 0xa17   :  { %v1606_v29 = vadd.f32 %v2794_v16, %v3444_v53 }
 0xa18   :  { %v1459_v47 = vpop.f32.mrf.mxu1 }
 0xa19   :  { %1586 = vrot.lane.b32.xlu0 %v1459_v47, %s3241_s1  ;;  %v3805_v47 = vld [vmem:[#allocation2 + $0x50] sm:$0xff] }
 0xa1a   :  { %v2795_v38 = vpop.f32.mrf.mxu1 }
 0xa1b   :  { %v1607_v39 = vadd.f32 %v2795_v38, %v3454_v58 }
 0xa1c   :  { %v1462_v50 = vpop.f32.mrf.mxu1 }
 0xa1d   :  { %1610 = vrot.lane.b32.xlu0 %v1606_v29, %s3241_s1  ;;  %1588 = vrot.lane.b32.xlu1 %v1462_v50, %s3241_s1 }
 0xa21   :  { %1488 = vrot.lane.b32.xlu0 %v1427_v48, %s3237_s27  ;;  %1612 = vrot.lane.b32.xlu1 %v1607_v39, %s3241_s1 }
 0xa25   :  { %1510 = vrot.lane.b32.xlu0 %v2786_v40, %s3237_s27  ;;  %1490 = vrot.lane.b32.xlu1 %v1430_v41, %s3237_s27 }
 0xa29   :  { %1534 = vrot.lane.b32.xlu0 %v1530_v51, %s3237_s27  ;;  %1512 = vrot.lane.b32.xlu1 %v2787_v24, %s3237_s27  ;;  %v3808_v51 = vld [vmem:[#allocation2 + $0x58] sm:$0xff] }
 0xa2d   :  { %1552 = vrot.lane.b32.xlu0 %v1293_v12, %s3233_s23  ;;  %1536 = vrot.lane.b32.xlu1 %v1531_v6, %s3237_s27  ;;  %v3796_v12 = vld [vmem:[#allocation2 + $0x8] sm:$0xff] }
 0xa31   :  { %1554 = vrot.lane.b32.xlu1 %v1294_v23, %s3233_s23 }
 0xa81   :  { %v1565_v45 = vpop.permute.xlu0 %1564 }
 0xa82   :  { %v1570_v52 = vadd.f32 %v1565_v45, %v3781_v8 }
 0xa84   :  { %v2576_v54 = vmul.f32 -1.442695, %v1570_v52 }
 0xa85   :  { %v1567_v4 = vpop.permute.xlu1 %1566 }
 0xa86   :  { %3052 = vpow2.f32 %v2576_v54  ;;  %v1571_v56 = vadd.f32 %v1567_v4, %v3784_v55 }
 0xa88   :  { %v2577_v25 = vmul.f32 -1.442695, %v1571_v56 }
 0xa8a   :  { %3054 = vpow2.f32 %v2577_v25 }
 0xa8b   :  { %v1587_v31 = vpop.permute.xlu0 %1586 }
 0xa8c   :  { %v1592_v57 = vadd.f32 %v1587_v31, %v3787_v9 }
 0xa8e   :  { %v2578_v60 = vmul.f32 -1.442695, %v1592_v57 }
 0xa8f   :  { %v1611_v36 = vpop.permute.xlu0 %1610  ;;  %v1589_v61 = vpop.permute.xlu1 %1588 }
 0xa90   :  { %3056 = vpow2.f32 %v2578_v60  ;;  %v1593_v49 = vadd.f32 %v1589_v61, %v3790_v42 }
 0xa92   :  { %v2579_v62 = vmul.f32 -1.442695, %v1593_v49 }
 0xa93   :  { %v3053_v63 = vpop.eup %3052  ;;  %v1489_v2 = vpop.permute.xlu0 %1488 }
 0xa94   :  { %v1613_v3 = vpop.permute.xlu1 %1612  ;;  %v1578_v30 = vadd.f32 1.0, %v3053_v63  ;;  %3058 = vpow2.f32 %v2579_v62  ;;  %v1494_v7 = vadd.f32 %v1489_v2, %v3793_v59  ;;  %v3812_v2 = vld [vmem:[#allocation2 + $0x20] sm:$0xff] }
 0xa96   :  { %3060 = vrcp.f32 %v1578_v30  ;;  %v2572_v0 = vmul.f32 -1.442695, %v1494_v7 }
 0xa97   :  { %v3055_v35 = vpop.eup %3054  ;;  %v1511_v21 = vpop.permute.xlu0 %1510 }
 0xa98   :  { %v1491_v13 = vpop.permute.xlu1 %1490  ;;  %v1579_v20 = vadd.f32 1.0, %v3055_v35  ;;  %3062 = vpow2.f32 %v2572_v0  ;;  %v1516_v19 = vadd.f32 %v1511_v21, %v3799_v33 }
 0xa99   :  { %v1495_v22 = vadd.f32 %v1491_v13, %v3796_v12 }
 0xa9a   :  { %3064 = vrcp.f32 %v1579_v20  ;;  %v2574_v48 = vmul.f32 -1.442695, %v1516_v19  ;;  %v3818_v19 = vld [vmem:[#allocation2 + $0x28] sm:$0xff] }
 0xa9b   :  { %v2573_v23 = vmul.f32 -1.442695, %v1495_v22  ;;  %v1535_v61 = vpop.permute.xlu0 %1534 }
 0xa9c   :  { %v1513_v5 = vpop.permute.xlu1 %1512 }
 0xa9d   :  { %v3057_v1 = vpop.eup %3056  ;;  %3066 = vpow2.f32 %v2573_v23  ;;  %v1517_v40 = vadd.f32 %v1513_v5, %v3802_v37 }
 0xa9e   :  { %v1600_v24 = vadd.f32 1.0, %v3057_v1  ;;  %3068 = vpow2.f32 %v2574_v48 }
 0xa9f   :  { %v2575_v32 = vmul.f32 -1.442695, %v1517_v40 }
 0xaa0   :  { %3070 = vrcp.f32 %v1600_v24  ;;  %v1553_v24 = vpop.permute.xlu0 %1552 }
 0xaa1   :  { %v3059_v41 = vpop.eup %3058  ;;  %3072 = vpow2.f32 %v2575_v32 }
 0xaa2   :  { %v1601_v46 = vadd.f32 1.0, %v3059_v41 }
 0xaa3   :  { %v3061_v43 = vpop.eup %3060 }
 0xaa4   :  { %v1616_v26 = vmul.f32 %v3061_v43, %v1611_v36  ;;  %3074 = vrcp.f32 %v1601_v46 }
 0xaa5   :  { %v3063_v16 = vpop.eup %3062 }
 0xaa6   :  { %v1618_v38 = vadd.f32 %v1616_v26, %v3805_v47  ;;  %v1502_v29 = vadd.f32 1.0, %v3063_v16 }
 0xaa7   :  { %v3065_v50 = vpop.eup %3064 }
 0xaa8   :  { %3076 = vtanh.f32 %v1618_v38  ;;  %v1617_v39 = vmul.f32 %v3065_v50, %v1613_v3 }
 0xaa9   :  { %3078 = vrcp.f32 %v1502_v29 }
 0xaaa   :  { %v3067_v6 = vpop.eup %3066  ;;  %v1619_v45 = vadd.f32 %v1617_v39, %v3808_v51 }
 0xaab   :  { %v1503_v52 = vadd.f32 1.0, %v3067_v6  ;;  %v3069_v54 = vpop.eup %3068 }
 0xaac   :  { %3080 = vtanh.f32 %v1619_v45  ;;  %v1524_v25 = vadd.f32 1.0, %v3069_v54 }
 0xaad   :  { %3082 = vrcp.f32 %v1503_v52  ;;  %v3071_v4 = vpop.eup %3070 }
 0xaae   :  { %v3073_v56 = vpop.eup %3072  ;;  %v1622_v57 = vsub.f32 1.0, %v3071_v4  ;;  %v1626_v62 = vmul.f32 %v3071_v4, %v3744_v10  ;;  %3084 = vrcp.f32 %v1524_v25  ;;  %v1537_v10 = vpop.permute.xlu1 %1536 }
 0xaaf   :  { %v1525_v3 = vadd.f32 1.0, %v3073_v56 }
 0xab1   :  { %v3075_v31 = vpop.eup %3074 }
 0xab2   :  { %v1623_v7 = vsub.f32 1.0, %v3075_v31  ;;  %v1627_v20 = vmul.f32 %v3075_v31, %v3746_v34  ;;  %v1555_v16 = vpop.permute.xlu1 %1554 }
 0xab5   :  { %v3077_v60 = vpop.eup %3076 }
 0xab6   :  { %v3079_v36 = vpop.eup %3078  ;;  %v1624_v49 = vmul.f32 %v3077_v60, %v1622_v57 }
 0xab7   :  { %v1540_v63 = vmul.f32 %v3079_v36, %v1535_v61 }
 0xab8   :  { %v1628_v30 = vadd.f32 %v1626_v62, %v1624_v49 }
 0xab9   :  { %v3081_v0 = vpop.eup %3080  ;;  %v1542_v35 = vadd.f32 %v1540_v63, %v3812_v2 }
 0xaba   :  { %1636 = vrot.lane.b32.xlu0 %v1628_v30, %s3233_s23  ;;  %1632 = vst.msk [vmem:[#allocation3 + $0x10] sm:$0xff] %vm1369_vm9, %v1628_v30  ;;  %v1625_v13 = vmul.f32 %v3081_v0, %v1623_v7  ;;  %v3083_v21 = vpop.eup %3082 }
 0xabb   :  { %3086 = vtanh.f32 %v1542_v35  ;;  %v1541_v22 = vmul.f32 %v3083_v21, %v1537_v10  ;;  %v3085_v1 = vpop.eup %3084 }
 0xabc   :  { %3088 = vrcp.f32 %v1525_v3  ;;  %v1629_v23 = vadd.f32 %v1627_v20, %v1625_v13  ;;  %v1546_v40 = vsub.f32 1.0, %v3085_v1  ;;  %v1558_v32 = vmul.f32 %v3085_v1, %v1553_v24 }
 0xabd   :  { %v1543_v5 = vadd.f32 %v1541_v22, %v3818_v19 }
 0xabe   :  { %1638 = vrot.lane.b32.xlu1 %v1629_v23, %s3233_s23  ;;  %1633 = vst.msk [vmem:[#allocation3 + $0x18] sm:$0xff] %vm1369_vm9, %v1629_v23 }
 0xabf   :  { %3090 = vtanh.f32 %v1543_v5 }
 0xac8   :  { %v3087_v48 = vpop.eup %3086 }
 0xac9   :  { %v3089_v34 = vpop.eup %3088  ;;  %v1548_v41 = vmul.f32 %v3087_v48, %v1546_v40 }
 0xaca   :  { %v1547_v46 = vsub.f32 1.0, %v3089_v34  ;;  %v1559_v29 = vmul.f32 %v3089_v34, %v1555_v16 }
 0xacb   :  { %v1560_v43 = vadd.f32 %v1558_v32, %v1548_v41 }
 0xacc   :  { %v3091_v26 = vpop.eup %3090 }
 0xacd   :  { %1630 = vst.msk [vmem:[#allocation3] sm:$0xff] %vm1372_vm8, %v1560_v43  ;;  %v1549_v38 = vmul.f32 %v3091_v26, %v1547_v46 }
 0xacf   :  { %v1561_v50 = vadd.f32 %v1559_v29, %v1549_v38 }
 0xad1   :  { %1631 = vst.msk [vmem:[#allocation3 + $0x8] sm:$0xff] %vm1372_vm8, %v1561_v50  ;;  %v1642_v39 = vpack.c.bf16 %v1561_v50, %v1560_v43 }
 0xad3   :  { %1646 = vrot.lane.b32.xlu1 %v1642_v39, %s3242_s20 }
 0xb2c   :  { %v1637_v6 = vpop.permute.xlu0 %1636 }
 0xb30   :  { %v1639_v45 = vpop.permute.xlu1 %1638 }
 0xb31   :  { %v1643_v52 = vpack.c.bf16 %v1639_v45, %v1637_v6 }
 0xb33   :  { %1648 = vrot.lane.b32.xlu0 %v1643_v52, %s3242_s20 }
 0xb45   :  { %v1647_v4 = vpop.permute.xlu1 %1646 }
 0xba5   :  { %v1649_v54 = vpop.permute.xlu0 %1648 }
 0xba6   :  { %2796 = vmatprep.subr.bf16.mxu0 %v1649_v54 }
 0xba7   :  { %2797 = vmatpush3.bf16.msra.mxu0 %v1649_v54 }
 0xba8   :  { %2798 = vmatprep.subr.bf16.mxu0 %v1647_v4 }
 0xbab   :  { %2799 = vmatpush3.bf16.msra.mxu0 %v1647_v4 }
 0xbae   :  { %2801 = vmatmul.mubr.msk.bf16.vlgmr.msra.gmra.mxu0 %vm160_vm0, %v3671_v15 }
 0xbaf   :  { %2804 = vmatprep.mubr.msk.bf16.mxu0 %vm160_vm0, %v3678_v28 }
 0xbb6   :  { %2805 = vmatmul.mubr.msk.bf16.gmra.mxu0 %vm160_vm0, %v3685_v17 }
 0xbb7   :  { %2808 = vmatprep.mubr.msk.bf16.mxu0 %vm160_vm0, %v3692_v44 }
 0xbbe   :  { %2809 = vmatmul.mubr.msk.bf16.gmra.mxu0 %vm160_vm0, %v3699_v14 }
 0xbbf   :  { %2832 = vmatprep.mubr.msk.bf16.mxu0 %vm160_vm0, %v3706_v18 }
 0xc6e   :  { %v2802_v56 = vpop.f32.mrf.mxu0 }
 0xc70   :  { %v1686_v25 = vpop.f32.mrf.mxu0 }
 0xc72   :  { %v2803_v31 = vpop.f32.mrf.mxu0 }
 0xc74   :  { %v1689_v57 = vpop.f32.mrf.mxu0 }
 0xc76   :  { %v2806_v60 = vpop.f32.mrf.mxu0 }
 0xc77   :  { %1823 = vrot.lane.b32.xlu0 %v2806_v60, %s3238_s28 }
 0xc78   :  { %v1702_v36 = vpop.f32.mrf.mxu0 }
 0xc79   :  { %v1789_v0 = vadd.f32 %v1702_v36, %v3542_v27 }
 0xc7a   :  { %v2807_v61 = vpop.f32.mrf.mxu0 }
 0xc7b   :  { %1825 = vrot.lane.b32.xlu1 %v2807_v61, %s3238_s28 }
 0xc7c   :  { %v1705_v49 = vpop.f32.mrf.mxu0 }
 0xc7d   :  { %v1790_v35 = vadd.f32 %v1705_v49, %v3546_v11 }
 0xc7e   :  { %v2810_v62 = vpop.f32.mrf.mxu0 }
 0xc7f   :  { %v1865_v30 = vadd.f32 %v2810_v62, %v3444_v53 }
 0xc80   :  { %v1718_v63 = vpop.f32.mrf.mxu0 }
 0xc81   :  { %1845 = vrot.lane.b32.xlu0 %v1718_v63, %s3238_s28 }
 0xc82   :  { %v2811_v3 = vpop.f32.mrf.mxu0 }
 0xc83   :  { %v1866_v7 = vadd.f32 %v2811_v3, %v3454_v58 }
 0xc84   :  { %v1721_v18 = vpop.f32.mrf.mxu0 }
 0xc85   :  { %1869 = vrot.lane.b32.xlu0 %v1865_v30, %s3238_s28  ;;  %1847 = vrot.lane.b32.xlu1 %v1721_v18, %s3238_s28 }
 0xc89   :  { %1885 = vrot.lane.b32.xlu0 %v1637_v6, %s3240_s30  ;;  %1871 = vrot.lane.b32.xlu1 %v1866_v7, %s3238_s28 }
 0xc8d   :  { %1747 = vrot.lane.b32.xlu0 %v1686_v25, %s3236_s26  ;;  %1887 = vrot.lane.b32.xlu1 %v1639_v45, %s3240_s30 }
 0xc91   :  { %1769 = vrot.lane.b32.xlu0 %v2802_v56, %s3236_s26  ;;  %1749 = vrot.lane.b32.xlu1 %v1689_v57, %s3236_s26 }
 0xc95   :  { %1793 = vrot.lane.b32.xlu0 %v1789_v0, %s3236_s26  ;;  %1771 = vrot.lane.b32.xlu1 %v2803_v31, %s3236_s26 }
 0xc99   :  { %1811 = vrot.lane.b32.xlu0 %v1560_v43, %s3233_s23  ;;  %1795 = vrot.lane.b32.xlu1 %v1790_v35, %s3236_s26 }
 0xc9d   :  { %1813 = vrot.lane.b32.xlu1 %v1561_v50, %s3233_s23 }
 0xce9   :  { %v1824_v13 = vpop.permute.xlu0 %1823 }
 0xcea   :  { %v1829_v20 = vadd.f32 %v1824_v13, %v3781_v8 }
 0xcec   :  { %v2590_v21 = vmul.f32 -1.442695, %v1829_v20 }
 0xced   :  { %v1826_v10 = vpop.permute.xlu1 %1825 }
 0xcee   :  { %3092 = vpow2.f32 %v2590_v21  ;;  %v1830_v22 = vadd.f32 %v1826_v10, %v3784_v55 }
 0xcf0   :  { %v2591_v23 = vmul.f32 -1.442695, %v1830_v22 }
 0xcf2   :  { %3094 = vpow2.f32 %v2591_v23 }
 0xcf3   :  { %v1846_v5 = vpop.permute.xlu0 %1845 }
 0xcf4   :  { %v1851_v1 = vadd.f32 %v1846_v5, %v3787_v9 }
 0xcf6   :  { %v2592_v40 = vmul.f32 -1.442695, %v1851_v1 }
 0xcf7   :  { %v1870_v48 = vpop.permute.xlu0 %1869  ;;  %v1848_v24 = vpop.permute.xlu1 %1847 }
 0xcf8   :  { %3096 = vpow2.f32 %v2592_v40  ;;  %v1852_v34 = vadd.f32 %v1848_v24, %v3790_v42 }
 0xcfa   :  { %v2593_v41 = vmul.f32 -1.442695, %v1852_v34 }
 0xcfb   :  { %v3093_v32 = vpop.eup %3092  ;;  %v1886_v43 = vpop.permute.xlu0 %1885 }
 0xcfc   :  { %v1872_v46 = vpop.permute.xlu1 %1871  ;;  %v1837_v26 = vadd.f32 1.0, %v3093_v32  ;;  %3098 = vpow2.f32 %v2593_v41 }
 0xcfe   :  { %3100 = vrcp.f32 %v1837_v26 }
 0xcff   :  { %v3095_v16 = vpop.eup %3094  ;;  %v1748_v38 = vpop.permute.xlu0 %1747 }
 0xd00   :  { %v1888_v29 = vpop.permute.xlu1 %1887  ;;  %v1838_v50 = vadd.f32 1.0, %v3095_v16  ;;  %v1753_v39 = vadd.f32 %v1748_v38, %v3793_v59 }
 0xd02   :  { %3102 = vrcp.f32 %v1838_v50  ;;  %v2586_v6 = vmul.f32 -1.442695, %v1753_v39 }
 0xd03   :  { %v1770_v45 = vpop.permute.xlu0 %1769 }
 0xd04   :  { %v1750_v52 = vpop.permute.xlu1 %1749  ;;  %3104 = vpow2.f32 %v2586_v6  ;;  %v1775_v56 = vadd.f32 %v1770_v45, %v3799_v33 }
 0xd05   :  { %v1754_v54 = vadd.f32 %v1750_v52, %v3796_v12  ;;  %v3097_v4 = vpop.eup %3096 }
 0xd06   :  { %v1859_v31 = vadd.f32 1.0, %v3097_v4  ;;  %v2588_v36 = vmul.f32 -1.442695, %v1775_v56 }
 0xd07   :  { %v2587_v25 = vmul.f32 -1.442695, %v1754_v54  ;;  %v1794_v50 = vpop.permute.xlu0 %1793 }
 0xd08   :  { %v1772_v57 = vpop.permute.xlu1 %1771 }
 0xd09   :  { %v3099_v60 = vpop.eup %3098  ;;  %3106 = vpow2.f32 %v2587_v25  ;;  %v1776_v62 = vadd.f32 %v1772_v57, %v3802_v37 }
 0xd0a   :  { %v1860_v49 = vadd.f32 1.0, %v3099_v60  ;;  %3108 = vrcp.f32 %v1859_v31 }
 0xd0b   :  { %v3101_v61 = vpop.eup %3100  ;;  %3110 = vpow2.f32 %v2588_v36  ;;  %v2589_v18 = vmul.f32 -1.442695, %v1776_v62  ;;  %v1812_v57 = vpop.permute.xlu0 %1811 }
 0xd0c   :  { %v1875_v63 = vmul.f32 %v3101_v61, %v1870_v48  ;;  %3112 = vrcp.f32 %v1860_v49  ;;  %v1796_v54 = vpop.permute.xlu1 %1795 }
 0xd0e   :  { %v1877_v3 = vadd.f32 %v1875_v63, %v3805_v47 }
 0xd0f   :  { %v3103_v30 = vpop.eup %3102 }
 0xd10   :  { %3114 = vtanh.f32 %v1877_v3  ;;  %v1876_v7 = vmul.f32 %v3103_v30, %v1872_v46  ;;  %v1814_v3 = vpop.permute.xlu1 %1813 }
 0xd11   :  { %v3105_v0 = vpop.eup %3104  ;;  %3116 = vpow2.f32 %v2589_v18 }
 0xd12   :  { %v1878_v35 = vadd.f32 %v1876_v7, %v3808_v51  ;;  %v1761_v13 = vadd.f32 1.0, %v3105_v0 }
 0xd14   :  { %3118 = vtanh.f32 %v1878_v35 }
 0xd15   :  { %3120 = vrcp.f32 %v1761_v13 }
 0xd16   :  { %v3107_v20 = vpop.eup %3106 }
 0xd17   :  { %v1762_v21 = vadd.f32 1.0, %v3107_v20  ;;  %v3109_v10 = vpop.eup %3108 }
 0xd18   :  { %v3111_v22 = vpop.eup %3110  ;;  %v1881_v5 = vsub.f32 1.0, %v3109_v10  ;;  %v1891_v48 = vmul.f32 %v3109_v10, %v1886_v43 }
 0xd19   :  { %3122 = vrcp.f32 %v1762_v21  ;;  %v3113_v23 = vpop.eup %3112  ;;  %v1783_v24 = vadd.f32 1.0, %v3111_v22 }
 0xd1a   :  { %v1882_v32 = vsub.f32 1.0, %v3113_v23  ;;  %v1892_v38 = vmul.f32 %v3113_v23, %v1888_v29 }
 0xd1b   :  { %3124 = vrcp.f32 %v1783_v24 }
 0xd1d   :  { %v3115_v1 = vpop.eup %3114 }
 0xd1e   :  { %v1883_v40 = vmul.f32 %v3115_v1, %v1881_v5  ;;  %v3117_v34 = vpop.eup %3116 }
 0xd1f   :  { %v1784_v45 = vadd.f32 1.0, %v3117_v34 }
 0xd20   :  { %v1893_v41 = vadd.f32 %v1891_v48, %v1883_v40 }
 0xd21   :  { %v3119_v46 = vpop.eup %3118 }
 0xd22   :  { %v3121_v26 = vpop.eup %3120  ;;  %1897 = vst.msk [vmem:[#allocation3 + $0x10] sm:$0xff] %vm1102_vm7, %v1893_v41  ;;  %v1884_v16 = vmul.f32 %v3119_v46, %v1882_v32  ;;  %1901 = vrot.lane.b32.xlu0 %v1893_v41, %s3241_s1 }
 0xd23   :  { %v1799_v39 = vmul.f32 %v3121_v26, %v1794_v50 }
 0xd24   :  { %v1894_v6 = vadd.f32 %v1892_v38, %v1884_v16 }
 0xd25   :  { %v1801_v52 = vadd.f32 %v1799_v39, %v3812_v2 }
 0xd26   :  { %1898 = vst.msk [vmem:[#allocation3 + $0x18] sm:$0xff] %vm1102_vm7, %v1894_v6  ;;  %1903 = vrot.lane.b32.xlu1 %v1894_v6, %s3241_s1  ;;  %v3123_v43 = vpop.eup %3122 }
 0xd27   :  { %3126 = vtanh.f32 %v1801_v52  ;;  %v1800_v4 = vmul.f32 %v3123_v43, %v1796_v54 }
 0xd28   :  { %3128 = vrcp.f32 %v1784_v45  ;;  %v3125_v56 = vpop.eup %3124 }
 0xd29   :  { %v1802_v29 = vadd.f32 %v1800_v4, %v3818_v19  ;;  %v1805_v25 = vsub.f32 1.0, %v3125_v56  ;;  %v1817_v61 = vmul.f32 %v3125_v56, %v1812_v57 }
 0xd2b   :  { %3130 = vtanh.f32 %v1802_v29 }
 0xd34   :  { %v3127_v31 = vpop.eup %3126 }
 0xd35   :  { %v3129_v60 = vpop.eup %3128  ;;  %v1807_v36 = vmul.f32 %v3127_v31, %v1805_v25 }
 0xd36   :  { %v1806_v62 = vsub.f32 1.0, %v3129_v60  ;;  %v1818_v18 = vmul.f32 %v3129_v60, %v1814_v3 }
 0xd37   :  { %v1819_v49 = vadd.f32 %v1817_v61, %v1807_v36 }
 0xd38   :  { %v3131_v63 = vpop.eup %3130 }
 0xd39   :  { %1895 = vst.msk [vmem:[#allocation3] sm:$0xff] %vm1105_vm6, %v1819_v49  ;;  %v1808_v30 = vmul.f32 %v3131_v63, %v1806_v62 }
 0xd3b   :  { %v1820_v7 = vadd.f32 %v1818_v18, %v1808_v30 }
 0xd3d   :  { %1896 = vst.msk [vmem:[#allocation3 + $0x8] sm:$0xff] %vm1105_vm6, %v1820_v7  ;;  %v1907_v0 = vpack.c.bf16 %v1820_v7, %v1819_v49 }
 0xd3f   :  { %1911 = vrot.lane.b32.xlu1 %v1907_v0, %s3234_s24 }
 0xd94   :  { %v1902_v35 = vpop.permute.xlu0 %1901 }
 0xd98   :  { %v1904_v13 = vpop.permute.xlu1 %1903 }
 0xd99   :  { %v1908_v20 = vpack.c.bf16 %v1904_v13, %v1902_v35 }
 0xd9b   :  { %1913 = vrot.lane.b32.xlu0 %v1908_v20, %s3234_s24 }
 0xdb1   :  { %v1912_v10 = vpop.permute.xlu1 %1911 }
 0xe0d   :  { %v1914_v21 = vpop.permute.xlu0 %1913 }
 0xe0e   :  { %2812 = vmatprep.subr.bf16.mxu1 %v1914_v21 }
 0xe0f   :  { %2813 = vmatpush3.bf16.msra.mxu1 %v1914_v21 }
 0xe10   :  { %2814 = vmatprep.subr.bf16.mxu1 %v1912_v10 }
 0xe13   :  { %2815 = vmatpush3.bf16.msra.mxu1 %v1912_v10 }
 0xe16   :  { %2817 = vmatmul.mubr.msk.bf16.vlgmr.msra.gmra.mxu1 %vm160_vm0, %v3671_v15 }
 0xe17   :  { %2820 = vmatprep.mubr.msk.bf16.mxu1 %vm160_vm0, %v3678_v28 }
 0xe1e   :  { %2821 = vmatmul.mubr.msk.bf16.gmra.mxu1 %vm160_vm0, %v3685_v17 }
 0xe1f   :  { %2824 = vmatprep.mubr.msk.bf16.mxu1 %vm160_vm0, %v3692_v44 }
 0xe26   :  { %2825 = vmatmul.mubr.msk.bf16.gmra.mxu1 %vm160_vm0, %v3699_v14 }
 0xed6   :  { %v2818_v22 = vpop.f32.mrf.mxu1 }
 0xed8   :  { %v1951_v23 = vpop.f32.mrf.mxu1 }
 0xeda   :  { %v2819_v5 = vpop.f32.mrf.mxu1 }
 0xedc   :  { %v1954_v1 = vpop.f32.mrf.mxu1 }
 0xede   :  { %v2822_v40 = vpop.f32.mrf.mxu1 }
 0xedf   :  { %2088 = vrot.lane.b32.xlu0 %v2822_v40, %s3233_s23 }
 0xee0   :  { %v1967_v15 = vpop.f32.mrf.mxu1 }
 0xee1   :  { %v2054_v32 = vadd.f32 %v1967_v15, %v3542_v27 }
 0xee2   :  { %v2823_v48 = vpop.f32.mrf.mxu1 }
 0xee3   :  { %2090 = vrot.lane.b32.xlu1 %v2823_v48, %s3233_s23 }
 0xee4   :  { %v1970_v28 = vpop.f32.mrf.mxu1 }
 0xee5   :  { %v2055_v46 = vadd.f32 %v1970_v28, %v3546_v11 }
 0xee6   :  { %v2826_v24 = vpop.f32.mrf.mxu1 }
 0xee7   :  { %v2130_v34 = vadd.f32 %v2826_v24, %v3444_v53 }
 0xee8   :  { %v1983_v17 = vpop.f32.mrf.mxu1 }
 0xee9   :  { %2110 = vrot.lane.b32.xlu0 %v1983_v17, %s3233_s23 }
 0xeea   :  { %v2827_v44 = vpop.f32.mrf.mxu1 }
 0xeeb   :  { %v2131_v41 = vadd.f32 %v2827_v44, %v3454_v58 }
 0xeec   :  { %v1986_v14 = vpop.f32.mrf.mxu1 }
 0xeed   :  { %2134 = vrot.lane.b32.xlu0 %v2130_v34, %s3233_s23  ;;  %2112 = vrot.lane.b32.xlu1 %v1986_v14, %s3233_s23 }
 0xef1   :  { %2150 = vrot.lane.b32.xlu0 %v1902_v35, %s3242_s20  ;;  %2136 = vrot.lane.b32.xlu1 %v2131_v41, %s3233_s23 }
 0xef5   :  { %2012 = vrot.lane.b32.xlu0 %v1951_v23, %s3232_s4  ;;  %2152 = vrot.lane.b32.xlu1 %v1904_v13, %s3242_s20 }
 0xef9   :  { %2034 = vrot.lane.b32.xlu0 %v2818_v22, %s3232_s4  ;;  %2014 = vrot.lane.b32.xlu1 %v1954_v1, %s3232_s4 }
 0xefd   :  { %2058 = vrot.lane.b32.xlu0 %v2054_v32, %s3232_s4  ;;  %2036 = vrot.lane.b32.xlu1 %v2819_v5, %s3232_s4 }
 0xf01   :  { %2076 = vrot.lane.b32.xlu0 %v1819_v49, %s3233_s23  ;;  %2060 = vrot.lane.b32.xlu1 %v2055_v46, %s3232_s4 }
 0xf05   :  { %2078 = vrot.lane.b32.xlu1 %v1820_v7, %s3233_s23 }
 0xf51   :  { %v2089_v26 = vpop.permute.xlu0 %2088 }
 0xf52   :  { %v2094_v16 = vadd.f32 %v2089_v26, %v3781_v8 }
 0xf54   :  { %v2604_v38 = vmul.f32 -1.442695, %v2094_v16 }
 0xf55   :  { %v2091_v50 = vpop.permute.xlu1 %2090 }
 0xf56   :  { %3132 = vpow2.f32 %v2604_v38  ;;  %v2095_v39 = vadd.f32 %v2091_v50, %v3784_v55 }
 0xf58   :  { %v2605_v6 = vmul.f32 -1.442695, %v2095_v39 }
 0xf5a   :  { %3134 = vpow2.f32 %v2605_v6 }
 0xf5b   :  { %v2111_v45 = vpop.permute.xlu0 %2110 }
 0xf5c   :  { %v2116_v52 = vadd.f32 %v2111_v45, %v3787_v9 }
 0xf5e   :  { %v2606_v43 = vmul.f32 -1.442695, %v2116_v52 }
 0xf5f   :  { %v2135_v54 = vpop.permute.xlu0 %2134  ;;  %v2113_v4 = vpop.permute.xlu1 %2112 }
 0xf60   :  { %3136 = vpow2.f32 %v2606_v43  ;;  %v2117_v29 = vadd.f32 %v2113_v4, %v3790_v42 }
 0xf62   :  { %v2607_v56 = vmul.f32 -1.442695, %v2117_v29 }
 0xf63   :  { %v3133_v25 = vpop.eup %3132  ;;  %v2151_v31 = vpop.permute.xlu0 %2150 }
 0xf64   :  { %v2137_v57 = vpop.permute.xlu1 %2136  ;;  %v2102_v60 = vadd.f32 1.0, %v3133_v25  ;;  %3138 = vpow2.f32 %v2607_v56 }
 0xf66   :  { %3140 = vrcp.f32 %v2102_v60 }
 0xf67   :  { %v3135_v36 = vpop.eup %3134  ;;  %v2013_v61 = vpop.permute.xlu0 %2012 }
 0xf68   :  { %v2153_v49 = vpop.permute.xlu1 %2152  ;;  %v2103_v62 = vadd.f32 1.0, %v3135_v36  ;;  %v2018_v63 = vadd.f32 %v2013_v61, %v3793_v59 }
 0xf6a   :  { %3142 = vrcp.f32 %v2103_v62  ;;  %v2600_v3 = vmul.f32 -1.442695, %v2018_v63 }
 0xf6b   :  { %v2035_v30 = vpop.permute.xlu0 %2034 }
 0xf6c   :  { %v2015_v18 = vpop.permute.xlu1 %2014  ;;  %3144 = vpow2.f32 %v2600_v3  ;;  %v2040_v35 = vadd.f32 %v2035_v30, %v3799_v33 }
 0xf6d   :  { %v2019_v7 = vadd.f32 %v2015_v18, %v3796_v12  ;;  %v3137_v0 = vpop.eup %3136 }
 0xf6e   :  { %v2124_v20 = vadd.f32 1.0, %v3137_v0  ;;  %v2602_v22 = vmul.f32 -1.442695, %v2040_v35 }
 0xf6f   :  { %v2601_v13 = vmul.f32 -1.442695, %v2019_v7  ;;  %v2059_v25 = vpop.permute.xlu0 %2058 }
 0xf70   :  { %v2037_v21 = vpop.permute.xlu1 %2036 }
 0xf71   :  { %v3139_v10 = vpop.eup %3138  ;;  %3146 = vpow2.f32 %v2601_v13  ;;  %v2041_v1 = vadd.f32 %v2037_v21, %v3802_v37 }
 0xf72   :  { %v2125_v5 = vadd.f32 1.0, %v3139_v10  ;;  %3148 = vrcp.f32 %v2124_v20 }
 0xf73   :  { %v3141_v23 = vpop.eup %3140  ;;  %3150 = vpow2.f32 %v2602_v22  ;;  %v2603_v28 = vmul.f32 -1.442695, %v2041_v1  ;;  %v2077_v7 = vpop.permute.xlu0 %2076 }
 0xf74   :  { %v2140_v40 = vmul.f32 %v3141_v23, %v2135_v54  ;;  %3152 = vrcp.f32 %v2125_v5  ;;  %v2061_v62 = vpop.permute.xlu1 %2060 }
 0xf76   :  { %v2142_v15 = vadd.f32 %v2140_v40, %v3805_v47 }
 0xf77   :  { %v3143_v48 = vpop.eup %3142 }
 0xf78   :  { %3154 = vtanh.f32 %v2142_v15  ;;  %v2141_v24 = vmul.f32 %v3143_v48, %v2137_v57  ;;  %v2079_v22 = vpop.permute.xlu1 %2078 }
 0xf79   :  { %v3145_v17 = vpop.eup %3144  ;;  %3156 = vpow2.f32 %v2603_v28 }
 0xf7a   :  { %v2143_v44 = vadd.f32 %v2141_v24, %v3808_v51  ;;  %v2026_v34 = vadd.f32 1.0, %v3145_v17 }
 0xf7c   :  { %3158 = vtanh.f32 %v2143_v44  ;;  %v3224_v44 = vld [vmem:[%s3997_s3 + $0x8] sm:$0xff]  }
 0xf7d   :  { %3160 = vrcp.f32 %v2026_v34  ;;  %v3225_v34 = vld [vmem:[%s3997_s3 + $0x10] sm:$0xff]  }
 0xf7e   :  { %v3147_v14 = vpop.eup %3146 }
 0xf7f   :  { %v2027_v41 = vadd.f32 1.0, %v3147_v14  ;;  %v3149_v32 = vpop.eup %3148  ;;  %v3226_v14 = vld [vmem:[%s3997_s3 + $0x18] sm:$0xff]  }
 0xf80   :  { %v3151_v46 = vpop.eup %3150  ;;  %v2146_v16 = vsub.f32 1.0, %v3149_v32  ;;  %v2156_v39 = vmul.f32 %v3149_v32, %v2151_v31  ;;  %v3228_v32 = vld [vmem:[%s3997_s3 + $0x28] sm:$0xff]  }
 0xf81   :  { %3162 = vrcp.f32 %v2027_v41  ;;  %v3153_v26 = vpop.eup %3152  ;;  %v2048_v6 = vadd.f32 1.0, %v3151_v46  ;;  %v3227_v41 = vld [vmem:[%s3997_s3 + $0x20] sm:$0xff]  }
 0xf82   :  { %v2147_v43 = vsub.f32 1.0, %v3153_v26  ;;  %v2157_v56 = vmul.f32 %v3153_v26, %v2153_v49 }
 0xf83   :  { %3164 = vrcp.f32 %v2048_v6 }
 0xf85   :  { %v3155_v38 = vpop.eup %3154 }
 0xf86   :  { %v2148_v50 = vmul.f32 %v3155_v38, %v2146_v16  ;;  %v3157_v45 = vpop.eup %3156 }
 0xf87   :  { %v2049_v36 = vadd.f32 1.0, %v3157_v45 }
 0xf88   :  { %v2158_v52 = vadd.f32 %v2156_v39, %v2148_v50 }
 0xf89   :  { %v3159_v54 = vpop.eup %3158 }
 0xf8a   :  { %v3161_v4 = vpop.eup %3160  ;;  %2162 = vst.msk [vmem:[#allocation3 + $0x10] sm:$0xff] %vm835_vm5, %v2158_v52  ;;  %v2149_v29 = vmul.f32 %v3159_v54, %v2147_v43  ;;  %2166 = vrot.lane.b32.xlu0 %v2158_v52, %s3236_s26  ;;  %v3244_v54 = vmov 0.0  }
 0xf8b   :  { %v2064_v57 = vmul.f32 %v3161_v4, %v2059_v25  ;;  %2844 = vmatprep.subr.mxu1 %v3244_v54  ;;  %2852 = vmatprep.mubr.msk.f32.mxu1 %vm3245_vm10, %v3244_v54 }
 0xf8c   :  { %v2159_v60 = vadd.f32 %v2157_v56, %v2149_v29 }
 0xf8d   :  { %v2066_v61 = vadd.f32 %v2064_v57, %v3812_v2 }
 0xf8e   :  { %2163 = vst.msk [vmem:[#allocation3 + $0x18] sm:$0xff] %vm835_vm5, %v2159_v60  ;;  %2168 = vrot.lane.b32.xlu1 %v2159_v60, %s3236_s26  ;;  %v3163_v31 = vpop.eup %3162 }
 0xf8f   :  { %3166 = vtanh.f32 %v2066_v61  ;;  %v2065_v63 = vmul.f32 %v3163_v31, %v2061_v62 }
 0xf90   :  { %3168 = vrcp.f32 %v2049_v36  ;;  %v3165_v3 = vpop.eup %3164 }
 0xf91   :  { %v2067_v49 = vadd.f32 %v2065_v63, %v3818_v19  ;;  %v2070_v30 = vsub.f32 1.0, %v3165_v3  ;;  %v2082_v13 = vmul.f32 %v3165_v3, %v2077_v7 }
 0xf93   :  { %3170 = vtanh.f32 %v2067_v49 }
 0xf9c   :  { %v3167_v18 = vpop.eup %3166 }
 0xf9d   :  { %v3169_v0 = vpop.eup %3168  ;;  %v2072_v35 = vmul.f32 %v3167_v18, %v2070_v30 }
 0xf9e   :  { %v2071_v21 = vsub.f32 1.0, %v3169_v0  ;;  %v2083_v5 = vmul.f32 %v3169_v0, %v2079_v22 }
 0xf9f   :  { %v2084_v20 = vadd.f32 %v2082_v13, %v2072_v35 }
 0xfa0   :  { %v3171_v10 = vpop.eup %3170 }
 0xfa1   :  { %2160 = vst.msk [vmem:[#allocation3] sm:$0xff] %vm838_vm4, %v2084_v20  ;;  %v2073_v23 = vmul.f32 %v3171_v10, %v2071_v21 }
 0xfa3   :  { %v2085_v1 = vadd.f32 %v2083_v5, %v2073_v23 }
 0xfa5   :  { %2161 = vst.msk [vmem:[#allocation3 + $0x8] sm:$0xff] %vm838_vm4, %v2085_v1  ;;  %v2172_v40 = vpack.c.bf16 %v2085_v1, %v2084_v20 }
 0xfa7   :  { %2176 = vrot.lane.b32.xlu1 %v2172_v40, %s3243_s21 }
 0xffc   :  { %v2167_v15 = vpop.permute.xlu0 %2166 }
0x1000   :  { %v2169_v48 = vpop.permute.xlu1 %2168 }
0x1001   :  { %v2173_v28 = vpack.c.bf16 %v2169_v48, %v2167_v15 }
0x1003   :  { %2178 = vrot.lane.b32.xlu0 %v2173_v28, %s3243_s21 }
0x1019   :  { %v2177_v17 = vpop.permute.xlu1 %2176 }
0x1075   :  { %v2179_v24 = vpop.permute.xlu0 %2178 }
0x1076   :  { %2828 = vmatprep.subr.bf16.mxu0 %v2179_v24 }
0x1077   :  { %2829 = vmatpush3.bf16.msra.mxu0 %v2179_v24 }
0x1078   :  { %2830 = vmatprep.subr.bf16.mxu0 %v2177_v17 }
0x107b   :  { %2831 = vmatpush3.bf16.msra.mxu0 %v2177_v17 }
0x107e   :  { %2833 = vmatmul.mubr.msk.bf16.vlgmr.msra.gmra.mxu0 %vm160_vm0, %v3224_v44 }
0x107f   :  { %2836 = vmatprep.mubr.msk.bf16.mxu0 %vm160_vm0, %v3225_v34 }
0x1086   :  { %2837 = vmatmul.mubr.msk.bf16.gmra.mxu0 %vm160_vm0, %v3226_v14 }
0x1087   :  { %2840 = vmatprep.mubr.msk.bf16.mxu0 %vm160_vm0, %v3227_v41 }
0x108e   :  { %2841 = vmatmul.mubr.msk.bf16.gmra.mxu0 %vm160_vm0, %v3228_v32 }
0x113e   :  { %v2834_v46 = vpop.f32.mrf.mxu0 }
0x1140   :  { %v2216_v26 = vpop.f32.mrf.mxu0 }
0x1141   :  { %2277 = vrot.lane.b32.xlu1 %v2216_v26, %s3230_s22 }
0x1142   :  { %v2835_v16 = vpop.f32.mrf.mxu0 }
0x1144   :  { %v2219_v38 = vpop.f32.mrf.mxu0 }
0x1145   :  { %2299 = vrot.lane.b32.xlu1 %v2834_v46, %s3230_s22  ;;  %2279 = vrot.lane.b32.xlu0 %v2219_v38, %s3230_s22 }
0x1146   :  { %v2838_v50 = vpop.f32.mrf.mxu0 }
0x1148   :  { %v2232_v39 = vpop.f32.mrf.mxu0 }
0x1149   :  { %v2319_v6 = vadd.f32 %v2232_v39, %v3542_v27  ;;  %2301 = vrot.lane.b32.xlu0 %v2835_v16, %s3230_s22  ;;  %v2351_v27 = vadd.f32 %v2838_v50, %v3781_v8 }
0x114a   :  { %v2839_v45 = vpop.f32.mrf.mxu0 }
0x114b   :  { %2323 = vrot.lane.b32.xlu1 %v2319_v6, %s3230_s22  ;;  %v2618_v4 = vmul.f32 -1.442695, %v2351_v27 }
0x114c   :  { %v2235_v52 = vpop.f32.mrf.mxu0 }
0x114d   :  { %v2320_v43 = vadd.f32 %v2235_v52, %v3546_v11  ;;  %v2352_v11 = vadd.f32 %v2839_v45, %v3784_v55  ;;  %3172 = vpow2.f32 %v2618_v4 }
0x114e   :  { %v2842_v56 = vpop.f32.mrf.mxu0 }
0x114f   :  { %2391 = vrot.lane.b32.xlu1 %v2167_v15, %s3243_s21  ;;  %2325 = vrot.lane.b32.xlu0 %v2320_v43, %s3230_s22  ;;  %v2619_v29 = vmul.f32 -1.442695, %v2352_v11  ;;  %v2379_v30 = vadd.f32 %v2842_v56, %v3444_v53 }
0x1150   :  { %v2248_v25 = vpop.f32.mrf.mxu0 }
0x1151   :  { %3174 = vpow2.f32 %v2619_v29  ;;  %v2365_v36 = vadd.f32 %v2248_v25, %v3787_v9 }
0x1152   :  { %v2843_v57 = vpop.f32.mrf.mxu0 }
0x1153   :  { %2341 = vrot.lane.b32.xlu1 %v2084_v20, %s3233_s23  ;;  %2393 = vrot.lane.b32.xlu0 %v2169_v48, %s3243_s21  ;;  %v2620_v63 = vmul.f32 -1.442695, %v2365_v36  ;;  %v2380_v9 = vadd.f32 %v2843_v57, %v3454_v58 }
0x1154   :  { %v2251_v61 = vpop.f32.mrf.mxu0 }
0x1155   :  { %v2366_v49 = vadd.f32 %v2251_v61, %v3790_v42 }
0x1157   :  { %2343 = vrot.lane.b32.xlu0 %v2085_v1, %s3233_s23  ;;  %v2621_v3 = vmul.f32 -1.442695, %v2366_v49 }
0x115a   :  { %v3173_v60 = vpop.eup %3172 }
0x115b   :  { %v2359_v31 = vadd.f32 1.0, %v3173_v60 }
0x115d   :  { %3176 = vrcp.f32 %v2359_v31 }
0x115e   :  { %v3175_v62 = vpop.eup %3174  ;;  %3178 = vpow2.f32 %v2620_v63 }
0x115f   :  { %v2360_v8 = vadd.f32 1.0, %v3175_v62 }
0x1161   :  { %3180 = vrcp.f32 %v2360_v8 }
0x1162   :  { %3182 = vpow2.f32 %v2621_v3 }
0x116a   :  { %v3177_v55 = vpop.eup %3176 }
0x116b   :  { %v3179_v18 = vpop.eup %3178  ;;  %v2381_v7 = vmul.f32 %v3177_v55, %v2379_v30 }
0x116c   :  { %v2373_v35 = vadd.f32 1.0, %v3179_v18 }
0x116d   :  { %v2383_v20 = vadd.f32 %v2381_v7, %v3805_v47 }
0x116e   :  { %v3181_v0 = vpop.eup %3180  ;;  %3184 = vrcp.f32 %v2373_v35 }
0x116f   :  { %v3183_v13 = vpop.eup %3182  ;;  %v2382_v21 = vmul.f32 %v3181_v0, %v2380_v9  ;;  %3186 = vtanh.f32 %v2383_v20  ;;  %v2405_v20 = vld [vmem:[%s4000_s6] sm:$0x3] }
0x1170   :  { %v2374_v42 = vadd.f32 1.0, %v3183_v13 }
0x1171   :  { %v2384_v10 = vadd.f32 %v2382_v21, %v3808_v51 }
0x1172   :  { %3188 = vrcp.f32 %v2374_v42  ;;  %v2410_v42 = vld [vmem:[%s4001_s7] sm:$0x3] }
0x1173   :  { %3190 = vtanh.f32 %v2384_v10 }
0x117b   :  { %v3185_v48 = vpop.eup %3184 }
0x117c   :  { %v3187_v51 = vpop.eup %3186  ;;  %v2387_v44 = vsub.f32 1.0, %v3185_v48 }
0x117e   :  { %v2389_v41 = vmul.f32 %v3187_v51, %v2387_v44 }
0x11b3   :  { %v2278_v22 = vpop.permute.xlu1 %2277 }
0x11b4   :  { %v2283_v23 = vadd.f32 %v2278_v22, %v3793_v59  ;;  %v3189_v59 = vpop.eup %3188 }
0x11b5   :  { %v3191_v46 = vpop.eup %3190 }
0x11b6   :  { %v2614_v53 = vmul.f32 -1.442695, %v2283_v23 }
0x11b7   :  { %v2300_v5 = vpop.permute.xlu1 %2299  ;;  %v2280_v1 = vpop.permute.xlu0 %2279 }
0x11b8   :  { %3192 = vpow2.f32 %v2614_v53  ;;  %v2284_v58 = vadd.f32 %v2280_v1, %v3796_v12  ;;  %v2305_v40 = vadd.f32 %v2300_v5, %v3799_v33  ;;  %v2388_v33 = vsub.f32 1.0, %v3189_v59 }
0x11ba   :  { %v2615_v47 = vmul.f32 -1.442695, %v2284_v58  ;;  %v2616_v24 = vmul.f32 -1.442695, %v2305_v40  ;;  %v2390_v39 = vmul.f32 %v3191_v46, %v2388_v33 }
0x11bb   :  { %v2302_v15 = vpop.permute.xlu0 %2301 }
0x11bc   :  { %3194 = vpow2.f32 %v2615_v47  ;;  %v2306_v17 = vadd.f32 %v2302_v15, %v3802_v37 }
0x11bd   :  { %v2324_v28 = vpop.permute.xlu1 %2323  ;;  %3196 = vpow2.f32 %v2616_v24 }
0x11be   :  { %v2617_v12 = vmul.f32 -1.442695, %v2306_v17 }
0x11c0   :  { %3198 = vpow2.f32 %v2617_v12 }
0x11c1   :  { %v2392_v34 = vpop.permute.xlu1 %2391  ;;  %v2326_v14 = vpop.permute.xlu0 %2325 }
0x11c2   :  { %v2397_v32 = vmul.f32 %v3185_v48, %v2392_v34 }
0x11c4   :  { %v2399_v26 = vadd.f32 %v2397_v32, %v2389_v41 }
0x11c5   :  { %v3193_v16 = vpop.eup %3192  ;;  %v2394_v38 = vpop.permute.xlu0 %2393 }
0x11c6   :  { %v2291_v50 = vadd.f32 1.0, %v3193_v16  ;;  %2403 = vst.msk [vmem:[#allocation3 + $0x10] sm:$0xff] %vm576_vm3, %v2399_v26  ;;  %v2398_v6 = vmul.f32 %v3189_v59, %v2394_v38  ;;  %v2342_v8 = vpop.permute.xlu1 %2341 }
0x11c8   :  { %3200 = vrcp.f32 %v2291_v50  ;;  %v2400_v37 = vadd.f32 %v2398_v6, %v2390_v39 }
0x11c9   :  { %v3195_v45 = vpop.eup %3194 }
0x11ca   :  { %2404 = vst.msk [vmem:[#allocation3 + $0x18] sm:$0xff] %vm576_vm3, %v2400_v37  ;;  %v2292_v52 = vadd.f32 1.0, %v3195_v45  ;;  %v3197_v43 = vpop.eup %3196 }
0x11cb   :  { %v2313_v4 = vadd.f32 1.0, %v3197_v43 }
0x11cc   :  { %3202 = vrcp.f32 %v2292_v52 }
0x11cd   :  { %v2408_v11 = vld [vmem:[#allocation3 + $0x10] sm:$0xff]  ;;  %v3199_v29 = vpop.eup %3198  ;;  %3204 = vrcp.f32 %v2313_v4 }
0x11ce   :  { %v2314_v57 = vadd.f32 1.0, %v3199_v29 }
0x11d1   :  { %v2409_v27 = vld [vmem:[#allocation3 + $0x18] sm:$0xff] }
0x11d2   :  { %2845 = vmatpush3.msra.mxu1 %v2409_v27 }
0x11d3   :  { %2846 = vmatprep.subr.mxu1 %v3244_v54 }
0x11d4   :  { %2847 = vmatpush3.msra.mxu1 %v2408_v11 }
0x11d5   :  { %v3201_v56 = vpop.eup %3200  ;;  %2848 = vmatprep.subr.mxu1 %v3244_v54 }
0x11d6   :  { %v2329_v25 = vmul.f32 %v3201_v56, %v2324_v28 }
0x11d8   :  { %v2331_v60 = vadd.f32 %v2329_v25, %v3812_v2  ;;  %v2344_v2 = vpop.permute.xlu0 %2343 }
0x11d9   :  { %v3203_v36 = vpop.eup %3202 }
0x11da   :  { %3206 = vtanh.f32 %v2331_v60  ;;  %v2330_v61 = vmul.f32 %v3203_v36, %v2326_v14  ;;  %v3205_v62 = vpop.eup %3204 }
0x11db   :  { %3208 = vrcp.f32 %v2314_v57  ;;  %v2335_v63 = vsub.f32 1.0, %v3205_v62  ;;  %v2347_v30 = vmul.f32 %v3205_v62, %v2342_v8 }
0x11dc   :  { %v2332_v31 = vadd.f32 %v2330_v61, %v3818_v19 }
0x11de   :  { %3210 = vtanh.f32 %v2332_v31 }
0x11e7   :  { %v3207_v49 = vpop.eup %3206 }
0x11e8   :  { %v3209_v3 = vpop.eup %3208  ;;  %v2337_v55 = vmul.f32 %v3207_v49, %v2335_v63 }
0x11e9   :  { %v2336_v7 = vsub.f32 1.0, %v3209_v3  ;;  %v2348_v9 = vmul.f32 %v3209_v3, %v2344_v2 }
0x11ea   :  { %v2349_v18 = vadd.f32 %v2347_v30, %v2337_v55 }
0x11eb   :  { %v3211_v0 = vpop.eup %3210 }
0x11ec   :  { %2401 = vst.msk [vmem:[#allocation3] sm:$0xff] %vm579_vm2, %v2349_v18  ;;  %v2338_v35 = vmul.f32 %v3211_v0, %v2336_v7 }
0x11ee   :  { %v2350_v13 = vadd.f32 %v2348_v9, %v2338_v35 }
0x11f0   :  { %2402 = vst.msk [vmem:[#allocation3 + $0x8] sm:$0xff] %vm579_vm2, %v2350_v13 }
0x11f3   :  { %v2406_v21 = vld [vmem:[#allocation3] sm:$0xff] }
0x11f7   :  { %v2407_v19 = vld [vmem:[#allocation3 + $0x8] sm:$0xff] }
0x11f8   :  { %2849 = vmatpush3.msra.mxu1 %v2407_v19 }
0x11f9   :  { %2850 = vmatprep.subr.mxu1 %v3244_v54 }
0x11fa   :  { %2851 = vmatpush3.msra.mxu1 %v2406_v21 }
0x11fb   :  { %2853 = vmatmul.mubr.msk.f32.vlgmr.msra.gmra.mxu1 %vm160_vm0, %v2405_v20 }
0x12bb   :  { %v2480_v10 = vpop.f32.mrf.mxu1 }
0x12bc   :  { %v2481_v22 = vadd.f32 %v2480_v10, %v2410_v42 }
0x12bd   :  { %v2854_v23 = vpop.f32.mrf.mxu1 }
0x12be   :  { %2485 = vst.msk [vmem:[%s4002_s8] sm:$0x3] %vm2484_vm11, %v2481_v22 }

</bundles_post_ra>
